<compile_context>
chip_gen: v7x
topology: tpu7x:2x2x1
jax: 0.10.0
libtpu: 0.0.40
codegen_flags: <defaults>
</compile_context>

<pallas_src>
import functools

import jax
import jax.numpy as jnp
from jax.experimental import pallas as pl
from jax.experimental.pallas import tpu as pltpu


def _round_up(x, m):
    return (x + m - 1) // m * m


# --------------------------------------------------------------------------
# Kernel 1: f_message MLP on edges + scatter-add, fused.
#   grid = (E tiles,), "arbitrary"; the full m_sum [n_pad, 2D] output block is
#   resident across the edge axis (accumulator). The MLP runs once per edge
#   tile (no per-node-tile recomputation).
# --------------------------------------------------------------------------
def _message_scatter_kernel(row_ref, xr_ref, xc_ref, w1r_ref, w1c_ref,
                            b1_ref, w2_ref, b2_ref, msum_ref):
    e_blk = pl.program_id(0)

    @pl.when(e_blk == 0)
    def _():
        msum_ref[...] = jnp.zeros_like(msum_ref)

    # cat(x[row], x[col]) @ W1 == x[row] @ W1_top + x[col] @ W1_bot
    h = (jnp.dot(xr_ref[...], w1r_ref[...], preferred_element_type=jnp.float32)
         + jnp.dot(xc_ref[...], w1c_ref[...], preferred_element_type=jnp.float32)
         + b1_ref[...])
    h = jnp.maximum(h, 0.0)                                     # ReLU hidden
    m = jnp.dot(h.astype(jnp.bfloat16), w2_ref[...],
                preferred_element_type=jnp.float32) + b2_ref[...]

    # scatter_add: one-hot built on the fly (exact in bf16), f32 accumulation.
    n_pad = msum_ref.shape[0]
    te = row_ref.shape[1]
    node_ids = jax.lax.broadcasted_iota(jnp.int32, (n_pad, te), 0)
    onehot = (node_ids == row_ref[...]).astype(jnp.bfloat16)    # [n_pad, te]
    msum_ref[...] += jnp.dot(onehot, m.astype(jnp.bfloat16),
                             preferred_element_type=jnp.float32)


def f_message_and_scatter(x, row, col, w1, b1, w2, b2, *, num_nodes):
    d = x.shape[1]
    two_d = w1.shape[1]
    e = row.shape[0]

    # Concat fusion + bf16 weights.
    w1_bf = w1.astype(jnp.bfloat16)
    w1r, w1c = w1_bf[:d], w1_bf[d:]
    w2_bf = w2.astype(jnp.bfloat16)

    # Edge tiling (bigger tiles when there are many edges).
    if e >= 512:
        te = 512
        e_pad = _round_up(e, te)
    else:
        e_pad = _round_up(e, 8)
        te = e_pad
    n_pad = _round_up(num_nodes, 8)

    x_bf = x.astype(jnp.bfloat16)          # halves HBM bytes of the edge gather
    xr = x_bf[row]
    xc = x_bf[col]
    row_i32 = row.astype(jnp.int32)
    if e_pad != e:
        pad = e_pad - e
        xr = jnp.pad(xr, ((0, pad), (0, 0)))
        xc = jnp.pad(xc, ((0, pad), (0, 0)))
        # Padded edges carry row = -1 so they never match a node id (>= 0).
        row_i32 = jnp.pad(row_i32, (0, pad), constant_values=-1)
    row2d = row_i32.reshape(1, e_pad)

    msum = pl.pallas_call(
        _message_scatter_kernel,
        out_shape=jax.ShapeDtypeStruct((n_pad, two_d), jnp.float32),
        grid_spec=pltpu.PrefetchScalarGridSpec(
            num_scalar_prefetch=0,
            grid=(e_pad // te,),
            in_specs=[
                pl.BlockSpec((1, te), lambda eb: (0, eb)),        # row indices
                pl.BlockSpec((te, d), lambda eb: (eb, 0)),        # x[row] (bf16)
                pl.BlockSpec((te, d), lambda eb: (eb, 0)),        # x[col] (bf16)
                pl.BlockSpec((d, two_d), lambda eb: (0, 0)),      # w1 top
                pl.BlockSpec((d, two_d), lambda eb: (0, 0)),      # w1 bottom
                pl.BlockSpec((1, two_d), lambda eb: (0, 0)),      # b1
                pl.BlockSpec((two_d, two_d), lambda eb: (0, 0)),  # w2
                pl.BlockSpec((1, two_d), lambda eb: (0, 0)),      # b2
            ],
            # Full m_sum stays resident across the edge axis.
            out_specs=pl.BlockSpec((n_pad, two_d), lambda eb: (0, 0)),
        ),
        compiler_params=pltpu.CompilerParams(
            dimension_semantics=("arbitrary",)),
    )(row2d, xr, xc, w1r, w1c, b1, w2_bf, b2)
    return msum[:num_nodes]


# --------------------------------------------------------------------------
# Kernel 2: f_match — cross-graph attention, several graph pairs per grid step.
#   Block = (G, 2P, D): per pair, first P rows are g1, last P rows are g2.
# --------------------------------------------------------------------------
def _f_match_kernel(x_ref, u_ref, *, p):
    x = x_ref[...]                                              # [G, 2P, D] f32
    sumsq = jnp.sum(x * x, axis=2, keepdims=True)
    # F.normalize(p=2, dim=1): x / max(||x||, 1e-12)  ==  x * rsqrt(max(ss,1e-24))
    xn = (x * jax.lax.rsqrt(jnp.maximum(sumsq, 1e-24))).astype(jnp.bfloat16)
    g1, g2 = x[:, :p, :], x[:, p:, :]
    g1n, g2n = xn[:, :p, :], xn[:, p:, :]
    g1b, g2b = g1.astype(jnp.bfloat16), g2.astype(jnp.bfloat16)

    def _attend(a_n, b_n, b_val):
        # softmax(a_norm @ b_norm^T, dim=1) @ b  per pair (canonical batched form;
        # each similarity matmul is a [P,D]x[D,P] micro-matmul so recomputing the
        # second direction is cheaper than an explicit transpose here).
        sim = jnp.einsum('gpd,gqd->gpq', a_n, b_n,
                         preferred_element_type=jnp.float32)
        s = sim - jnp.max(sim, axis=2, keepdims=True)
        e = jnp.exp(s)
        a = e * pl.reciprocal(jnp.sum(e, axis=2, keepdims=True), approx=True)
        return jnp.einsum('gpq,gqd->gpd', a.astype(jnp.bfloat16), b_val,
                          preferred_element_type=jnp.float32)

    # Two direct stores — no concatenate copy.
    u_ref[:, :p, :] = g1 - _attend(g1n, g2n, g2b)
    u_ref[:, p:, :] = g2 - _attend(g2n, g1n, g1b)


def f_match(x, *, nodes_per_graph):
    n, d = x.shape
    p = nodes_per_graph
    assert n % (2 * p) == 0, "nodes must form equal-size graph pairs"
    num_pairs = n // (2 * p)
    # TODO(synk): variable-size graphs (the batch_data.ind_list case) would need
    # scalar-prefetched per-pair offsets/lengths; only equal-size graphs here.

    # Batch several pairs per grid step to amortize per-step pipeline overhead.
    g = 1
    for cand in range(1, num_pairs + 1):
        if num_pairs % cand == 0 and cand * 2 * p <= 512:
            g = cand

    x3 = x.reshape(num_pairs, 2 * p, d)
    kern = functools.partial(_f_match_kernel, p=p)
    u3 = pl.pallas_call(
        kern,
        out_shape=jax.ShapeDtypeStruct((num_pairs, 2 * p, d), jnp.float32),
        grid_spec=pltpu.PrefetchScalarGridSpec(
            num_scalar_prefetch=0,
            grid=(num_pairs // g,),
            in_specs=[pl.BlockSpec((g, 2 * p, d), lambda i: (i, 0, 0))],
            out_specs=pl.BlockSpec((g, 2 * p, d), lambda i: (i, 0, 0)),
        ),
        compiler_params=pltpu.CompilerParams(dimension_semantics=("parallel",)),
    )(x3)
    return u3.reshape(n, d)


# --------------------------------------------------------------------------
# Kernel 3: f_node MLP (fused concat) + BatchNorm1d, fully fused in one call.
#   grid = (phase, N tiles). Phase 0: MLP per tile -> VMEM scratch + exact
#   batch statistics. Phase 1: normalize from the scratch (no HBM round trip
#   of the pre-BN activations, single kernel launch).
# --------------------------------------------------------------------------
def _f_node_fused_kernel(x_ref, ms_ref, us_ref, w1x_ref, w1m_ref, w1u_ref,
                         b1_ref, w2_ref, b2_ref, gamma_ref, beta_ref,
                         out_ref, y_scr, sum_scr, sq_scr,
                         *, tn, n_real, eps):
    phase = pl.program_id(0)
    i = pl.program_id(1)

    @pl.when((phase == 0) & (i == 0))
    def _():
        sum_scr[...] = jnp.zeros_like(sum_scr)
        sq_scr[...] = jnp.zeros_like(sq_scr)

    @pl.when(phase == 0)
    def _():
        # cat(x, m_sum, u_sum) @ W1 == x@W1x + m_sum@W1m + u_sum@W1u
        h = (jnp.dot(x_ref[...], w1x_ref[...], preferred_element_type=jnp.float32)
             + jnp.dot(ms_ref[...], w1m_ref[...], preferred_element_type=jnp.float32)
             + jnp.dot(us_ref[...], w1u_ref[...], preferred_element_type=jnp.float32)
             + b1_ref[...])
        h = jnp.maximum(h, 0.0)
        y = jnp.dot(h.astype(jnp.bfloat16), w2_ref[...],
                    preferred_element_type=jnp.float32) + b2_ref[...]
        y_scr[i] = y                    # keep pre-BN activations on-chip
        out_ref[...] = y                # placeholder; overwritten in phase 1

        # Exact batch statistics (padded rows masked out).
        ridx = i * tn + jax.lax.broadcasted_iota(jnp.int32, y.shape, 0)
        yv = jnp.where(ridx < n_real, y, 0.0)
        sum_scr[...] += jnp.sum(yv, axis=0, keepdims=True)
        sq_scr[...] += jnp.sum(yv * yv, axis=0, keepdims=True)

    @pl.when(phase == 1)
    def _():
        inv_n = 1.0 / n_real
        mean = sum_scr[...] * inv_n
        var = jnp.maximum(sq_scr[...] * inv_n - mean * mean, 0.0)
        inv = jax.lax.rsqrt(var + eps)
        out_ref[...] = (y_scr[i] - mean) * inv * gamma_ref[...] + beta_ref[...]


def f_node(x, m_sum, u_sum, w1, b1, w2, b2, gamma, beta, *, eps=1e-5):
    n, d = x.shape
    two_d = m_sum.shape[1]
    hid = w1.shape[1]
    out_dim = w2.shape[1]

    w1_bf = w1.astype(jnp.bfloat16)
    w1x = w1_bf[:d]
    w1m = w1_bf[d:d + two_d]
    w1u = w1_bf[d + two_d:]
    w2_bf = w2.astype(jnp.bfloat16)

    if n >= 512:
        tn = 256
        n_pad = _round_up(n, tn)
    else:
        n_pad = _round_up(n, 8)
        tn = n_pad
    n_tiles = n_pad // tn

    xb = x.astype(jnp.bfloat16)
    mb = m_sum.astype(jnp.bfloat16)
    ub = u_sum.astype(jnp.bfloat16)
    if n_pad != n:
        pad = n_pad - n
        xb = jnp.pad(xb, ((0, pad), (0, 0)))
        mb = jnp.pad(mb, ((0, pad), (0, 0)))
        ub = jnp.pad(ub, ((0, pad), (0, 0)))

    kern = functools.partial(_f_node_fused_kernel, tn=tn, n_real=n, eps=eps)

    # Phase 0 streams the tiled node inputs; phase 1 pins their block index to
    # 0 so the pipeline stops re-fetching them during the normalization pass.
    def tiled(width):
        return pl.BlockSpec((tn, width), lambda ph, i: (i * (1 - ph), 0))

    def const(r, c):
        return pl.BlockSpec((r, c), lambda ph, i: (0, 0))

    out = pl.pallas_call(
        kern,
        out_shape=jax.ShapeDtypeStruct((n_pad, out_dim), jnp.float32),
        grid_spec=pltpu.PrefetchScalarGridSpec(
            num_scalar_prefetch=0,
            grid=(2, n_tiles),
            in_specs=[
                tiled(d), tiled(two_d), tiled(d),
                const(d, hid), const(two_d, hid), const(d, hid),
                const(1, hid), const(hid, out_dim), const(1, out_dim),
                const(1, out_dim), const(1, out_dim),
            ],
            out_specs=pl.BlockSpec((tn, out_dim), lambda ph, i: (i, 0)),
            scratch_shapes=[
                pltpu.VMEM((n_tiles, tn, out_dim), jnp.float32),  # pre-BN y
                pltpu.VMEM((1, out_dim), jnp.float32),            # sum
                pltpu.VMEM((1, out_dim), jnp.float32),            # sum of squares
            ],
        ),
        compiler_params=pltpu.CompilerParams(
            dimension_semantics=("arbitrary", "arbitrary")),
    )(xb, mb, ub, w1x, w1m, w1u, b1, w2_bf, b2, gamma, beta)
    return out[:n]


# --------------------------------------------------------------------------
# GMNPropagator forward (f_node='MLP', distance_metric='cosine')
# --------------------------------------------------------------------------
@functools.partial(jax.jit, static_argnames=("num_nodes", "nodes_per_graph"))
def gmn_propagator_forward(x, edge_index, params, *, num_nodes, nodes_per_graph):
    row, col = edge_index[0], edge_index[1]
    m_sum = f_message_and_scatter(x, row, col,
                                  params["fm_w1"], params["fm_b1"],
                                  params["fm_w2"], params["fm_b2"],
                                  num_nodes=num_nodes)
    u_sum = f_match(x, nodes_per_graph=nodes_per_graph)
    out = f_node(x, m_sum, u_sum,
                 params["fn_w1"], params["fn_b1"],
                 params["fn_w2"], params["fn_b2"],
                 params["fn_gamma"], params["fn_beta"])
    # TODO(synk): model.store_layer_output(self, out) is host-side bookkeeping
    # with no kernel equivalent; the output is simply returned.
    return out


# --------------------------------------------------------------------------
# Parameter construction (deterministic, synthetic)
# --------------------------------------------------------------------------
def make_params(key, input_dim, output_dim):
    d2, d4 = 2 * input_dim, 4 * input_dim
    ks = jax.random.split(key, 4)
    return {
        # f_message: MLP(2D, 2D, num_hidden_lyr=1, hidden_channels=[2D])
        "fm_w1": 0.1 * jax.random.normal(ks[0], (d2, d2), jnp.float32),
        "fm_b1": jnp.zeros((1, d2), jnp.float32),
        "fm_w2": 0.1 * jax.random.normal(ks[1], (d2, d2), jnp.float32),
        "fm_b2": jnp.zeros((1, d2), jnp.float32),
        # f_node: MLP(4D, out, num_hidden_lyr=1, bn=True) -> 4D->4D->out + BN
        "fn_w1": 0.1 * jax.random.normal(ks[2], (d4, d4), jnp.float32),
        "fn_b1": jnp.zeros((1, d4), jnp.float32),
        "fn_w2": 0.1 * jax.random.normal(ks[3], (d4, output_dim), jnp.float32),
        "fn_b2": jnp.zeros((1, output_dim), jnp.float32),
        # BatchNorm1d(out_dim) fresh init: gamma=1, beta=0
        "fn_gamma": jnp.ones((1, output_dim), jnp.float32),
        "fn_beta": jnp.zeros((1, output_dim), jnp.float32),
    }


if __name__ == "__main__":
    # Feature dims chosen as multiples of 128 so every kernel output is
    # lane-dense (no masked partial stores); shapes stay small.
    INPUT_DIM = 128          # D  -> 2D = 256, 4D = 512
    OUTPUT_DIM = 128
    NODES_PER_GRAPH = 8
    NUM_GRAPHS = 4           # 2 graph pairs
    N = NODES_PER_GRAPH * NUM_GRAPHS   # 32 nodes
    E = 256                  # edges

    key = jax.random.PRNGKey(0)
    k_x, k_row, k_col, k_p = jax.random.split(key, 4)

    x = jax.random.normal(k_x, (N, INPUT_DIM), jnp.float32)
    row = jax.random.randint(k_row, (E,), 0, N, dtype=jnp.int32)
    col = jax.random.randint(k_col, (E,), 0, N, dtype=jnp.int32)
    edge_index = jnp.stack([row, col], axis=0)                  # [2, E]

    params = make_params(k_p, INPUT_DIM, OUTPUT_DIM)

    out = gmn_propagator_forward(x, edge_index, params,
                                 num_nodes=N, nodes_per_graph=NODES_PER_GRAPH)
    out = jax.block_until_ready(out)

    assert out.shape == (N, OUTPUT_DIM), out.shape
    assert bool(jnp.all(jnp.isfinite(out)))
    print("KERNEL_OK")
</pallas_src>

<mosaic_0001>
module attributes {stable_mosaic.version = 11 : i64} {
  func.func @_message_scatter_kernel(%arg0: i32, %arg1: memref<1x256xi32, #tpu.memory_space<vmem>>, %arg2: memref<256x128xbf16, #tpu.memory_space<vmem>>, %arg3: memref<256x128xbf16, #tpu.memory_space<vmem>>, %arg4: memref<128x256xbf16, #tpu.memory_space<vmem>>, %arg5: memref<128x256xbf16, #tpu.memory_space<vmem>>, %arg6: memref<1x256xf32, #tpu.memory_space<vmem>>, %arg7: memref<256x256xbf16, #tpu.memory_space<vmem>>, %arg8: memref<1x256xf32, #tpu.memory_space<vmem>>, %arg9: memref<32x256xf32, #tpu.memory_space<vmem>>) attributes {dimension_semantics = [#tpu.dimension_semantics<arbitrary>], iteration_bounds = array<i64: 1>, scalar_prefetch = 0 : i64, scratch_operands = 0 : i64, tpu.core_type = #tpu.core_type<tc>, window_params = [{transform_indices = @transform_0, window_bounds = array<i64: 1, 256>}, {transform_indices = @transform_1, window_bounds = array<i64: 256, 128>}, {transform_indices = @transform_2, window_bounds = array<i64: 256, 128>}, {pipeline_mode = #tpu.pipeline_mode<synchronous>, transform_indices = @transform_3, window_bounds = array<i64: 128, 256>}, {pipeline_mode = #tpu.pipeline_mode<synchronous>, transform_indices = @transform_4, window_bounds = array<i64: 128, 256>}, {pipeline_mode = #tpu.pipeline_mode<synchronous>, transform_indices = @transform_5, window_bounds = array<i64: 1, 256>}, {pipeline_mode = #tpu.pipeline_mode<synchronous>, transform_indices = @transform_6, window_bounds = array<i64: 256, 256>}, {pipeline_mode = #tpu.pipeline_mode<synchronous>, transform_indices = @transform_7, window_bounds = array<i64: 1, 256>}, {pipeline_mode = #tpu.pipeline_mode<synchronous>, transform_indices = @transform_8, window_bounds = array<i64: 32, 256>}]} {
    %c0_i32 = arith.constant 0 : i32
    %0 = arith.cmpi eq, %arg0, %c0_i32 : i32
    %1 = arith.extui %0 : i1 to i32
    %c0_i32_0 = arith.constant 0 : i32
    %2 = arith.cmpi ne, %1, %c0_i32_0 : i32
    scf.if %2 {
      %cst_24 = arith.constant 0.000000e+00 : f32
      %33 = vector.broadcast %cst_24 : f32 to vector<32x256xf32>
      %c0_25 = arith.constant 0 : index
      %c0_26 = arith.constant 0 : index
      %34 = vector.load %arg9[%c0_25, %c0_26] : memref<32x256xf32, #tpu.memory_space<vmem>>, vector<32x256xf32>
      tpu.vector_store %arg9[%c0_25, %c0_26], %33 {strides = array<i32>} : memref<32x256xf32, #tpu.memory_space<vmem>>, vector<32x256xf32>,
    } else {
    }
    %c0 = arith.constant 0 : index
    %c0_1 = arith.constant 0 : index
    %3 = vector.load %arg2[%c0, %c0_1] : memref<256x128xbf16, #tpu.memory_space<vmem>>, vector<256x128xbf16>
    %c0_2 = arith.constant 0 : index
    %c0_3 = arith.constant 0 : index
    %4 = vector.load %arg4[%c0_2, %c0_3] : memref<128x256xbf16, #tpu.memory_space<vmem>>, vector<128x256xbf16>
    %cst = arith.constant dense<0.000000e+00> : vector<256x256xf32>
    %5 = tpu.matmul %3, %4, %cst {dimension_numbers = #tpu.dot_dimension_numbers<[1], [0], [0], [1], [0, 0, 1, 1], [], []>} : vector<256x128xbf16>, vector<128x256xbf16>, vector<256x256xf32> -> vector<256x256xf32>
    %c0_4 = arith.constant 0 : index
    %c0_5 = arith.constant 0 : index
    %6 = vector.load %arg3[%c0_4, %c0_5] : memref<256x128xbf16, #tpu.memory_space<vmem>>, vector<256x128xbf16>
    %c0_6 = arith.constant 0 : index
    %c0_7 = arith.constant 0 : index
    %7 = vector.load %arg5[%c0_6, %c0_7] : memref<128x256xbf16, #tpu.memory_space<vmem>>, vector<128x256xbf16>
    %cst_8 = arith.constant dense<0.000000e+00> : vector<256x256xf32>
    %8 = tpu.matmul %6, %7, %cst_8 {dimension_numbers = #tpu.dot_dimension_numbers<[1], [0], [0], [1], [0, 0, 1, 1], [], []>} : vector<256x128xbf16>, vector<128x256xbf16>, vector<256x256xf32> -> vector<256x256xf32>
    %9 = arith.addf %5, %8 : vector<256x256xf32>
    %c0_9 = arith.constant 0 : index
    %c0_10 = arith.constant 0 : index
    %10 = vector.load %arg6[%c0_9, %c0_10] : memref<1x256xf32, #tpu.memory_space<vmem>>, vector<1x256xf32>
    %11 = vector.broadcast %10 : vector<1x256xf32> to vector<256x256xf32>
    %12 = arith.addf %9, %11 : vector<256x256xf32>
    %cst_11 = arith.constant 0.000000e+00 : f32
    %13 = vector.broadcast %cst_11 : f32 to vector<256x256xf32>
    %14 = arith.maximumf %12, %13 : vector<256x256xf32>
    %15 = arith.truncf %14 : vector<256x256xf32> to vector<256x256xbf16>
    %c0_12 = arith.constant 0 : index
    %c0_13 = arith.constant 0 : index
    %16 = vector.load %arg7[%c0_12, %c0_13] : memref<256x256xbf16, #tpu.memory_space<vmem>>, vector<256x256xbf16>
    %cst_14 = arith.constant dense<0.000000e+00> : vector<256x256xf32>
    %17 = tpu.matmul %15, %16, %cst_14 {dimension_numbers = #tpu.dot_dimension_numbers<[1], [0], [0], [1], [0, 0, 1, 1], [], []>} : vector<256x256xbf16>, vector<256x256xbf16>, vector<256x256xf32> -> vector<256x256xf32>
    %c0_15 = arith.constant 0 : index
    %c0_16 = arith.constant 0 : index
    %18 = vector.load %arg8[%c0_15, %c0_16] : memref<1x256xf32, #tpu.memory_space<vmem>>, vector<1x256xf32>
    %19 = vector.broadcast %18 : vector<1x256xf32> to vector<256x256xf32>
    %20 = arith.addf %17, %19 : vector<256x256xf32>
    %21 = tpu.iota {dimensions = array<i32: 0>} : vector<32x256xi32>
    %c0_17 = arith.constant 0 : index
    %c0_18 = arith.constant 0 : index
    %22 = vector.load %arg1[%c0_17, %c0_18] : memref<1x256xi32, #tpu.memory_space<vmem>>, vector<1x256xi32>
    %23 = vector.broadcast %22 : vector<1x256xi32> to vector<32x256xi32>
    %24 = arith.cmpi eq, %21, %23 : vector<32x256xi32>
    %25 = arith.extui %24 : vector<32x256xi1> to vector<32x256xi32>
    %26 = arith.sitofp %25 : vector<32x256xi32> to vector<32x256xf32>
    %27 = arith.truncf %26 : vector<32x256xf32> to vector<32x256xbf16>
    %c0_19 = arith.constant 0 : index
    %c0_20 = arith.constant 0 : index
    %28 = vector.load %arg9[%c0_19, %c0_20] : memref<32x256xf32, #tpu.memory_space<vmem>>, vector<32x256xf32>
    %29 = arith.truncf %20 : vector<256x256xf32> to vector<256x256xbf16>
    %cst_21 = arith.constant dense<0.000000e+00> : vector<32x256xf32>
    %30 = tpu.matmul %27, %29, %cst_21 {dimension_numbers = #tpu.dot_dimension_numbers<[1], [0], [0], [1], [0, 0, 1, 1], [], []>} : vector<32x256xbf16>, vector<256x256xbf16>, vector<32x256xf32> -> vector<32x256xf32>
    %31 = arith.addf %28, %30 : vector<32x256xf32>
    %c0_22 = arith.constant 0 : index
    %c0_23 = arith.constant 0 : index
    %32 = vector.load %arg9[%c0_22, %c0_23] : memref<32x256xf32, #tpu.memory_space<vmem>>, vector<32x256xf32>
    tpu.vector_store %arg9[%c0_22, %c0_23], %31 {strides = array<i32>} : memref<32x256xf32, #tpu.memory_space<vmem>>, vector<32x256xf32>,
    return
  }
  func.func @transform_0(%arg0: i32) -> (i32, i32) {
    %c0_i32 = arith.constant 0 : i32
    %c0_i32_0 = arith.constant 0 : i32
    return %c0_i32, %arg0 : i32, i32
  }
  func.func @transform_1(%arg0: i32) -> (i32, i32) {
    %c0_i32 = arith.constant 0 : i32
    %c0_i32_0 = arith.constant 0 : i32
    return %arg0, %c0_i32 : i32, i32
  }
  func.func @transform_2(%arg0: i32) -> (i32, i32) {
    %c0_i32 = arith.constant 0 : i32
    %c0_i32_0 = arith.constant 0 : i32
    return %arg0, %c0_i32 : i32, i32
  }
  func.func @transform_3(%arg0: i32) -> (i32, i32) {
    %c0_i32 = arith.constant 0 : i32
    %c0_i32_0 = arith.constant 0 : i32
    %c0_i32_1 = arith.constant 0 : i32
    return %c0_i32, %c0_i32_0 : i32, i32
  }
  func.func @transform_4(%arg0: i32) -> (i32, i32) {
    %c0_i32 = arith.constant 0 : i32
    %c0_i32_0 = arith.constant 0 : i32
    %c0_i32_1 = arith.constant 0 : i32
    return %c0_i32, %c0_i32_0 : i32, i32
  }
  func.func @transform_5(%arg0: i32) -> (i32, i32) {
    %c0_i32 = arith.constant 0 : i32
    %c0_i32_0 = arith.constant 0 : i32
    %c0_i32_1 = arith.constant 0 : i32
    return %c0_i32, %c0_i32_0 : i32, i32
  }
  func.func @transform_6(%arg0: i32) -> (i32, i32) {
    %c0_i32 = arith.constant 0 : i32
    %c0_i32_0 = arith.constant 0 : i32
    %c0_i32_1 = arith.constant 0 : i32
    return %c0_i32, %c0_i32_0 : i32, i32
  }
  func.func @transform_7(%arg0: i32) -> (i32, i32) {
    %c0_i32 = arith.constant 0 : i32
    %c0_i32_0 = arith.constant 0 : i32
    %c0_i32_1 = arith.constant 0 : i32
    return %c0_i32, %c0_i32_0 : i32, i32
  }
  func.func @transform_8(%arg0: i32) -> (i32, i32) {
    %c0_i32 = arith.constant 0 : i32
    %c0_i32_0 = arith.constant 0 : i32
    %c0_i32_1 = arith.constant 0 : i32
    return %c0_i32, %c0_i32_0 : i32, i32
  }
}

module attributes {stable_mosaic.version = 11 : i64} {
  func.func @_f_match_kernel(%arg0: i32, %arg1: memref<2x16x128xf32, #tpu.memory_space<vmem>>, %arg2: memref<2x16x128xf32, #tpu.memory_space<vmem>>) attributes {dimension_semantics = [#tpu.dimension_semantics<parallel>], iteration_bounds = array<i64: 1>, scalar_prefetch = 0 : i64, scratch_operands = 0 : i64, tpu.core_type = #tpu.core_type<tc>, window_params = [{transform_indices = @transform_0, window_bounds = array<i64: 2, 16, 128>}, {transform_indices = @transform_1, window_bounds = array<i64: 2, 16, 128>}]} {
    %c0 = arith.constant 0 : index
    %c0_0 = arith.constant 0 : index
    %c0_1 = arith.constant 0 : index
    %0 = vector.load %arg1[%c0, %c0_0, %c0_1] : memref<2x16x128xf32, #tpu.memory_space<vmem>>, vector<2x16x128xf32>
    %1 = arith.mulf %0, %0 : vector<2x16x128xf32>
    %cst = arith.constant dense<0.000000e+00> : vector<2x16xf32>
    %2 = vector.multi_reduction <add>, %1, %cst [2] : vector<2x16x128xf32> to vector<2x16xf32>
    %3 = vector.shape_cast %2 : vector<2x16xf32> to vector<2x16x1xf32>
    %cst_2 = arith.constant 1.000000e-24 : f32
    %4 = vector.broadcast %cst_2 : f32 to vector<2x16x1xf32>
    %5 = arith.maximumf %3, %4 : vector<2x16x1xf32>
    %6 = math.rsqrt %5 : vector<2x16x1xf32>
    %7 = vector.broadcast %6 : vector<2x16x1xf32> to vector<2x16x128xf32>
    %8 = arith.mulf %0, %7 : vector<2x16x128xf32>
    %9 = arith.truncf %8 : vector<2x16x128xf32> to vector<2x16x128xbf16>
    %10 = vector.extract_strided_slice %0 {offsets = [0, 0, 0], sizes = [2, 8, 128], strides = [1, 1, 1]} : vector<2x16x128xf32> to vector<2x8x128xf32>
    %11 = vector.extract_strided_slice %0 {offsets = [0, 8, 0], sizes = [2, 8, 128], strides = [1, 1, 1]} : vector<2x16x128xf32> to vector<2x8x128xf32>
    %12 = vector.extract_strided_slice %9 {offsets = [0, 0, 0], sizes = [2, 8, 128], strides = [1, 1, 1]} : vector<2x16x128xbf16> to vector<2x8x128xbf16>
    %13 = vector.extract_strided_slice %9 {offsets = [0, 8, 0], sizes = [2, 8, 128], strides = [1, 1, 1]} : vector<2x16x128xbf16> to vector<2x8x128xbf16>
    %14 = arith.truncf %10 : vector<2x8x128xf32> to vector<2x8x128xbf16>
    %15 = arith.truncf %11 : vector<2x8x128xf32> to vector<2x8x128xbf16>
    "tpu.trace_start"() <{level = 10 : i32, message = "gpd,gqd->gpq"}> : () -> ()
    %cst_3 = arith.constant dense<0.000000e+00> : vector<2x8x8xf32>
    %16 = tpu.matmul %12, %13, %cst_3 {dimension_numbers = #tpu.dot_dimension_numbers<[2], [2], [1], [1], [0, 0, 0, 1, 1, 1], [0], [0]>} : vector<2x8x128xbf16>, vector<2x8x128xbf16>, vector<2x8x8xf32> -> vector<2x8x8xf32>
    "tpu.trace_stop"() : () -> ()
    %cst_4 = arith.constant dense<0xFF800000> : vector<2x8xf32>
    %17 = vector.multi_reduction <maximumf>, %16, %cst_4 [2] : vector<2x8x8xf32> to vector<2x8xf32>
    %18 = vector.shape_cast %17 : vector<2x8xf32> to vector<2x8x1xf32>
    %19 = vector.broadcast %18 : vector<2x8x1xf32> to vector<2x8x8xf32>
    %20 = arith.subf %16, %19 : vector<2x8x8xf32>
    %21 = math.exp %20 : vector<2x8x8xf32>
    %cst_5 = arith.constant dense<0.000000e+00> : vector<2x8xf32>
    %22 = vector.multi_reduction <add>, %21, %cst_5 [2] : vector<2x8x8xf32> to vector<2x8xf32>
    %23 = vector.shape_cast %22 : vector<2x8xf32> to vector<2x8x1xf32>
    %24 = tpu.reciprocal %23 {approx = true} : vector<2x8x1xf32> -> vector<2x8x1xf32>
    %25 = vector.broadcast %24 : vector<2x8x1xf32> to vector<2x8x8xf32>
    %26 = arith.mulf %21, %25 : vector<2x8x8xf32>
    %27 = arith.truncf %26 : vector<2x8x8xf32> to vector<2x8x8xbf16>
    "tpu.trace_start"() <{level = 10 : i32, message = "gpq,gqd->gpd"}> : () -> ()
    %cst_6 = arith.constant dense<0.000000e+00> : vector<2x8x128xf32>
    %28 = tpu.matmul %27, %15, %cst_6 {dimension_numbers = #tpu.dot_dimension_numbers<[2], [1], [1], [2], [0, 0, 0, 1, 1, 2], [0], [0]>} : vector<2x8x8xbf16>, vector<2x8x128xbf16>, vector<2x8x128xf32> -> vector<2x8x128xf32>
    "tpu.trace_stop"() : () -> ()
    %29 = arith.subf %10, %28 : vector<2x8x128xf32>
    %c0_7 = arith.constant 0 : index
    %c0_8 = arith.constant 0 : index
    %c0_9 = arith.constant 0 : index
    %30 = vector.load %arg2[%c0_7, %c0_8, %c0_9] : memref<2x16x128xf32, #tpu.memory_space<vmem>>, vector<2x8x128xf32>
    tpu.vector_store %arg2[%c0_7, %c0_8, %c0_9], %29 {strides = array<i32>} : memref<2x16x128xf32, #tpu.memory_space<vmem>>, vector<2x8x128xf32>,
    "tpu.trace_start"() <{level = 10 : i32, message = "gpd,gqd->gpq"}> : () -> ()
    %cst_10 = arith.constant dense<0.000000e+00> : vector<2x8x8xf32>
    %31 = tpu.matmul %13, %12, %cst_10 {dimension_numbers = #tpu.dot_dimension_numbers<[2], [2], [1], [1], [0, 0, 0, 1, 1, 1], [0], [0]>} : vector<2x8x128xbf16>, vector<2x8x128xbf16>, vector<2x8x8xf32> -> vector<2x8x8xf32>
    "tpu.trace_stop"() : () -> ()
    %cst_11 = arith.constant dense<0xFF800000> : vector<2x8xf32>
    %32 = vector.multi_reduction <maximumf>, %31, %cst_11 [2] : vector<2x8x8xf32> to vector<2x8xf32>
    %33 = vector.shape_cast %32 : vector<2x8xf32> to vector<2x8x1xf32>
    %34 = vector.broadcast %33 : vector<2x8x1xf32> to vector<2x8x8xf32>
    %35 = arith.subf %31, %34 : vector<2x8x8xf32>
    %36 = math.exp %35 : vector<2x8x8xf32>
    %cst_12 = arith.constant dense<0.000000e+00> : vector<2x8xf32>
    %37 = vector.multi_reduction <add>, %36, %cst_12 [2] : vector<2x8x8xf32> to vector<2x8xf32>
    %38 = vector.shape_cast %37 : vector<2x8xf32> to vector<2x8x1xf32>
    %39 = tpu.reciprocal %38 {approx = true} : vector<2x8x1xf32> -> vector<2x8x1xf32>
    %40 = vector.broadcast %39 : vector<2x8x1xf32> to vector<2x8x8xf32>
    %41 = arith.mulf %36, %40 : vector<2x8x8xf32>
    %42 = arith.truncf %41 : vector<2x8x8xf32> to vector<2x8x8xbf16>
    "tpu.trace_start"() <{level = 10 : i32, message = "gpq,gqd->gpd"}> : () -> ()
    %cst_13 = arith.constant dense<0.000000e+00> : vector<2x8x128xf32>
    %43 = tpu.matmul %42, %14, %cst_13 {dimension_numbers = #tpu.dot_dimension_numbers<[2], [1], [1], [2], [0, 0, 0, 1, 1, 2], [0], [0]>} : vector<2x8x8xbf16>, vector<2x8x128xbf16>, vector<2x8x128xf32> -> vector<2x8x128xf32>
    "tpu.trace_stop"() : () -> ()
    %44 = arith.subf %11, %43 : vector<2x8x128xf32>
    %c0_14 = arith.constant 0 : index
    %c8 = arith.constant 8 : index
    %c0_15 = arith.constant 0 : index
    %45 = vector.load %arg2[%c0_14, %c8, %c0_15] : memref<2x16x128xf32, #tpu.memory_space<vmem>>, vector<2x8x128xf32>
    tpu.vector_store %arg2[%c0_14, %c8, %c0_15], %44 {strides = array<i32>} : memref<2x16x128xf32, #tpu.memory_space<vmem>>, vector<2x8x128xf32>,
    return
  }
  func.func @transform_0(%arg0: i32) -> (i32, i32, i32) {
    %c0_i32 = arith.constant 0 : i32
    %c0_i32_0 = arith.constant 0 : i32
    %c0_i32_1 = arith.constant 0 : i32
    return %arg0, %c0_i32, %c0_i32_0 : i32, i32, i32
  }
  func.func @transform_1(%arg0: i32) -> (i32, i32, i32) {
    %c0_i32 = arith.constant 0 : i32
    %c0_i32_0 = arith.constant 0 : i32
    %c0_i32_1 = arith.constant 0 : i32
    return %arg0, %c0_i32, %c0_i32_0 : i32, i32, i32
  }
}

module attributes {stable_mosaic.version = 11 : i64} {
  func.func @_f_node_fused_kernel(%arg0: i32, %arg1: i32, %arg2: memref<32x128xbf16, #tpu.memory_space<vmem>>, %arg3: memref<32x256xbf16, #tpu.memory_space<vmem>>, %arg4: memref<32x128xbf16, #tpu.memory_space<vmem>>, %arg5: memref<128x512xbf16, #tpu.memory_space<vmem>>, %arg6: memref<256x512xbf16, #tpu.memory_space<vmem>>, %arg7: memref<128x512xbf16, #tpu.memory_space<vmem>>, %arg8: memref<1x512xf32, #tpu.memory_space<vmem>>, %arg9: memref<512x128xbf16, #tpu.memory_space<vmem>>, %arg10: memref<1x128xf32, #tpu.memory_space<vmem>>, %arg11: memref<1x128xf32, #tpu.memory_space<vmem>>, %arg12: memref<1x128xf32, #tpu.memory_space<vmem>>, %arg13: memref<32x128xf32, #tpu.memory_space<vmem>>, %arg14: memref<1x32x128xf32, #tpu.memory_space<vmem>>, %arg15: memref<1x128xf32, #tpu.memory_space<vmem>>, %arg16: memref<1x128xf32, #tpu.memory_space<vmem>>) attributes {dimension_semantics = [#tpu.dimension_semantics<arbitrary>, #tpu.dimension_semantics<arbitrary>], iteration_bounds = array<i64: 2, 1>, scalar_prefetch = 0 : i64, scratch_operands = 3 : i64, tpu.core_type = #tpu.core_type<tc>, window_params = [{transform_indices = @transform_0, window_bounds = array<i64: 32, 128>}, {transform_indices = @transform_1, window_bounds = array<i64: 32, 256>}, {transform_indices = @transform_2, window_bounds = array<i64: 32, 128>}, {pipeline_mode = #tpu.pipeline_mode<synchronous>, transform_indices = @transform_3, window_bounds = array<i64: 128, 512>}, {pipeline_mode = #tpu.pipeline_mode<synchronous>, transform_indices = @transform_4, window_bounds = array<i64: 256, 512>}, {pipeline_mode = #tpu.pipeline_mode<synchronous>, transform_indices = @transform_5, window_bounds = array<i64: 128, 512>}, {pipeline_mode = #tpu.pipeline_mode<synchronous>, transform_indices = @transform_6, window_bounds = array<i64: 1, 512>}, {pipeline_mode = #tpu.pipeline_mode<synchronous>, transform_indices = @transform_7, window_bounds = array<i64: 512, 128>}, {pipeline_mode = #tpu.pipeline_mode<synchronous>, transform_indices = @transform_8, window_bounds = array<i64: 1, 128>}, {pipeline_mode = #tpu.pipeline_mode<synchronous>, transform_indices = @transform_9, window_bounds = array<i64: 1, 128>}, {pipeline_mode = #tpu.pipeline_mode<synchronous>, transform_indices = @transform_10, window_bounds = array<i64: 1, 128>}, {transform_indices = @transform_11, window_bounds = array<i64: 32, 128>}]} {
    %c0_i32 = arith.constant 0 : i32
    %0 = arith.cmpi eq, %arg0, %c0_i32 : i32
    %c0_i32_0 = arith.constant 0 : i32
    %1 = arith.cmpi eq, %arg1, %c0_i32_0 : i32
    %2 = arith.andi %0, %1 : i1
    %3 = arith.extui %2 : i1 to i32
    %c0_i32_1 = arith.constant 0 : i32
    %4 = arith.cmpi ne, %3, %c0_i32_1 : i32
    scf.if %4 {
      %cst = arith.constant 0.000000e+00 : f32
      %11 = vector.broadcast %cst : f32 to vector<1x128xf32>
      %c0 = arith.constant 0 : index
      %c0_5 = arith.constant 0 : index
      %12 = vector.load %arg15[%c0, %c0_5] : memref<1x128xf32, #tpu.memory_space<vmem>>, vector<1x128xf32>
      tpu.vector_store %arg15[%c0, %c0_5], %11 {strides = array<i32>} : memref<1x128xf32, #tpu.memory_space<vmem>>, vector<1x128xf32>,
      %cst_6 = arith.constant 0.000000e+00 : f32
      %13 = vector.broadcast %cst_6 : f32 to vector<1x128xf32>
      %c0_7 = arith.constant 0 : index
      %c0_8 = arith.constant 0 : index
      %14 = vector.load %arg16[%c0_7, %c0_8] : memref<1x128xf32, #tpu.memory_space<vmem>>, vector<1x128xf32>
      tpu.vector_store %arg16[%c0_7, %c0_8], %13 {strides = array<i32>} : memref<1x128xf32, #tpu.memory_space<vmem>>, vector<1x128xf32>,
    } else {
    }
    %c0_i32_2 = arith.constant 0 : i32
    %5 = arith.cmpi eq, %arg0, %c0_i32_2 : i32
    %6 = arith.extui %5 : i1 to i32
    %c0_i32_3 = arith.constant 0 : i32
    %7 = arith.cmpi ne, %6, %c0_i32_3 : i32
    scf.if %7 {
      %c0 = arith.constant 0 : index
      %c0_5 = arith.constant 0 : index
      %11 = vector.load %arg2[%c0, %c0_5] : memref<32x128xbf16, #tpu.memory_space<vmem>>, vector<32x128xbf16>
      %c0_6 = arith.constant 0 : index
      %c0_7 = arith.constant 0 : index
      %12 = vector.load %arg5[%c0_6, %c0_7] : memref<128x512xbf16, #tpu.memory_space<vmem>>, vector<128x512xbf16>
      %cst = arith.constant dense<0.000000e+00> : vector<32x512xf32>
      %13 = tpu.matmul %11, %12, %cst {dimension_numbers = #tpu.dot_dimension_numbers<[1], [0], [0], [1], [0, 0, 1, 1], [], []>} : vector<32x128xbf16>, vector<128x512xbf16>, vector<32x512xf32> -> vector<32x512xf32>
      %c0_8 = arith.constant 0 : index
      %c0_9 = arith.constant 0 : index
      %14 = vector.load %arg3[%c0_8, %c0_9] : memref<32x256xbf16, #tpu.memory_space<vmem>>, vector<32x256xbf16>
      %c0_10 = arith.constant 0 : index
      %c0_11 = arith.constant 0 : index
      %15 = vector.load %arg6[%c0_10, %c0_11] : memref<256x512xbf16, #tpu.memory_space<vmem>>, vector<256x512xbf16>
      %cst_12 = arith.constant dense<0.000000e+00> : vector<32x512xf32>
      %16 = tpu.matmul %14, %15, %cst_12 {dimension_numbers = #tpu.dot_dimension_numbers<[1], [0], [0], [1], [0, 0, 1, 1], [], []>} : vector<32x256xbf16>, vector<256x512xbf16>, vector<32x512xf32> -> vector<32x512xf32>
      %17 = arith.addf %13, %16 : vector<32x512xf32>
      %c0_13 = arith.constant 0 : index
      %c0_14 = arith.constant 0 : index
      %18 = vector.load %arg4[%c0_13, %c0_14] : memref<32x128xbf16, #tpu.memory_space<vmem>>, vector<32x128xbf16>
      %c0_15 = arith.constant 0 : index
      %c0_16 = arith.constant 0 : index
      %19 = vector.load %arg7[%c0_15, %c0_16] : memref<128x512xbf16, #tpu.memory_space<vmem>>, vector<128x512xbf16>
      %cst_17 = arith.constant dense<0.000000e+00> : vector<32x512xf32>
      %20 = tpu.matmul %18, %19, %cst_17 {dimension_numbers = #tpu.dot_dimension_numbers<[1], [0], [0], [1], [0, 0, 1, 1], [], []>} : vector<32x128xbf16>, vector<128x512xbf16>, vector<32x512xf32> -> vector<32x512xf32>
      %21 = arith.addf %17, %20 : vector<32x512xf32>
      %c0_18 = arith.constant 0 : index
      %c0_19 = arith.constant 0 : index
      %22 = vector.load %arg8[%c0_18, %c0_19] : memref<1x512xf32, #tpu.memory_space<vmem>>, vector<1x512xf32>
      %23 = vector.broadcast %22 : vector<1x512xf32> to vector<32x512xf32>
      %24 = arith.addf %21, %23 : vector<32x512xf32>
      %cst_20 = arith.constant 0.000000e+00 : f32
      %25 = vector.broadcast %cst_20 : f32 to vector<32x512xf32>
      %26 = arith.maximumf %24, %25 : vector<32x512xf32>
      %27 = arith.truncf %26 : vector<32x512xf32> to vector<32x512xbf16>
      %c0_21 = arith.constant 0 : index
      %c0_22 = arith.constant 0 : index
      %28 = vector.load %arg9[%c0_21, %c0_22] : memref<512x128xbf16, #tpu.memory_space<vmem>>, vector<512x128xbf16>
      %cst_23 = arith.constant dense<0.000000e+00> : vector<32x128xf32>
      %29 = tpu.matmul %27, %28, %cst_23 {dimension_numbers = #tpu.dot_dimension_numbers<[1], [0], [0], [1], [0, 0, 1, 1], [], []>} : vector<32x512xbf16>, vector<512x128xbf16>, vector<32x128xf32> -> vector<32x128xf32>
      %c0_24 = arith.constant 0 : index
      %c0_25 = arith.constant 0 : index
      %30 = vector.load %arg10[%c0_24, %c0_25] : memref<1x128xf32, #tpu.memory_space<vmem>>, vector<1x128xf32>
      %31 = vector.broadcast %30 : vector<1x128xf32> to vector<32x128xf32>
      %32 = arith.addf %29, %31 : vector<32x128xf32>
      %33 = arith.index_cast %arg1 : i32 to index
      %c0_26 = arith.constant 0 : index
      %c0_27 = arith.constant 0 : index
      %34 = vector.load %arg14[%33, %c0_26, %c0_27] : memref<1x32x128xf32, #tpu.memory_space<vmem>>, vector<1x32x128xf32>
      %35 = vector.shape_cast %34 : vector<1x32x128xf32> to vector<32x128xf32>
      %36 = vector.shape_cast %32 : vector<32x128xf32> to vector<1x32x128xf32>
      tpu.vector_store %arg14[%33, %c0_26, %c0_27], %36 {strides = array<i32>} : memref<1x32x128xf32, #tpu.memory_space<vmem>>, vector<1x32x128xf32>,
      %c0_28 = arith.constant 0 : index
      %c0_29 = arith.constant 0 : index
      %37 = vector.load %arg13[%c0_28, %c0_29] : memref<32x128xf32, #tpu.memory_space<vmem>>, vector<32x128xf32>
      tpu.vector_store %arg13[%c0_28, %c0_29], %32 {strides = array<i32>} : memref<32x128xf32, #tpu.memory_space<vmem>>, vector<32x128xf32>,
      %c32_i32 = arith.constant 32 : i32
      %38 = arith.muli %arg1, %c32_i32 : i32
      %39 = tpu.iota {dimensions = array<i32: 0>} : vector<32x128xi32>
      %40 = vector.broadcast %38 : i32 to vector<32x128xi32>
      %41 = arith.addi %40, %39 : vector<32x128xi32>
      %c32_i32_30 = arith.constant 32 : i32
      %42 = vector.broadcast %c32_i32_30 : i32 to vector<32x128xi32>
      %43 = arith.cmpi slt, %41, %42 : vector<32x128xi32>
      %cst_31 = arith.constant 0.000000e+00 : f32
      %44 = vector.broadcast %cst_31 : f32 to vector<32x128xf32>
      %45 = arith.select %43, %32, %44 : vector<32x128xi1>, vector<32x128xf32>
      %c0_32 = arith.constant 0 : index
      %c0_33 = arith.constant 0 : index
      %46 = vector.load %arg15[%c0_32, %c0_33] : memref<1x128xf32, #tpu.memory_space<vmem>>, vector<1x128xf32>
      %cst_34 = arith.constant dense<0.000000e+00> : vector<128xf32>
      %47 = vector.multi_reduction <add>, %45, %cst_34 [0] : vector<32x128xf32> to vector<128xf32>
      %48 = vector.shape_cast %47 : vector<128xf32> to vector<1x128xf32>
      %49 = arith.addf %46, %48 : vector<1x128xf32>
      %c0_35 = arith.constant 0 : index
      %c0_36 = arith.constant 0 : index
      %50 = vector.load %arg15[%c0_35, %c0_36] : memref<1x128xf32, #tpu.memory_space<vmem>>, vector<1x128xf32>
      tpu.vector_store %arg15[%c0_35, %c0_36], %49 {strides = array<i32>} : memref<1x128xf32, #tpu.memory_space<vmem>>, vector<1x128xf32>,
      %c0_37 = arith.constant 0 : index
      %c0_38 = arith.constant 0 : index
      %51 = vector.load %arg16[%c0_37, %c0_38] : memref<1x128xf32, #tpu.memory_space<vmem>>, vector<1x128xf32>
      %52 = arith.mulf %45, %45 : vector<32x128xf32>
      %cst_39 = arith.constant dense<0.000000e+00> : vector<128xf32>
      %53 = vector.multi_reduction <add>, %52, %cst_39 [0] : vector<32x128xf32> to vector<128xf32>
      %54 = vector.shape_cast %53 : vector<128xf32> to vector<1x128xf32>
      %55 = arith.addf %51, %54 : vector<1x128xf32>
      %c0_40 = arith.constant 0 : index
      %c0_41 = arith.constant 0 : index
      %56 = vector.load %arg16[%c0_40, %c0_41] : memref<1x128xf32, #tpu.memory_space<vmem>>, vector<1x128xf32>
      tpu.vector_store %arg16[%c0_40, %c0_41], %55 {strides = array<i32>} : memref<1x128xf32, #tpu.memory_space<vmem>>, vector<1x128xf32>,
    } else {
    }
    %c1_i32 = arith.constant 1 : i32
    %8 = arith.cmpi eq, %arg0, %c1_i32 : i32
    %9 = arith.extui %8 : i1 to i32
    %c0_i32_4 = arith.constant 0 : i32
    %10 = arith.cmpi ne, %9, %c0_i32_4 : i32
    scf.if %10 {
      %c0 = arith.constant 0 : index
      %c0_5 = arith.constant 0 : index
      %11 = vector.load %arg15[%c0, %c0_5] : memref<1x128xf32, #tpu.memory_space<vmem>>, vector<1x128xf32>
      %cst = arith.constant 3.125000e-02 : f32
      %12 = vector.broadcast %cst : f32 to vector<1x128xf32>
      %13 = arith.mulf %11, %12 : vector<1x128xf32>
      %c0_6 = arith.constant 0 : index
      %c0_7 = arith.constant 0 : index
      %14 = vector.load %arg16[%c0_6, %c0_7] : memref<1x128xf32, #tpu.memory_space<vmem>>, vector<1x128xf32>
      %cst_8 = arith.constant 3.125000e-02 : f32
      %15 = vector.broadcast %cst_8 : f32 to vector<1x128xf32>
      %16 = arith.mulf %14, %15 : vector<1x128xf32>
      %17 = arith.mulf %13, %13 : vector<1x128xf32>
      %18 = arith.subf %16, %17 : vector<1x128xf32>
      %cst_9 = arith.constant 0.000000e+00 : f32
      %19 = vector.broadcast %cst_9 : f32 to vector<1x128xf32>
      %20 = arith.maximumf %18, %19 : vector<1x128xf32>
      %cst_10 = arith.constant 9.99999974E-6 : f32
      %21 = vector.broadcast %cst_10 : f32 to vector<1x128xf32>
      %22 = arith.addf %20, %21 : vector<1x128xf32>
      %23 = math.rsqrt %22 : vector<1x128xf32>
      %24 = arith.index_cast %arg1 : i32 to index
      %c0_11 = arith.constant 0 : index
      %c0_12 = arith.constant 0 : index
      %25 = vector.load %arg14[%24, %c0_11, %c0_12] : memref<1x32x128xf32, #tpu.memory_space<vmem>>, vector<1x32x128xf32>
      %26 = vector.shape_cast %25 : vector<1x32x128xf32> to vector<32x128xf32>
      %27 = vector.broadcast %13 : vector<1x128xf32> to vector<32x128xf32>
      %28 = arith.subf %26, %27 : vector<32x128xf32>
      %29 = vector.broadcast %23 : vector<1x128xf32> to vector<32x128xf32>
      %30 = arith.mulf %28, %29 : vector<32x128xf32>
      %c0_13 = arith.constant 0 : index
      %c0_14 = arith.constant 0 : index
      %31 = vector.load %arg11[%c0_13, %c0_14] : memref<1x128xf32, #tpu.memory_space<vmem>>, vector<1x128xf32>
      %32 = vector.broadcast %31 : vector<1x128xf32> to vector<32x128xf32>
      %33 = arith.mulf %30, %32 : vector<32x128xf32>
      %c0_15 = arith.constant 0 : index
      %c0_16 = arith.constant 0 : index
      %34 = vector.load %arg12[%c0_15, %c0_16] : memref<1x128xf32, #tpu.memory_space<vmem>>, vector<1x128xf32>
      %35 = vector.broadcast %34 : vector<1x128xf32> to vector<32x128xf32>
      %36 = arith.addf %33, %35 : vector<32x128xf32>
      %c0_17 = arith.constant 0 : index
      %c0_18 = arith.constant 0 : index
      %37 = vector.load %arg13[%c0_17, %c0_18] : memref<32x128xf32, #tpu.memory_space<vmem>>, vector<32x128xf32>
      tpu.vector_store %arg13[%c0_17, %c0_18], %36 {strides = array<i32>} : memref<32x128xf32, #tpu.memory_space<vmem>>, vector<32x128xf32>,
    } else {
    }
    return
  }
  func.func @transform_0(%arg0: i32, %arg1: i32) -> (i32, i32) {
    %c1_i32 = arith.constant 1 : i32
    %0 = arith.subi %c1_i32, %arg0 : i32
    %1 = arith.muli %arg1, %0 : i32
    %c0_i32 = arith.constant 0 : i32
    %c0_i32_0 = arith.constant 0 : i32
    return %1, %c0_i32 : i32, i32
  }
  func.func @transform_1(%arg0: i32, %arg1: i32) -> (i32, i32) {
    %c1_i32 = arith.constant 1 : i32
    %0 = arith.subi %c1_i32, %arg0 : i32
    %1 = arith.muli %arg1, %0 : i32
    %c0_i32 = arith.constant 0 : i32
    %c0_i32_0 = arith.constant 0 : i32
    return %1, %c0_i32 : i32, i32
  }
  func.func @transform_2(%arg0: i32, %arg1: i32) -> (i32, i32) {
    %c1_i32 = arith.constant 1 : i32
    %0 = arith.subi %c1_i32, %arg0 : i32
    %1 = arith.muli %arg1, %0 : i32
    %c0_i32 = arith.constant 0 : i32
    %c0_i32_0 = arith.constant 0 : i32
    return %1, %c0_i32 : i32, i32
  }
  func.func @transform_3(%arg0: i32, %arg1: i32) -> (i32, i32) {
    %c0_i32 = arith.constant 0 : i32
    %c0_i32_0 = arith.constant 0 : i32
    %c0_i32_1 = arith.constant 0 : i32
    return %c0_i32, %c0_i32_0 : i32, i32
  }
  func.func @transform_4(%arg0: i32, %arg1: i32) -> (i32, i32) {
    %c0_i32 = arith.constant 0 : i32
    %c0_i32_0 = arith.constant 0 : i32
    %c0_i32_1 = arith.constant 0 : i32
    return %c0_i32, %c0_i32_0 : i32, i32
  }
  func.func @transform_5(%arg0: i32, %arg1: i32) -> (i32, i32) {
    %c0_i32 = arith.constant 0 : i32
    %c0_i32_0 = arith.constant 0 : i32
    %c0_i32_1 = arith.constant 0 : i32
    return %c0_i32, %c0_i32_0 : i32, i32
  }
  func.func @transform_6(%arg0: i32, %arg1: i32) -> (i32, i32) {
    %c0_i32 = arith.constant 0 : i32
    %c0_i32_0 = arith.constant 0 : i32
    %c0_i32_1 = arith.constant 0 : i32
    return %c0_i32, %c0_i32_0 : i32, i32
  }
  func.func @transform_7(%arg0: i32, %arg1: i32) -> (i32, i32) {
    %c0_i32 = arith.constant 0 : i32
    %c0_i32_0 = arith.constant 0 : i32
    %c0_i32_1 = arith.constant 0 : i32
    return %c0_i32, %c0_i32_0 : i32, i32
  }
  func.func @transform_8(%arg0: i32, %arg1: i32) -> (i32, i32) {
    %c0_i32 = arith.constant 0 : i32
    %c0_i32_0 = arith.constant 0 : i32
    %c0_i32_1 = arith.constant 0 : i32
    return %c0_i32, %c0_i32_0 : i32, i32
  }
  func.func @transform_9(%arg0: i32, %arg1: i32) -> (i32, i32) {
    %c0_i32 = arith.constant 0 : i32
    %c0_i32_0 = arith.constant 0 : i32
    %c0_i32_1 = arith.constant 0 : i32
    return %c0_i32, %c0_i32_0 : i32, i32
  }
  func.func @transform_10(%arg0: i32, %arg1: i32) -> (i32, i32) {
    %c0_i32 = arith.constant 0 : i32
    %c0_i32_0 = arith.constant 0 : i32
    %c0_i32_1 = arith.constant 0 : i32
    return %c0_i32, %c0_i32_0 : i32, i32
  }
  func.func @transform_11(%arg0: i32, %arg1: i32) -> (i32, i32) {
    %c0_i32 = arith.constant 0 : i32
    %c0_i32_0 = arith.constant 0 : i32
    return %arg1, %c0_i32 : i32, i32
  }
}

</mosaic_0001>

<bundles_post_ra>
// kernel: gmn_propagator_forward.4
= control target key start
LH: loop header
LB: loop body
LE: loop exit
PB: predicated region body
PF: predicated region fallthrough
CT: control target
= control target key end

     0   :  { %v549_v8 = vmov 0.0   ;;  %vm550_vm0 = vmmov 0   ;;  %vm129_vm1 = vcmask 64512   ;;  %vm157_vm2 = vcmask 1043456   ;;  %s675_s0 = inlined_call_operand.vmem [shape: f32[2,16,128], index: 0, kind: input, shape index: {}]   ;;  %s676_s1 = inlined_call_operand.vmem [shape: f32[2,16,128], index: 1, kind: output, shape index: {}]  }
   0x1   :  { %v564_v0 = vld [vmem:[%s675_s0 + $0x10] sm:$0xff]  ;;  %v569_v1 = vld [vmem:[%s675_s0] sm:$0xff]  ;;  %v574_v2 = vld [vmem:[%s675_s0 + $0x18] sm:$0xff]  ;;  %475 = vmatprep.subr.bf16.mxu0 %v549_v8  ;;  %481 = vmatprep.subr.bf16.mxu1 %v549_v8 }
   0x2   :  { %v15_v3 = vmul.f32 %v564_v0, %v564_v0  ;;  %v13_v4 = vmul.f32 %v569_v1, %v569_v1  ;;  %v583_v5 = vld [vmem:[%s675_s0 + $0x8] sm:$0xff]  ;;  %v16_v6 = vmul.f32 %v574_v2, %v574_v2  ;;  %477 = vmatprep.mubr.msk.bf16.mxu0 %vm550_vm0, %v549_v8  ;;  %483 = vmatprep.mubr.msk.bf16.mxu1 %vm550_vm0, %v549_v8 }
   0x3   :  { %v14_v7 = vmul.f32 %v583_v5, %v583_v5  ;;  %v41_v49 = vpack.c.bf16 %v583_v5, %v583_v5  ;;  %v42_v50 = vpack.c.bf16 %v574_v2, %v574_v2 }
   0x4   :  { %21 = vadd.xlane.f32.xlu1 %v15_v3  ;;  %17 = vadd.xlane.f32.xlu0 %v13_v4 }
   0x5   :  { %v159_v51 = vsel %vm157_vm2, %v41_v49, 0  ;;  %v205_v52 = vsel %vm157_vm2, %v42_v50, 0 }
   0x8   :  { %23 = vadd.xlane.f32.xlu1 %v16_v6  ;;  %19 = vadd.xlane.f32.xlu0 %v14_v7 }
  0x91   :  { %v22_v9 = vpop.xlane.xlu1 %21  ;;  %v18_v10 = vpop.xlane.xlu0 %17 }
  0x92   :  { %v27_v11 = vmax.f32 %v22_v9, 1e-24  ;;  %v25_v12 = vmax.f32 %v18_v10, 1e-24 }
  0x94   :  { %525 = vrsqrt.f32 %v27_v11 }
  0x95   :  { %v24_v13 = vpop.xlane.xlu1 %23  ;;  %v20_v14 = vpop.xlane.xlu0 %19  ;;  %527 = vrsqrt.f32 %v25_v12 }
  0x96   :  { %v28_v15 = vmax.f32 %v24_v13, 1e-24  ;;  %v26_v16 = vmax.f32 %v20_v14, 1e-24 }
  0x98   :  { %529 = vrsqrt.f32 %v28_v15 }
  0x99   :  { %531 = vrsqrt.f32 %v26_v16 }
  0x9e   :  { %v526_v17 = vpop.eup %525 }
  0x9f   :  { %v528_v18 = vpop.eup %527  ;;  %v35_v21 = vmul.f32 %v526_v17, %v564_v0 }
  0xa0   :  { %v33_v23 = vmul.f32 %v528_v18, %v569_v1 }
  0xa2   :  { %v530_v19 = vpop.eup %529 }
  0xa3   :  { %v532_v20 = vpop.eup %531  ;;  %v36_v22 = vmul.f32 %v530_v19, %v574_v2 }
  0xa4   :  { %v34_v24 = vmul.f32 %v532_v20, %v583_v5 }
  0xa5   :  { %v599_v25 = vpack.c.bf16 %v36_v22, %v35_v21 }
  0xa6   :  { %v601_v26 = vpack.c.bf16 %v34_v24, %v33_v23 }
  0xa7   :  { %v87_v27 = vrot.slane %v599_v25, 4 }
  0xa8   :  { %v44_v28 = vrot.slane %v601_v26, 4 }
  0xa9   :  { %482 = vmatpush3.bf16.xpose.msra.mxu1 %v87_v27 }
  0xaa   :  { %476 = vmatpush3.bf16.xpose.msra.mxu0 %v44_v28  ;;  %493 = vmatprep.subr.bf16.mxu1 %v549_v8 }
  0xab   :  { %487 = vmatprep.subr.bf16.mxu0 %v549_v8 }
  0xb0   :  { %484 = vmatmul.mubr.bf16.vlgmr.msra.gmra.mrb[0].mxu1 %v599_v25 }
  0xb1   :  { %478 = vmatmul.mubr.bf16.vlgmr.msra.gmra.mrb[0].mxu0 %v601_v26  ;;  %495 = vmatprep.mubr.msk.bf16.mxu1 %vm550_vm0, %v549_v8 }
  0xb2   :  { %489 = vmatprep.mubr.msk.bf16.mxu0 %vm550_vm0, %v549_v8  ;;  %488 = vmatpush3.bf16.msra.mxu0 %v159_v51 }
  0xb3   :  { %494 = vmatpush3.bf16.msra.mxu1 %v205_v52  ;;  %499 = vmatprep.subr.bf16.mxu0 %v549_v8 }
  0xb4   :  { %505 = vmatprep.subr.bf16.mxu1 %v549_v8 }
 0x183   :  { %v123_v29 = vpop.f32.mrb[0].mxu1 }
 0x184   :  { %v80_v30 = vpop.f32.mrb[0].mxu0  ;;  %v485_v31 = vpop.f32.mrb[1].mxu1  ;;  %v133_v32 = vsel %vm129_vm1, %v123_v29, -inf }
 0x185   :  { %v479_v33 = vpop.f32.mrb[1].mxu0  ;;  %134 = vmax.xlane.f32.xlu1 %v133_v32  ;;  %v126_v34 = vpop.f32.mrb[2].mxu1  ;;  %v130_v35 = vsel %vm129_vm1, %v80_v30, -inf  ;;  %v39_v31 = vpack.c.bf16 %v569_v1, %v569_v1  ;;  %v40_v32 = vpack.c.bf16 %v564_v0, %v564_v0 }
 0x186   :  { %131 = vmax.xlane.f32.xlu0 %v130_v35  ;;  %v83_v36 = vpop.f32.mrb[2].mxu0  ;;  %v486_v37 = vpop.f32.mrb[3].mxu1 }
 0x187   :  { %v480_v38 = vpop.f32.mrb[3].mxu0  ;;  %v359_v33 = vsel %vm157_vm2, %v39_v31, 0  ;;  %v405_v34 = vsel %vm157_vm2, %v40_v32, 0 }
 0x212   :  { %v135_v39 = vpop.xlane.xlu1 %134 }
 0x213   :  { %v137_v40 = vsub.f32 %v123_v29, %v135_v39  ;;  %v132_v41 = vpop.xlane.xlu0 %131 }
 0x214   :  { %v136_v42 = vsub.f32 %v80_v30, %v132_v41 }
 0x215   :  { %v140_v43 = vmul.f32 1.442695, %v137_v40 }
 0x216   :  { %v138_v44 = vmul.f32 1.442695, %v136_v42 }
 0x217   :  { %533 = vpow2.f32 %v140_v43 }
 0x218   :  { %535 = vpow2.f32 %v138_v44 }
 0x221   :  { %v534_v45 = vpop.eup %533 }
 0x222   :  { %v536_v46 = vpop.eup %535  ;;  %v145_v47 = vsel %vm129_vm1, %v534_v45, 0.0 }
 0x223   :  { %146 = vadd.xlane.f32.xlu1 %v145_v47  ;;  %v142_v48 = vsel %vm129_vm1, %v536_v46, 0.0 }
 0x224   :  { %143 = vadd.xlane.f32.xlu0 %v142_v48 }
 0x2b0   :  { %v147_v53 = vpop.xlane.xlu1 %146 }
 0x2b1   :  { %537 = vrcp.f32 %v147_v53  ;;  %v144_v54 = vpop.xlane.xlu0 %143 }
 0x2b2   :  { %539 = vrcp.f32 %v144_v54 }
 0x2bb   :  { %v538_v55 = vpop.eup %537 }
 0x2bc   :  { %v540_v56 = vpop.eup %539  ;;  %v151_v57 = vmul.f32 %v538_v55, %v534_v45 }
 0x2bd   :  { %v150_v58 = vmul.f32 %v540_v56, %v536_v46 }
 0x2be   :  { %v153_v59 = vpack.c.bf16 %v151_v57, %v151_v57 }
 0x2bf   :  { %v152_v60 = vpack.c.bf16 %v150_v58, %v150_v58 }
 0x2c0   :  { %496 = vmatmul.mubr.msk.bf16.vlgmr.msra.gmra.mrb[4].mxu1 %vm129_vm1, %v153_v59 }
 0x2c1   :  { %490 = vmatmul.mubr.msk.bf16.vlgmr.msra.gmra.mrb[4].mxu0 %vm129_vm1, %v152_v60  ;;  %506 = vmatpush3.bf16.xpose.msra.mxu1 %v599_v25 }
 0x2c2   :  { %500 = vmatpush3.bf16.xpose.msra.mxu0 %v601_v26  ;;  %501 = vmatprep.mubr.msk.bf16.mxu0 %vm550_vm0, %v549_v8 }
 0x2c3   :  { %507 = vmatprep.mubr.msk.bf16.mxu1 %vm550_vm0, %v549_v8  ;;  %511 = vmatprep.subr.bf16.mxu0 %v549_v8 }
 0x2c4   :  { %517 = vmatprep.subr.bf16.mxu1 %v549_v8 }
 0x2c8   :  { %508 = vmatmul.mubr.bf16.vlgmr.msra.gmra.mrb[8].mxu1 %v87_v27 }
 0x2c9   :  { %502 = vmatmul.mubr.bf16.vlgmr.msra.gmra.mrb[8].mxu0 %v44_v28  ;;  %519 = vmatprep.mubr.msk.bf16.mxu1 %vm550_vm0, %v549_v8 }
 0x2ca   :  { %513 = vmatprep.mubr.msk.bf16.mxu0 %vm550_vm0, %v549_v8  ;;  %512 = vmatpush3.bf16.msra.mxu0 %v359_v33 }
 0x2cb   :  { %518 = vmatpush3.bf16.msra.mxu1 %v405_v34 }
 0x393   :  { %v241_v61 = vpop.f32.mrb[4].mxu1 }
 0x394   :  { %v195_v62 = vpop.f32.mrb[4].mxu0  ;;  %v248_v63 = vsub.f32 %v564_v0, %v241_v61  ;;  %v497_v3 = vpop.f32.mrb[5].mxu1 }
 0x395   :  { %v247_v4 = vsub.f32 %v569_v1, %v195_v62  ;;  %v491_v6 = vpop.f32.mrb[5].mxu0  ;;  %v244_v7 = vpop.f32.mrb[6].mxu1 }
 0x396   :  { %250 = vst [vmem:[%s676_s1 + $0x10] sm:$0xff] %v248_v63  ;;  %v198_v9 = vpop.f32.mrb[6].mxu0  ;;  %v498_v10 = vpop.f32.mrb[7].mxu1 }
 0x397   :  { %249 = vst [vmem:[%s676_s1] sm:$0xff] %v247_v4  ;;  %v492_v8 = vpop.f32.mrb[7].mxu0 }
 0x39b   :  { %v325_v11 = vpop.f32.mrb[8].mxu1 }
 0x39c   :  { %v285_v12 = vpop.f32.mrb[8].mxu0  ;;  %v509_v13 = vpop.f32.mrb[9].mxu1  ;;  %v334_v14 = vsel %vm129_vm1, %v325_v11, -inf }
 0x39d   :  { %v503_v15 = vpop.f32.mrb[9].mxu0  ;;  %335 = vmax.xlane.f32.xlu1 %v334_v14  ;;  %v328_v16 = vpop.f32.mrb[10].mxu1  ;;  %v331_v17 = vsel %vm129_vm1, %v285_v12, -inf }
 0x39e   :  { %332 = vmax.xlane.f32.xlu0 %v331_v17  ;;  %v288_v18 = vpop.f32.mrb[10].mxu0  ;;  %v510_v19 = vpop.f32.mrb[11].mxu1 }
 0x39f   :  { %v504_v20 = vpop.f32.mrb[11].mxu0 }
 0x42a   :  { %v336_v21 = vpop.xlane.xlu1 %335 }
 0x42b   :  { %v338_v22 = vsub.f32 %v325_v11, %v336_v21  ;;  %v333_v23 = vpop.xlane.xlu0 %332 }
 0x42c   :  { %v337_v24 = vsub.f32 %v285_v12, %v333_v23 }
 0x42d   :  { %v341_v25 = vmul.f32 1.442695, %v338_v22 }
 0x42e   :  { %v339_v26 = vmul.f32 1.442695, %v337_v24 }
 0x42f   :  { %541 = vpow2.f32 %v341_v25 }
 0x430   :  { %543 = vpow2.f32 %v339_v26 }
 0x439   :  { %v542_v27 = vpop.eup %541 }
 0x43a   :  { %v544_v28 = vpop.eup %543  ;;  %v346_v29 = vsel %vm129_vm1, %v542_v27, 0.0 }
 0x43b   :  { %347 = vadd.xlane.f32.xlu1 %v346_v29  ;;  %v343_v30 = vsel %vm129_vm1, %v544_v28, 0.0 }
 0x43c   :  { %344 = vadd.xlane.f32.xlu0 %v343_v30 }
 0x4c8   :  { %v348_v35 = vpop.xlane.xlu1 %347 }
 0x4c9   :  { %545 = vrcp.f32 %v348_v35  ;;  %v345_v36 = vpop.xlane.xlu0 %344 }
 0x4ca   :  { %547 = vrcp.f32 %v345_v36 }
 0x4d3   :  { %v546_v37 = vpop.eup %545 }
 0x4d4   :  { %v548_v38 = vpop.eup %547  ;;  %v352_v39 = vmul.f32 %v546_v37, %v542_v27 }
 0x4d5   :  { %v351_v40 = vmul.f32 %v548_v38, %v544_v28 }
 0x4d6   :  { %v354_v41 = vpack.c.bf16 %v352_v39, %v352_v39 }
 0x4d7   :  { %v353_v42 = vpack.c.bf16 %v351_v40, %v351_v40 }
 0x4d8   :  { %520 = vmatmul.mubr.msk.bf16.vlgmr.msra.gmra.mrb[12].mxu1 %vm129_vm1, %v354_v41 }
 0x4d9   :  { %514 = vmatmul.mubr.msk.bf16.vlgmr.msra.gmra.mrb[12].mxu0 %vm129_vm1, %v353_v42 }
 0x5ab   :  { %v441_v0 = vpop.f32.mrb[12].mxu1 }
 0x5ac   :  { %v395_v1 = vpop.f32.mrb[12].mxu0  ;;  %v448_v43 = vsub.f32 %v574_v2, %v441_v0  ;;  %v521_v44 = vpop.f32.mrb[13].mxu1 }
 0x5ad   :  { %v447_v45 = vsub.f32 %v583_v5, %v395_v1  ;;  %v515_v46 = vpop.f32.mrb[13].mxu0  ;;  %v444_v47 = vpop.f32.mrb[14].mxu1 }
 0x5ae   :  { %450 = vst [vmem:[%s676_s1 + $0x18] sm:$0xff] %v448_v43  ;;  %v398_v48 = vpop.f32.mrb[14].mxu0  ;;  %v522_v49 = vpop.f32.mrb[15].mxu1 }
 0x5af   :  { %449 = vst [vmem:[%s676_s1 + $0x8] sm:$0xff] %v447_v45  ;;  %v516_v50 = vpop.f32.mrb[15].mxu0 }

// kernel: gmn_propagator_forward.3
= control target key start
LH: loop header
LB: loop body
LE: loop exit
PB: predicated region body
PF: predicated region fallthrough
CT: control target
= control target key end

     0   :  { %v1955_v1 = vmov 0   ;;  %s2676_s4 = inlined_call_operand.vmem [shape: bf16[128,256], index: 4, kind: input, shape index: {}]   ;;  %s2677_s2 = inlined_call_operand.vmem [shape: bf16[256,128], index: 2, kind: input, shape index: {}]   ;;  %s2678_s3 = inlined_call_operand.vmem [shape: bf16[128,256], index: 3, kind: input, shape index: {}]   ;;  %s2679_s1 = inlined_call_operand.vmem [shape: bf16[256,128], index: 1, kind: input, shape index: {}]   ;;  %s2680_s6 = inlined_call_operand.vmem [shape: bf16[256,256], index: 6, kind: input, shape index: {}]   ;;  %s2681_s5 = inlined_call_operand.vmem [shape: f32[1,256], index: 5, kind: input, shape index: {}]   ;;  %s2682_s7 = inlined_call_operand.vmem [shape: f32[1,256], index: 7, kind: input, shape index: {}]   ;;  %s2683_s0 = inlined_call_operand.vmem [shape: s32[1,256], index: 0, kind: input, shape index: {}]   ;;  %s2684_s8 = inlined_call_operand.vmem [shape: f32[32,256], index: 8, kind: output, shape index: {}]  }
   0x1   :  { %v1827_v0 = vld [vmem:[%s2676_s4 + $0x4] ss:$8 sps:$4 sm:$0xff]   ;;  %346 = vmatprep.mubr.bf16.mxu0 %v1955_v1  ;;  %386 = vmatprep.mubr.bf16.mxu1 %v1955_v1  ;;  %v1829_v2 = vld [vmem:[%s2676_s4] ss:$8 sps:$4 sm:$0xff]   ;;  %v1830_v3 = vld [vmem:[%s2676_s4 + $0x14] ss:$8 sps:$4 sm:$0xff]  }
   0x2   :  { %314 = vmatprep.subr.bf16.mxu0 %v1827_v0  ;;  %1712 = vmatprep.subr.bf16.mxu1 %v1827_v0  ;;  %v1832_v4 = vld [vmem:[%s2676_s4 + $0x10] ss:$8 sps:$4 sm:$0xff]   ;;  %v1833_v5 = vld [vmem:[%s2676_s4 + $0x24] ss:$8 sps:$4 sm:$0xff]   ;;  %v1835_v6 = vld [vmem:[%s2676_s4 + $0x20] ss:$8 sps:$4 sm:$0xff]  }
   0x3   :  { %315 = vmatpush1.bf16.msra.mxu0 %v1829_v2  ;;  %1720 = vmatpush1.bf16.msra.mxu1 %v1829_v2  ;;  %v1836_v7 = vld [vmem:[%s2676_s4 + $0x34] ss:$8 sps:$4 sm:$0xff]   ;;  %v1838_v8 = vld [vmem:[%s2676_s4 + $0x30] ss:$8 sps:$4 sm:$0xff]   ;;  %v1839_v9 = vld [vmem:[%s2676_s4 + $0x44] ss:$8 sps:$4 sm:$0xff]  }
   0x4   :  { %316 = vmatprep.subr.bf16.mxu0 %v1830_v3  ;;  %1713 = vmatprep.subr.bf16.mxu1 %v1830_v3  ;;  %v1841_v10 = vld [vmem:[%s2676_s4 + $0x40] ss:$8 sps:$4 sm:$0xff]   ;;  %v1842_v11 = vld [vmem:[%s2676_s4 + $0x54] ss:$8 sps:$4 sm:$0xff]   ;;  %v1844_v12 = vld [vmem:[%s2676_s4 + $0x50] ss:$8 sps:$4 sm:$0xff]  }
   0x5   :  { %v1845_v13 = vld [vmem:[%s2676_s4 + $0x64] ss:$8 sps:$4 sm:$0xff]   ;;  %v1847_v14 = vld [vmem:[%s2676_s4 + $0x60] ss:$8 sps:$4 sm:$0xff]   ;;  %v1848_v15 = vld [vmem:[%s2676_s4 + $0x74] ss:$8 sps:$4 sm:$0xff]  }
   0x6   :  { %v1850_v16 = vld [vmem:[%s2676_s4 + $0x70] ss:$8 sps:$4 sm:$0xff]   ;;  %v1854_v17 = vld [vmem:[%s2678_s3 + $0x4] ss:$8 sps:$4 sm:$0xff]   ;;  %v1852_v20 = vld [vmem:[%s2678_s3] ss:$8 sps:$4 sm:$0xff]  }
   0x7   :  { %317 = vmatpush1.bf16.msra.mxu0 %v1832_v4  ;;  %1721 = vmatpush1.bf16.msra.mxu1 %v1832_v4  ;;  %v1851_v18 = vld [vmem:[%s2677_s2] sm:$0xff]   ;;  %v1857_v21 = vld [vmem:[%s2678_s3 + $0x14] ss:$8 sps:$4 sm:$0xff]   ;;  %v1855_v22 = vld [vmem:[%s2678_s3 + $0x10] ss:$8 sps:$4 sm:$0xff]  }
   0x8   :  { %318 = vmatprep.subr.bf16.mxu0 %v1833_v5  ;;  %1714 = vmatprep.subr.bf16.mxu1 %v1833_v5  ;;  %v1883_v19 = vld [vmem:[%s2677_s2 + $0x20] sm:$0xff]   ;;  %v1858_v24 = vld [vmem:[%s2677_s2 + $0x8] sm:$0xff]   ;;  %v1864_v27 = vld [vmem:[%s2678_s3 + $0x34] ss:$8 sps:$4 sm:$0xff]  }
   0x9   :  { %v1861_v23 = vld [vmem:[%s2678_s3 + $0x24] ss:$8 sps:$4 sm:$0xff]   ;;  %v1859_v26 = vld [vmem:[%s2678_s3 + $0x20] ss:$8 sps:$4 sm:$0xff]   ;;  %v1862_v28 = vld [vmem:[%s2678_s3 + $0x30] ss:$8 sps:$4 sm:$0xff]  }
   0xa   :  { %v1885_v25 = vld [vmem:[%s2677_s2 + $0x28] sm:$0xff]   ;;  %v1865_v30 = vld [vmem:[%s2677_s2 + $0x10] sm:$0xff]   ;;  %v1872_v36 = vld [vmem:[%s2677_s2 + $0x18] sm:$0xff]  }
   0xb   :  { %319 = vmatpush1.bf16.msra.mxu0 %v1835_v6  ;;  %1722 = vmatpush1.bf16.msra.mxu1 %v1835_v6  ;;  %v1868_v29 = vld [vmem:[%s2678_s3 + $0x44] ss:$8 sps:$4 sm:$0xff]   ;;  %v1887_v31 = vld [vmem:[%s2677_s2 + $0x30] sm:$0xff]   ;;  %v1866_v32 = vld [vmem:[%s2678_s3 + $0x40] ss:$8 sps:$4 sm:$0xff]  }
   0xc   :  { %320 = vmatprep.subr.bf16.mxu0 %v1836_v7  ;;  %1715 = vmatprep.subr.bf16.mxu1 %v1836_v7  ;;  %v1871_v33 = vld [vmem:[%s2678_s3 + $0x54] ss:$8 sps:$4 sm:$0xff]   ;;  %v1869_v34 = vld [vmem:[%s2678_s3 + $0x50] ss:$8 sps:$4 sm:$0xff]   ;;  %v1875_v35 = vld [vmem:[%s2678_s3 + $0x64] ss:$8 sps:$4 sm:$0xff]  }
   0xd   :  { %v1889_v37 = vld [vmem:[%s2677_s2 + $0x38] sm:$0xff]   ;;  %v1873_v38 = vld [vmem:[%s2678_s3 + $0x60] ss:$8 sps:$4 sm:$0xff]   ;;  %v1909_v41 = vld [vmem:[%s2680_s6 + $0x4] ss:$8 sps:$4 sm:$0xff]  }
   0xe   :  { %v1878_v39 = vld [vmem:[%s2678_s3 + $0x74] ss:$8 sps:$4 sm:$0xff]   ;;  %v1876_v40 = vld [vmem:[%s2678_s3 + $0x70] ss:$8 sps:$4 sm:$0xff]   ;;  %v1879_v42 = vld [vmem:[%s2679_s1] sm:$0xff]  }
   0xf   :  { %321 = vmatpush1.bf16.msra.mxu0 %v1838_v8  ;;  %1723 = vmatpush1.bf16.msra.mxu1 %v1838_v8  ;;  %v1907_v43 = vld [vmem:[%s2680_s6] ss:$8 sps:$4 sm:$0xff]   ;;  %v1912_v45 = vld [vmem:[%s2680_s6 + $0x14] ss:$8 sps:$4 sm:$0xff]   ;;  %v1910_v46 = vld [vmem:[%s2680_s6 + $0x10] ss:$8 sps:$4 sm:$0xff]  }
  0x10   :  { %322 = vmatprep.subr.bf16.mxu0 %v1839_v9  ;;  %1716 = vmatprep.subr.bf16.mxu1 %v1839_v9  ;;  %v1891_v44 = vld [vmem:[%s2677_s2 + $0x40] sm:$0xff]   ;;  %v1880_v48 = vld [vmem:[%s2679_s1 + $0x8] sm:$0xff]   ;;  %v1918_v51 = vld [vmem:[%s2680_s6 + $0x34] ss:$8 sps:$4 sm:$0xff]  }
  0x11   :  { %v1915_v47 = vld [vmem:[%s2680_s6 + $0x24] ss:$8 sps:$4 sm:$0xff]   ;;  %v1913_v50 = vld [vmem:[%s2680_s6 + $0x20] ss:$8 sps:$4 sm:$0xff]   ;;  %v1916_v52 = vld [vmem:[%s2680_s6 + $0x30] ss:$8 sps:$4 sm:$0xff]  }
  0x12   :  { %v1893_v49 = vld [vmem:[%s2677_s2 + $0x48] sm:$0xff]   ;;  %v1881_v54 = vld [vmem:[%s2679_s1 + $0x10] sm:$0xff]   ;;  %v1882_v60 = vld [vmem:[%s2679_s1 + $0x18] sm:$0xff]  }
  0x13   :  { %323 = vmatpush1.bf16.msra.mxu0 %v1841_v10  ;;  %1724 = vmatpush1.bf16.msra.mxu1 %v1841_v10  ;;  %v1921_v53 = vld [vmem:[%s2680_s6 + $0x44] ss:$8 sps:$4 sm:$0xff]   ;;  %v1895_v55 = vld [vmem:[%s2677_s2 + $0x50] sm:$0xff]   ;;  %v1919_v56 = vld [vmem:[%s2680_s6 + $0x40] ss:$8 sps:$4 sm:$0xff]  }
  0x14   :  { %324 = vmatprep.subr.bf16.mxu0 %v1842_v11  ;;  %1717 = vmatprep.subr.bf16.mxu1 %v1842_v11  ;;  %v1924_v57 = vld [vmem:[%s2680_s6 + $0x54] ss:$8 sps:$4 sm:$0xff]   ;;  %v1922_v58 = vld [vmem:[%s2680_s6 + $0x50] ss:$8 sps:$4 sm:$0xff]   ;;  %v1927_v59 = vld [vmem:[%s2680_s6 + $0x64] ss:$8 sps:$4 sm:$0xff]  }
  0x15   :  { %v1897_v61 = vld [vmem:[%s2677_s2 + $0x58] sm:$0xff]   ;;  %v1925_v62 = vld [vmem:[%s2680_s6 + $0x60] ss:$8 sps:$4 sm:$0xff]   ;;  %v1933_v2 = vld [vmem:[%s2680_s6 + $0x84] ss:$8 sps:$4 sm:$0xff]  }
  0x16   :  { %v1930_v63 = vld [vmem:[%s2680_s6 + $0x74] ss:$8 sps:$4 sm:$0xff]   ;;  %v1928_v0 = vld [vmem:[%s2680_s6 + $0x70] ss:$8 sps:$4 sm:$0xff]   ;;  %v1884_v3 = vld [vmem:[%s2679_s1 + $0x20] sm:$0xff]  }
  0x17   :  { %325 = vmatpush1.bf16.msra.mxu0 %v1844_v12  ;;  %1725 = vmatpush1.bf16.msra.mxu1 %v1844_v12  ;;  %v1899_v4 = vld [vmem:[%s2677_s2 + $0x60] sm:$0xff]   ;;  %v1936_v6 = vld [vmem:[%s2680_s6 + $0x94] ss:$8 sps:$4 sm:$0xff]   ;;  %v1934_v7 = vld [vmem:[%s2680_s6 + $0x90] ss:$8 sps:$4 sm:$0xff]  }
  0x18   :  { %326 = vmatprep.subr.bf16.mxu0 %v1845_v13  ;;  %1718 = vmatprep.subr.bf16.mxu1 %v1845_v13  ;;  %v1931_v5 = vld [vmem:[%s2680_s6 + $0x80] ss:$8 sps:$4 sm:$0xff]   ;;  %v1939_v8 = vld [vmem:[%s2680_s6 + $0xa4] ss:$8 sps:$4 sm:$0xff]   ;;  %v1942_v12 = vld [vmem:[%s2680_s6 + $0xb4] ss:$8 sps:$4 sm:$0xff]  }
  0x19   :  { %v1886_v9 = vld [vmem:[%s2679_s1 + $0x28] sm:$0xff]   ;;  %v1940_v13 = vld [vmem:[%s2680_s6 + $0xb0] ss:$8 sps:$4 sm:$0xff]  }
  0x1a   :  { %v1901_v10 = vld [vmem:[%s2677_s2 + $0x68] sm:$0xff]  }
  0x1b   :  { %327 = vmatpush1.bf16.msra.mxu0 %v1847_v14  ;;  %1726 = vmatpush1.bf16.msra.mxu1 %v1847_v14  ;;  %v1937_v11 = vld [vmem:[%s2680_s6 + $0xa0] ss:$8 sps:$4 sm:$0xff]   ;;  %v1945_v14 = vld [vmem:[%s2680_s6 + $0xc4] ss:$8 sps:$4 sm:$0xff]  }
  0x1c   :  { %328 = vmatprep.subr.bf16.mxu0 %v1848_v15  ;;  %1719 = vmatprep.subr.bf16.mxu1 %v1848_v15  ;;  %v1888_v15 = vld [vmem:[%s2679_s1 + $0x30] sm:$0xff]  }
  0x1f   :  { %329 = vmatpush1.bf16.msra.mxu0 %v1850_v16  ;;  %1727 = vmatpush1.bf16.msra.mxu1 %v1850_v16  ;;  %v1903_v16 = vld [vmem:[%s2677_s2 + $0x70] sm:$0xff]  }
  0x20   :  { %683 = vmatprep.subr.bf16.mxu0 %v1854_v17  ;;  %1728 = vmatprep.subr.bf16.mxu1 %v1909_v41  ;;  %v1943_v17 = vld [vmem:[%s2680_s6 + $0xc0] ss:$8 sps:$4 sm:$0xff]  }
  0x22   :  { %347 = vmatmul.mubr.bf16.vlgmr.msra.gmra.mrb[0].mxu0 %v1851_v18  ;;  %387 = vmatmul.mubr.bf16.vlgmr.msra.gmra.mrb[0].mxu1 %v1883_v19  ;;  %v1948_v18 = vld [vmem:[%s2680_s6 + $0xd4] ss:$8 sps:$4 sm:$0xff]   ;;  %v1946_v19 = vld [vmem:[%s2680_s6 + $0xd0] ss:$8 sps:$4 sm:$0xff]  }
  0x23   :  { %684 = vmatpush1.bf16.msra.mxu0 %v1852_v20  ;;  %356 = vmatprep.mubr.bf16.mxu0 %v1955_v1  ;;  %v1890_v20 = vld [vmem:[%s2679_s1 + $0x38] sm:$0xff]  }
  0x24   :  { %685 = vmatprep.subr.bf16.mxu0 %v1857_v21  ;;  %396 = vmatprep.mubr.bf16.mxu1 %v1955_v1  ;;  %v1905_v21 = vld [vmem:[%s2677_s2 + $0x78] sm:$0xff]  }
  0x25   :  { %1744 = vmatpush1.bf16.msra.mxu1 %v1907_v43 }
  0x26   :  { %1729 = vmatprep.subr.bf16.mxu1 %v1912_v45 }
  0x27   :  { %686 = vmatpush1.bf16.msra.mxu0 %v1855_v22  ;;  %v1892_v22 = vld [vmem:[%s2679_s1 + $0x40] sm:$0xff]  }
  0x28   :  { %687 = vmatprep.subr.bf16.mxu0 %v1861_v23  ;;  %v1894_v23 = vld [vmem:[%s2679_s1 + $0x48] sm:$0xff]  }
  0x29   :  { %1745 = vmatpush1.bf16.msra.mxu1 %v1910_v46 }
  0x2a   :  { %357 = vmatmul.mubr.bf16.gmra.mrb[4].mxu0 %v1858_v24  ;;  %397 = vmatmul.mubr.bf16.gmra.mrb[4].mxu1 %v1885_v25  ;;  %v1896_v24 = vld [vmem:[%s2679_s1 + $0x50] sm:$0xff]   ;;  %v1898_v25 = vld [vmem:[%s2679_s1 + $0x58] sm:$0xff]  }
  0x2b   :  { %688 = vmatpush1.bf16.msra.mxu0 %v1859_v26  ;;  %366 = vmatprep.mubr.bf16.mxu0 %v1955_v1  ;;  %v1951_v26 = vld [vmem:[%s2680_s6 + $0xe4] ss:$8 sps:$4 sm:$0xff]  }
  0x2c   :  { %689 = vmatprep.subr.bf16.mxu0 %v1864_v27  ;;  %406 = vmatprep.mubr.bf16.mxu1 %v1955_v1  ;;  %v1949_v27 = vld [vmem:[%s2680_s6 + $0xe0] ss:$8 sps:$4 sm:$0xff]  }
  0x2d   :  { %1730 = vmatprep.subr.bf16.mxu1 %v1915_v47 }
  0x2e   :  { %1746 = vmatpush1.bf16.msra.mxu1 %v1913_v50 }
  0x2f   :  { %690 = vmatpush1.bf16.msra.mxu0 %v1862_v28  ;;  %1731 = vmatprep.subr.bf16.mxu1 %v1918_v51  ;;  %v1954_v28 = vld [vmem:[%s2680_s6 + $0xf4] ss:$8 sps:$4 sm:$0xff]  }
  0x30   :  { %691 = vmatprep.subr.bf16.mxu0 %v1868_v29  ;;  %v1952_v29 = vld [vmem:[%s2680_s6 + $0xf0] ss:$8 sps:$4 sm:$0xff]  }
  0x32   :  { %367 = vmatmul.mubr.bf16.gmra.mrb[8].mxu0 %v1865_v30  ;;  %407 = vmatmul.mubr.bf16.gmra.mrb[8].mxu1 %v1887_v31  ;;  %v1900_v30 = vld [vmem:[%s2679_s1 + $0x60] sm:$0xff]   ;;  %v1902_v31 = vld [vmem:[%s2679_s1 + $0x68] sm:$0xff]  }
  0x33   :  { %692 = vmatpush1.bf16.msra.mxu0 %v1866_v32  ;;  %376 = vmatprep.mubr.bf16.mxu0 %v1955_v1  ;;  %v1904_v32 = vld [vmem:[%s2679_s1 + $0x70] sm:$0xff]  }
  0x34   :  { %693 = vmatprep.subr.bf16.mxu0 %v1871_v33  ;;  %416 = vmatprep.mubr.bf16.mxu1 %v1955_v1  ;;  %v1906_v33 = vld [vmem:[%s2679_s1 + $0x78] sm:$0xff]  }
  0x35   :  { %1747 = vmatpush1.bf16.msra.mxu1 %v1916_v52 }
  0x36   :  { %1732 = vmatprep.subr.bf16.mxu1 %v1921_v53 }
  0x37   :  { %694 = vmatpush1.bf16.msra.mxu0 %v1869_v34 }
  0x38   :  { %695 = vmatprep.subr.bf16.mxu0 %v1875_v35 }
  0x39   :  { %1748 = vmatpush1.bf16.msra.mxu1 %v1919_v56 }
  0x3a   :  { %377 = vmatmul.mubr.bf16.gmra.mrb[12].mxu0 %v1872_v36  ;;  %417 = vmatmul.mubr.bf16.gmra.mrb[12].mxu1 %v1889_v37 }
  0x3b   :  { %696 = vmatpush1.bf16.msra.mxu0 %v1873_v38  ;;  %715 = vmatprep.mubr.bf16.mxu0 %v1955_v1 }
  0x3c   :  { %697 = vmatprep.subr.bf16.mxu0 %v1878_v39  ;;  %426 = vmatprep.mubr.bf16.mxu1 %v1955_v1 }
  0x3d   :  { %1733 = vmatprep.subr.bf16.mxu1 %v1924_v57 }
  0x3e   :  { %1749 = vmatpush1.bf16.msra.mxu1 %v1922_v58 }
  0x3f   :  { %698 = vmatpush1.bf16.msra.mxu0 %v1876_v40  ;;  %1734 = vmatprep.subr.bf16.mxu1 %v1927_v59 }
  0x40   :  { %1252 = vmatprep.subr.bf16.mxu0 %v1909_v41 }
  0x42   :  { %716 = vmatmul.mubr.bf16.vlgmr.msra.gmra.mrb[0].mxu0 %v1879_v42  ;;  %427 = vmatmul.mubr.bf16.gmra.mrb[16].mxu1 %v1891_v44  ;;  %v878_v42 = vlaneseq }
  0x43   :  { %725 = vmatprep.mubr.bf16.mxu0 %v1955_v1  ;;  %436 = vmatprep.mubr.bf16.mxu1 %v1955_v1 }
  0x44   :  { %1253 = vmatpush1.bf16.msra.mxu0 %v1907_v43  ;;  %1750 = vmatpush1.bf16.msra.mxu1 %v1925_v62 }
  0x45   :  { %1254 = vmatprep.subr.bf16.mxu0 %v1912_v45  ;;  %1735 = vmatprep.subr.bf16.mxu1 %v1930_v63 }
  0x48   :  { %1255 = vmatpush1.bf16.msra.mxu0 %v1910_v46  ;;  %1751 = vmatpush1.bf16.msra.mxu1 %v1928_v0  ;;  %v2346_v46 = vshrl.u32 %v878_v42, 7 }
  0x49   :  { %1256 = vmatprep.subr.bf16.mxu0 %v1915_v47  ;;  %1736 = vmatprep.subr.bf16.mxu1 %v1933_v2 }
  0x4a   :  { %726 = vmatmul.mubr.bf16.gmra.mrb[4].mxu0 %v1880_v48  ;;  %437 = vmatmul.mubr.bf16.gmra.mrb[20].mxu1 %v1893_v49  ;;  %v2351_v48 = vsub.s32 0, %v2346_v46 }
  0x4b   :  { %735 = vmatprep.mubr.bf16.mxu0 %v1955_v1  ;;  %446 = vmatprep.mubr.bf16.mxu1 %v1955_v1 }
  0x4c   :  { %1257 = vmatpush1.bf16.msra.mxu0 %v1913_v50  ;;  %1752 = vmatpush1.bf16.msra.mxu1 %v1931_v5  ;;  %v876_v50 = vld [vmem:[%s2681_s5] sm:$0x3] }
  0x4d   :  { %1258 = vmatprep.subr.bf16.mxu0 %v1918_v51  ;;  %1737 = vmatprep.subr.bf16.mxu1 %v1936_v6  ;;  %v2359_v51 = vsub.s32 1, %v2346_v46 }
  0x50   :  { %1259 = vmatpush1.bf16.msra.mxu0 %v1916_v52  ;;  %1753 = vmatpush1.bf16.msra.mxu1 %v1934_v7 }
  0x51   :  { %1260 = vmatprep.subr.bf16.mxu0 %v1921_v53  ;;  %1738 = vmatprep.subr.bf16.mxu1 %v1939_v8 }
  0x52   :  { %736 = vmatmul.mubr.bf16.gmra.mrb[8].mxu0 %v1881_v54  ;;  %447 = vmatmul.mubr.bf16.gmra.mrb[24].mxu1 %v1895_v55  ;;  %v2366_v54 = vrot.slane %v876_v50, %v2351_v48  ;;  %v2369_v55 = vrot.slane %v876_v50, %v2359_v51 }
  0x53   :  { %745 = vmatprep.mubr.bf16.mxu0 %v1955_v1  ;;  %456 = vmatprep.mubr.bf16.mxu1 %v1955_v1 }
  0x54   :  { %1261 = vmatpush1.bf16.msra.mxu0 %v1919_v56  ;;  %1754 = vmatpush1.bf16.msra.mxu1 %v1937_v11 }
  0x55   :  { %1262 = vmatprep.subr.bf16.mxu0 %v1924_v57  ;;  %1739 = vmatprep.subr.bf16.mxu1 %v1942_v12 }
  0x58   :  { %1263 = vmatpush1.bf16.msra.mxu0 %v1922_v58  ;;  %1755 = vmatpush1.bf16.msra.mxu1 %v1940_v13 }
  0x59   :  { %1264 = vmatprep.subr.bf16.mxu0 %v1927_v59  ;;  %1740 = vmatprep.subr.bf16.mxu1 %v1945_v14 }
  0x5a   :  { %746 = vmatmul.mubr.bf16.gmra.mrb[12].mxu0 %v1882_v60  ;;  %457 = vmatmul.mubr.bf16.gmra.mrb[28].mxu1 %v1897_v61 }
  0x5b   :  { %755 = vmatprep.mubr.bf16.mxu0 %v1955_v1  ;;  %466 = vmatprep.mubr.bf16.mxu1 %v1955_v1 }
  0x5c   :  { %1265 = vmatpush1.bf16.msra.mxu0 %v1925_v62  ;;  %1756 = vmatpush1.bf16.msra.mxu1 %v1943_v17 }
  0x5d   :  { %1266 = vmatprep.subr.bf16.mxu0 %v1930_v63  ;;  %1741 = vmatprep.subr.bf16.mxu1 %v1948_v18 }
  0x60   :  { %1267 = vmatpush1.bf16.msra.mxu0 %v1928_v0  ;;  %1757 = vmatpush1.bf16.msra.mxu1 %v1946_v19 }
  0x61   :  { %1268 = vmatprep.subr.bf16.mxu0 %v1933_v2  ;;  %1742 = vmatprep.subr.bf16.mxu1 %v1951_v26 }
  0x62   :  { %756 = vmatmul.mubr.bf16.gmra.mrb[16].mxu0 %v1884_v3  ;;  %467 = vmatmul.mubr.bf16.gmra.mrb[32].mxu1 %v1899_v4 }
  0x63   :  { %765 = vmatprep.mubr.bf16.mxu0 %v1955_v1  ;;  %476 = vmatprep.mubr.bf16.mxu1 %v1955_v1 }
  0x64   :  { %1269 = vmatpush1.bf16.msra.mxu0 %v1931_v5  ;;  %1758 = vmatpush1.bf16.msra.mxu1 %v1949_v27 }
  0x65   :  { %1270 = vmatprep.subr.bf16.mxu0 %v1936_v6  ;;  %1743 = vmatprep.subr.bf16.mxu1 %v1954_v28 }
  0x68   :  { %1271 = vmatpush1.bf16.msra.mxu0 %v1934_v7  ;;  %1759 = vmatpush1.bf16.msra.mxu1 %v1952_v29 }
  0x69   :  { %1272 = vmatprep.subr.bf16.mxu0 %v1939_v8 }
  0x6a   :  { %766 = vmatmul.mubr.bf16.gmra.mrb[20].mxu0 %v1886_v9  ;;  %477 = vmatmul.mubr.bf16.gmra.mrb[36].mxu1 %v1901_v10 }
  0x6b   :  { %775 = vmatprep.mubr.bf16.mxu0 %v1955_v1  ;;  %486 = vmatprep.mubr.bf16.mxu1 %v1955_v1 }
  0x6c   :  { %1273 = vmatpush1.bf16.msra.mxu0 %v1937_v11 }
  0x6d   :  { %1274 = vmatprep.subr.bf16.mxu0 %v1942_v12 }
  0x70   :  { %1275 = vmatpush1.bf16.msra.mxu0 %v1940_v13 }
  0x71   :  { %1276 = vmatprep.subr.bf16.mxu0 %v1945_v14 }
  0x72   :  { %776 = vmatmul.mubr.bf16.gmra.mrb[24].mxu0 %v1888_v15  ;;  %487 = vmatmul.mubr.bf16.gmra.mrb[40].mxu1 %v1903_v16 }
  0x73   :  { %785 = vmatprep.mubr.bf16.mxu0 %v1955_v1  ;;  %496 = vmatprep.mubr.bf16.mxu1 %v1955_v1 }
  0x74   :  { %1277 = vmatpush1.bf16.msra.mxu0 %v1943_v17 }
  0x75   :  { %1278 = vmatprep.subr.bf16.mxu0 %v1948_v18 }
  0x78   :  { %1279 = vmatpush1.bf16.msra.mxu0 %v1946_v19 }
  0x79   :  { %1280 = vmatprep.subr.bf16.mxu0 %v1951_v26 }
  0x7a   :  { %786 = vmatmul.mubr.bf16.gmra.mrb[28].mxu0 %v1890_v20  ;;  %497 = vmatmul.mubr.bf16.gmra.mrb[44].mxu1 %v1905_v21 }
  0x7b   :  { %795 = vmatprep.mubr.bf16.mxu0 %v1955_v1 }
  0x7c   :  { %1281 = vmatpush1.bf16.msra.mxu0 %v1949_v27 }
  0x7d   :  { %1282 = vmatprep.subr.bf16.mxu0 %v1954_v28 }
  0x80   :  { %1283 = vmatpush1.bf16.msra.mxu0 %v1952_v29 }
  0x82   :  { %796 = vmatmul.mubr.bf16.gmra.mrb[32].mxu0 %v1892_v22 }
  0x83   :  { %805 = vmatprep.mubr.bf16.mxu0 %v1955_v1 }
  0x8a   :  { %806 = vmatmul.mubr.bf16.gmra.mrb[36].mxu0 %v1894_v23 }
  0x8b   :  { %815 = vmatprep.mubr.bf16.mxu0 %v1955_v1 }
  0x92   :  { %816 = vmatmul.mubr.bf16.gmra.mrb[40].mxu0 %v1896_v24 }
  0x93   :  { %825 = vmatprep.mubr.bf16.mxu0 %v1955_v1 }
  0x9a   :  { %826 = vmatmul.mubr.bf16.gmra.mrb[44].mxu0 %v1898_v25 }
  0x9b   :  { %835 = vmatprep.mubr.bf16.mxu0 %v1955_v1 }
  0xa2   :  { %836 = vmatmul.mubr.bf16.gmra.mrb[48].mxu0 %v1900_v30 }
  0xa3   :  { %845 = vmatprep.mubr.bf16.mxu0 %v1955_v1 }
  0xaa   :  { %846 = vmatmul.mubr.bf16.gmra.mrb[52].mxu0 %v1902_v31 }
  0xab   :  { %855 = vmatprep.mubr.bf16.mxu0 %v1955_v1 }
  0xb2   :  { %856 = vmatmul.mubr.bf16.gmra.mrb[56].mxu0 %v1904_v32 }
  0xb3   :  { %865 = vmatprep.mubr.bf16.mxu0 %v1955_v1 }
  0xba   :  { %866 = vmatmul.mubr.bf16.gmra.mrb[60].mxu0 %v1906_v33 }
  0xf5   :  { %v2322_v34 = vpop.f32.mrb[0].mxu1 }
  0xf6   :  { %v2324_v35 = vpop.f32.mrb[1].mxu1 }
  0xf7   :  { %v2326_v36 = vpop.f32.mrb[2].mxu1 }
  0xf8   :  { %v2328_v37 = vpop.f32.mrb[3].mxu1 }
  0xfd   :  { %v2330_v38 = vpop.f32.mrb[4].mxu1 }
  0xfe   :  { %v2332_v39 = vpop.f32.mrb[5].mxu1 }
  0xff   :  { %v2334_v40 = vpop.f32.mrb[6].mxu1 }
 0x100   :  { %v2336_v1 = vpop.f32.mrb[7].mxu1 }
 0x105   :  { %v2338_v41 = vpop.f32.mrb[8].mxu1 }
 0x106   :  { %v2340_v43 = vpop.f32.mrb[9].mxu1 }
 0x107   :  { %v2342_v44 = vpop.f32.mrb[10].mxu1 }
 0x108   :  { %v2344_v45 = vpop.f32.mrb[11].mxu1 }
 0x10d   :  { %v2348_v47 = vpop.f32.mrb[12].mxu1 }
 0x10e   :  { %v2353_v49 = vpop.f32.mrb[13].mxu1 }
 0x10f   :  { %v2361_v52 = vpop.f32.mrb[14].mxu1 }
 0x110   :  { %v2363_v53 = vpop.f32.mrb[15].mxu1 }
 0x115   :  { %v717_v56 = vpop.f32.mrb[0].mxu0  ;;  %v2371_v57 = vpop.f32.mrb[16].mxu1 }
 0x116   :  { %v888_v58 = vadd.f32 %v2366_v54, %v717_v56  ;;  %v719_v59 = vpop.f32.mrb[1].mxu0  ;;  %v2374_v60 = vpop.f32.mrb[17].mxu1 }
 0x117   :  { %v889_v61 = vadd.f32 %v2369_v55, %v719_v59  ;;  %v721_v62 = vpop.f32.mrb[2].mxu0  ;;  %v2377_v63 = vpop.f32.mrb[18].mxu1 }
 0x118   :  { %v890_v0 = vadd.f32 %v2366_v54, %v721_v62  ;;  %v723_v2 = vpop.f32.mrb[3].mxu0  ;;  %v2380_v3 = vpop.f32.mrb[19].mxu1  ;;  %v952_v5 = vmax.f32 %v888_v58, 0.0 }
 0x119   :  { %v891_v4 = vadd.f32 %v2369_v55, %v723_v2  ;;  %v953_v7 = vmax.f32 %v889_v61, 0.0 }
 0x11a   :  { %v954_v6 = vmax.f32 %v890_v0, 0.0 }
 0x11b   :  { %v955_v8 = vmax.f32 %v891_v4, 0.0 }
 0x11c   :  { %v1016_v9 = vpack.c.bf16 %v954_v6, %v952_v5 }
 0x11d   :  { %v1017_v10 = vpack.c.bf16 %v955_v8, %v953_v7  ;;  %v727_v11 = vpop.f32.mrb[4].mxu0  ;;  %v2383_v12 = vpop.f32.mrb[20].mxu1 }
 0x11e   :  { %v892_v13 = vadd.f32 %v2366_v54, %v727_v11  ;;  %v729_v14 = vpop.f32.mrb[5].mxu0  ;;  %v2386_v15 = vpop.f32.mrb[21].mxu1 }
 0x11f   :  { %v893_v16 = vadd.f32 %v2369_v55, %v729_v14  ;;  %v731_v17 = vpop.f32.mrb[6].mxu0  ;;  %1284 = vmatprep.mubr.bf16.mxu0 %v1017_v10  ;;  %v2389_v18 = vpop.f32.mrb[22].mxu1 }
 0x120   :  { %v894_v19 = vadd.f32 %v2366_v54, %v731_v17  ;;  %v733_v20 = vpop.f32.mrb[7].mxu0  ;;  %1285 = vmatmul.mubr.bf16.vlgmr.msra.gmra.mrb[64].mxu0 %v1016_v9  ;;  %v2392_v21 = vpop.f32.mrb[23].mxu1  ;;  %v956_v23 = vmax.f32 %v892_v13, 0.0 }
 0x121   :  { %v895_v22 = vadd.f32 %v2369_v55, %v733_v20  ;;  %v957_v25 = vmax.f32 %v893_v16, 0.0 }
 0x122   :  { %v958_v24 = vmax.f32 %v894_v19, 0.0 }
 0x123   :  { %v959_v26 = vmax.f32 %v895_v22, 0.0 }
 0x124   :  { %v1018_v27 = vpack.c.bf16 %v958_v24, %v956_v23 }
 0x125   :  { %v1019_v28 = vpack.c.bf16 %v959_v26, %v957_v25  ;;  %v737_v29 = vpop.f32.mrb[8].mxu0  ;;  %v2395_v30 = vpop.f32.mrb[24].mxu1 }
 0x126   :  { %v896_v31 = vadd.f32 %v2366_v54, %v737_v29  ;;  %v739_v32 = vpop.f32.mrb[9].mxu0  ;;  %v2398_v33 = vpop.f32.mrb[25].mxu1 }
 0x127   :  { %v897_v42 = vadd.f32 %v2369_v55, %v739_v32  ;;  %v741_v50 = vpop.f32.mrb[10].mxu0  ;;  %1294 = vmatprep.mubr.bf16.mxu0 %v1019_v28  ;;  %v2401_v56 = vpop.f32.mrb[26].mxu1 }
 0x128   :  { %v898_v58 = vadd.f32 %v2366_v54, %v741_v50  ;;  %v743_v59 = vpop.f32.mrb[11].mxu0  ;;  %1295 = vmatmul.mubr.bf16.gmra.mrb[68].mxu0 %v1018_v27  ;;  %v2404_v61 = vpop.f32.mrb[27].mxu1  ;;  %v960_v0 = vmax.f32 %v896_v31, 0.0 }
 0x129   :  { %v899_v62 = vadd.f32 %v2369_v55, %v743_v59  ;;  %v961_v4 = vmax.f32 %v897_v42, 0.0 }
 0x12a   :  { %v962_v2 = vmax.f32 %v898_v58, 0.0 }
 0x12b   :  { %v963_v5 = vmax.f32 %v899_v62, 0.0 }
 0x12c   :  { %v1020_v6 = vpack.c.bf16 %v962_v2, %v960_v0 }
 0x12d   :  { %v1021_v7 = vpack.c.bf16 %v963_v5, %v961_v4  ;;  %v747_v8 = vpop.f32.mrb[12].mxu0  ;;  %v2407_v9 = vpop.f32.mrb[28].mxu1 }
 0x12e   :  { %v900_v10 = vadd.f32 %v2366_v54, %v747_v8  ;;  %v749_v11 = vpop.f32.mrb[13].mxu0  ;;  %v2410_v13 = vpop.f32.mrb[29].mxu1 }
 0x12f   :  { %v901_v14 = vadd.f32 %v2369_v55, %v749_v11  ;;  %v751_v16 = vpop.f32.mrb[14].mxu0  ;;  %1304 = vmatprep.mubr.bf16.mxu0 %v1021_v7  ;;  %v2413_v17 = vpop.f32.mrb[30].mxu1 }
 0x130   :  { %v902_v19 = vadd.f32 %v2366_v54, %v751_v16  ;;  %v753_v20 = vpop.f32.mrb[15].mxu0  ;;  %1305 = vmatmul.mubr.bf16.gmra.mrb[72].mxu0 %v1020_v6  ;;  %v2416_v22 = vpop.f32.mrb[31].mxu1  ;;  %v964_v24 = vmax.f32 %v900_v10, 0.0 }
 0x131   :  { %v903_v23 = vadd.f32 %v2369_v55, %v753_v20  ;;  %v965_v26 = vmax.f32 %v901_v14, 0.0 }
 0x132   :  { %v966_v25 = vmax.f32 %v902_v19, 0.0 }
 0x133   :  { %v967_v27 = vmax.f32 %v903_v23, 0.0 }
 0x134   :  { %v1022_v28 = vpack.c.bf16 %v966_v25, %v964_v24 }
 0x135   :  { %v1023_v29 = vpack.c.bf16 %v967_v27, %v965_v26  ;;  %v757_v31 = vpop.f32.mrb[16].mxu0  ;;  %v2419_v32 = vpop.f32.mrb[32].mxu1 }
 0x136   :  { %v758_v42 = vadd.f32 %v757_v31, %v2322_v34  ;;  %v759_v50 = vpop.f32.mrb[17].mxu0  ;;  %v2422_v58 = vpop.f32.mrb[33].mxu1 }
 0x137   :  { %v760_v59 = vadd.f32 %v759_v50, %v2324_v35  ;;  %v761_v62 = vpop.f32.mrb[18].mxu0  ;;  %1314 = vmatprep.mubr.bf16.mxu0 %v1023_v29  ;;  %v2425_v0 = vpop.f32.mrb[34].mxu1 }
 0x138   :  { %v904_v2 = vadd.f32 %v2366_v54, %v758_v42  ;;  %v762_v4 = vadd.f32 %v761_v62, %v2326_v36  ;;  %v763_v5 = vpop.f32.mrb[19].mxu0  ;;  %1315 = vmatmul.mubr.bf16.gmra.mrb[76].mxu0 %v1022_v28  ;;  %v2429_v6 = vpop.f32.mrb[35].mxu1 }
 0x139   :  { %v905_v7 = vadd.f32 %v2369_v55, %v760_v59  ;;  %v764_v34 = vadd.f32 %v763_v5, %v2328_v37 }
 0x13a   :  { %v906_v8 = vadd.f32 %v2366_v54, %v762_v4  ;;  %v968_v10 = vmax.f32 %v904_v2, 0.0 }
 0x13b   :  { %v907_v35 = vadd.f32 %v2369_v55, %v764_v34  ;;  %v969_v14 = vmax.f32 %v905_v7, 0.0 }
 0x13c   :  { %v970_v11 = vmax.f32 %v906_v8, 0.0 }
 0x13d   :  { %v971_v16 = vmax.f32 %v907_v35, 0.0  ;;  %v767_v19 = vpop.f32.mrb[20].mxu0  ;;  %v2435_v20 = vpop.f32.mrb[36].mxu1 }
 0x13e   :  { %v768_v36 = vadd.f32 %v767_v19, %v2330_v38  ;;  %v769_v23 = vpop.f32.mrb[21].mxu0  ;;  %v1024_v24 = vpack.c.bf16 %v970_v11, %v968_v10  ;;  %v2438_v25 = vpop.f32.mrb[37].mxu1 }
 0x13f   :  { %v770_v26 = vadd.f32 %v769_v23, %v2332_v39  ;;  %v771_v37 = vpop.f32.mrb[22].mxu0  ;;  %v1025_v27 = vpack.c.bf16 %v971_v16, %v969_v14  ;;  %v2441_v28 = vpop.f32.mrb[38].mxu1 }
 0x140   :  { %v908_v29 = vadd.f32 %v2366_v54, %v768_v36  ;;  %v772_v31 = vadd.f32 %v771_v37, %v2334_v40  ;;  %v773_v42 = vpop.f32.mrb[23].mxu0  ;;  %v2445_v50 = vpop.f32.mrb[39].mxu1 }
 0x141   :  { %v909_v59 = vadd.f32 %v2369_v55, %v770_v26  ;;  %v774_v38 = vadd.f32 %v773_v42, %v2336_v1  ;;  %1324 = vmatprep.mubr.bf16.mxu0 %v1025_v27 }
 0x142   :  { %v910_v62 = vadd.f32 %v2366_v54, %v772_v31  ;;  %1325 = vmatmul.mubr.bf16.gmra.mrb[80].mxu0 %v1024_v24  ;;  %v972_v2 = vmax.f32 %v908_v29, 0.0 }
 0x143   :  { %v911_v39 = vadd.f32 %v2369_v55, %v774_v38  ;;  %v973_v5 = vmax.f32 %v909_v59, 0.0 }
 0x144   :  { %v974_v4 = vmax.f32 %v910_v62, 0.0 }
 0x145   :  { %v975_v7 = vmax.f32 %v911_v39, 0.0  ;;  %v777_v34 = vpop.f32.mrb[24].mxu0  ;;  %v2451_v8 = vpop.f32.mrb[40].mxu1 }
 0x146   :  { %v1026_v40 = vpack.c.bf16 %v974_v4, %v972_v2  ;;  %v778_v35 = vadd.f32 %v777_v34, %v2338_v41  ;;  %v779_v10 = vpop.f32.mrb[25].mxu0  ;;  %v2454_v11 = vpop.f32.mrb[41].mxu1 }
 0x147   :  { %v780_v1 = vadd.f32 %v779_v10, %v2340_v43  ;;  %v781_v14 = vpop.f32.mrb[26].mxu0  ;;  %v1027_v16 = vpack.c.bf16 %v975_v7, %v973_v5  ;;  %v2457_v19 = vpop.f32.mrb[42].mxu1 }
 0x148   :  { %v912_v36 = vadd.f32 %v2366_v54, %v778_v35  ;;  %v782_v23 = vadd.f32 %v781_v14, %v2342_v44  ;;  %v783_v24 = vpop.f32.mrb[27].mxu0  ;;  %v2461_v26 = vpop.f32.mrb[43].mxu1 }
 0x149   :  { %v913_v37 = vadd.f32 %v2369_v55, %v780_v1  ;;  %v784_v41 = vadd.f32 %v783_v24, %v2344_v45  ;;  %1334 = vmatprep.mubr.bf16.mxu1 %v1027_v16 }
 0x14a   :  { %v914_v27 = vadd.f32 %v2366_v54, %v782_v23  ;;  %1335 = vmatmul.mubr.bf16.vlgmr.msra.gmra.mrb[48].mxu1 %v1026_v40  ;;  %v976_v29 = vmax.f32 %v912_v36, 0.0 }
 0x14b   :  { %v915_v43 = vadd.f32 %v2369_v55, %v784_v41  ;;  %v977_v42 = vmax.f32 %v913_v37, 0.0 }
 0x14c   :  { %v978_v31 = vmax.f32 %v914_v27, 0.0 }
 0x14d   :  { %v979_v59 = vmax.f32 %v915_v43, 0.0  ;;  %v787_v38 = vpop.f32.mrb[28].mxu0  ;;  %v2467_v62 = vpop.f32.mrb[44].mxu1 }
 0x14e   :  { %v788_v44 = vadd.f32 %v787_v38, %v2348_v47  ;;  %v789_v39 = vpop.f32.mrb[29].mxu0  ;;  %v1028_v2 = vpack.c.bf16 %v978_v31, %v976_v29  ;;  %v2470_v4 = vpop.f32.mrb[45].mxu1 }
 0x14f   :  { %v790_v45 = vadd.f32 %v789_v39, %v2353_v49  ;;  %v791_v5 = vpop.f32.mrb[30].mxu0  ;;  %v1029_v7 = vpack.c.bf16 %v979_v59, %v977_v42  ;;  %v2473_v34 = vpop.f32.mrb[46].mxu1 }
 0x150   :  { %v916_v40 = vadd.f32 %v2366_v54, %v788_v44  ;;  %v792_v35 = vadd.f32 %v791_v5, %v2361_v52  ;;  %v793_v10 = vpop.f32.mrb[31].mxu0  ;;  %v2477_v1 = vpop.f32.mrb[47].mxu1 }
 0x151   :  { %v917_v14 = vadd.f32 %v2369_v55, %v790_v45  ;;  %v794_v47 = vadd.f32 %v793_v10, %v2363_v53  ;;  %1344 = vmatprep.mubr.bf16.mxu1 %v1029_v7 }
 0x152   :  { %v918_v16 = vadd.f32 %v2366_v54, %v792_v35  ;;  %1345 = vmatmul.mubr.bf16.gmra.mrb[52].mxu1 %v1028_v2  ;;  %v980_v36 = vmax.f32 %v916_v40, 0.0 }
 0x153   :  { %v919_v49 = vadd.f32 %v2369_v55, %v794_v47  ;;  %v981_v24 = vmax.f32 %v917_v14, 0.0 }
 0x154   :  { %v982_v23 = vmax.f32 %v918_v16, 0.0 }
 0x155   :  { %v983_v37 = vmax.f32 %v919_v49, 0.0  ;;  %v797_v41 = vpop.f32.mrb[32].mxu0 }
 0x156   :  { %v798_v52 = vadd.f32 %v797_v41, %v2371_v57  ;;  %v799_v27 = vpop.f32.mrb[33].mxu0  ;;  %v1030_v43 = vpack.c.bf16 %v982_v23, %v980_v36 }
 0x157   :  { %v800_v29 = vadd.f32 %v799_v27, %v2374_v60  ;;  %v801_v31 = vpop.f32.mrb[34].mxu0  ;;  %v1031_v42 = vpack.c.bf16 %v983_v37, %v981_v24 }
 0x158   :  { %v920_v53 = vadd.f32 %v2366_v54, %v798_v52  ;;  %v802_v59 = vadd.f32 %v801_v31, %v2377_v63  ;;  %v803_v38 = vpop.f32.mrb[35].mxu0 }
 0x159   :  { %v921_v44 = vadd.f32 %v2369_v55, %v800_v29  ;;  %v804_v39 = vadd.f32 %v803_v38, %v2380_v3  ;;  %1354 = vmatprep.mubr.bf16.mxu1 %v1031_v42 }
 0x15a   :  { %v922_v2 = vadd.f32 %v2366_v54, %v802_v59  ;;  %1355 = vmatmul.mubr.bf16.gmra.mrb[56].mxu1 %v1030_v43  ;;  %v984_v45 = vmax.f32 %v920_v53, 0.0 }
 0x15b   :  { %v923_v57 = vadd.f32 %v2369_v55, %v804_v39  ;;  %v985_v60 = vmax.f32 %v921_v44, 0.0 }
 0x15c   :  { %v986_v5 = vmax.f32 %v922_v2, 0.0 }
 0x15d   :  { %v987_v7 = vmax.f32 %v923_v57, 0.0  ;;  %v807_v40 = vpop.f32.mrb[36].mxu0 }
 0x15e   :  { %v808_v35 = vadd.f32 %v807_v40, %v2383_v12  ;;  %v809_v10 = vpop.f32.mrb[37].mxu0  ;;  %v1032_v63 = vpack.c.bf16 %v986_v5, %v984_v45 }
 0x15f   :  { %v810_v14 = vadd.f32 %v809_v10, %v2386_v15  ;;  %v811_v47 = vpop.f32.mrb[38].mxu0  ;;  %v1033_v16 = vpack.c.bf16 %v987_v7, %v985_v60 }
 0x160   :  { %v924_v3 = vadd.f32 %v2366_v54, %v808_v35  ;;  %v812_v49 = vadd.f32 %v811_v47, %v2389_v18  ;;  %v813_v36 = vpop.f32.mrb[39].mxu0 }
 0x161   :  { %v925_v23 = vadd.f32 %v2369_v55, %v810_v14  ;;  %v814_v24 = vadd.f32 %v813_v36, %v2392_v21  ;;  %1364 = vmatprep.mubr.bf16.mxu1 %v1033_v16 }
 0x162   :  { %v926_v37 = vadd.f32 %v2366_v54, %v812_v49  ;;  %1365 = vmatmul.mubr.bf16.gmra.mrb[60].mxu1 %v1032_v63  ;;  %v988_v41 = vmax.f32 %v924_v3, 0.0 }
 0x163   :  { %v927_v12 = vadd.f32 %v2369_v55, %v814_v24  ;;  %v989_v15 = vmax.f32 %v925_v23, 0.0 }
 0x164   :  { %v990_v52 = vmax.f32 %v926_v37, 0.0 }
 0x165   :  { %v991_v27 = vmax.f32 %v927_v12, 0.0  ;;  %v817_v43 = vpop.f32.mrb[40].mxu0 }
 0x166   :  { %v818_v29 = vadd.f32 %v817_v43, %v2395_v30  ;;  %v819_v31 = vpop.f32.mrb[41].mxu0  ;;  %v1034_v18 = vpack.c.bf16 %v990_v52, %v988_v41 }
 0x167   :  { %v820_v42 = vadd.f32 %v819_v31, %v2398_v33  ;;  %v821_v53 = vpop.f32.mrb[42].mxu0  ;;  %v1035_v59 = vpack.c.bf16 %v991_v27, %v989_v15 }
 0x168   :  { %v928_v21 = vadd.f32 %v2366_v54, %v818_v29  ;;  %v822_v38 = vadd.f32 %v821_v53, %v2401_v56  ;;  %v823_v44 = vpop.f32.mrb[43].mxu0 }
 0x169   :  { %v929_v39 = vadd.f32 %v2369_v55, %v820_v42  ;;  %v824_v2 = vadd.f32 %v823_v44, %v2404_v61  ;;  %1374 = vmatprep.mubr.bf16.mxu1 %v1035_v59 }
 0x16a   :  { %v930_v57 = vadd.f32 %v2366_v54, %v822_v38  ;;  %1375 = vmatmul.mubr.bf16.gmra.mrb[64].mxu1 %v1034_v18  ;;  %v992_v45 = vmax.f32 %v928_v21, 0.0 }
 0x16b   :  { %v931_v30 = vadd.f32 %v2369_v55, %v824_v2  ;;  %v993_v33 = vmax.f32 %v929_v39, 0.0 }
 0x16c   :  { %v994_v5 = vmax.f32 %v930_v57, 0.0 }
 0x16d   :  { %v995_v60 = vmax.f32 %v931_v30, 0.0  ;;  %v827_v7 = vpop.f32.mrb[44].mxu0 }
 0x16e   :  { %v828_v40 = vadd.f32 %v827_v7, %v2407_v9  ;;  %v829_v35 = vpop.f32.mrb[45].mxu0  ;;  %v1036_v56 = vpack.c.bf16 %v994_v5, %v992_v45 }
 0x16f   :  { %v830_v10 = vadd.f32 %v829_v35, %v2410_v13  ;;  %v831_v63 = vpop.f32.mrb[46].mxu0  ;;  %v1037_v14 = vpack.c.bf16 %v995_v60, %v993_v33 }
 0x170   :  { %v932_v61 = vadd.f32 %v2366_v54, %v828_v40  ;;  %v832_v47 = vadd.f32 %v831_v63, %v2413_v17  ;;  %v833_v16 = vpop.f32.mrb[47].mxu0 }
 0x171   :  { %v933_v3 = vadd.f32 %v2369_v55, %v830_v10  ;;  %v834_v49 = vadd.f32 %v833_v16, %v2416_v22  ;;  %1384 = vmatprep.mubr.bf16.mxu1 %v1037_v14 }
 0x172   :  { %v934_v36 = vadd.f32 %v2366_v54, %v832_v47  ;;  %1385 = vmatmul.mubr.bf16.gmra.mrb[68].mxu1 %v1036_v56  ;;  %v996_v23 = vmax.f32 %v932_v61, 0.0 }
 0x173   :  { %v935_v9 = vadd.f32 %v2369_v55, %v834_v49  ;;  %v997_v13 = vmax.f32 %v933_v3, 0.0 }
 0x174   :  { %v998_v24 = vmax.f32 %v934_v36, 0.0 }
 0x175   :  { %v999_v37 = vmax.f32 %v935_v9, 0.0  ;;  %v837_v12 = vpop.f32.mrb[48].mxu0 }
 0x176   :  { %v838_v41 = vadd.f32 %v837_v12, %v2419_v32  ;;  %v839_v52 = vpop.f32.mrb[49].mxu0  ;;  %v1038_v17 = vpack.c.bf16 %v998_v24, %v996_v23 }
 0x177   :  { %v840_v15 = vadd.f32 %v839_v52, %v2422_v58  ;;  %v841_v27 = vpop.f32.mrb[50].mxu0  ;;  %v1039_v43 = vpack.c.bf16 %v999_v37, %v997_v13 }
 0x178   :  { %v936_v22 = vadd.f32 %v2366_v54, %v838_v41  ;;  %v842_v29 = vadd.f32 %v841_v27, %v2425_v0  ;;  %v843_v31 = vpop.f32.mrb[51].mxu0 }
 0x179   :  { %v937_v18 = vadd.f32 %v2369_v55, %v840_v15  ;;  %v844_v42 = vadd.f32 %v843_v31, %v2429_v6  ;;  %1394 = vmatprep.mubr.bf16.mxu1 %v1039_v43 }
 0x17a   :  { %v938_v53 = vadd.f32 %v2366_v54, %v842_v29  ;;  %1395 = vmatmul.mubr.bf16.gmra.mrb[72].mxu1 %v1038_v17  ;;  %v1000_v59 = vmax.f32 %v936_v22, 0.0 }
 0x17b   :  { %v939_v32 = vadd.f32 %v2369_v55, %v844_v42  ;;  %v1001_v58 = vmax.f32 %v937_v18, 0.0 }
 0x17c   :  { %v1002_v21 = vmax.f32 %v938_v53, 0.0 }
 0x17d   :  { %v1003_v38 = vmax.f32 %v939_v32, 0.0  ;;  %v847_v44 = vpop.f32.mrb[52].mxu0 }
 0x17e   :  { %v848_v39 = vadd.f32 %v847_v44, %v2435_v20  ;;  %v849_v2 = vpop.f32.mrb[53].mxu0  ;;  %v1040_v0 = vpack.c.bf16 %v1002_v21, %v1000_v59 }
 0x17f   :  { %v850_v57 = vadd.f32 %v849_v2, %v2438_v25  ;;  %v851_v30 = vpop.f32.mrb[54].mxu0  ;;  %v1041_v45 = vpack.c.bf16 %v1003_v38, %v1001_v58 }
 0x180   :  { %v940_v6 = vadd.f32 %v2366_v54, %v848_v39  ;;  %v852_v5 = vadd.f32 %v851_v30, %v2441_v28  ;;  %v853_v33 = vpop.f32.mrb[55].mxu0  ;;  %v1447_v39 = vadd.s32 8, %v2346_v46 }
 0x181   :  { %v941_v60 = vadd.f32 %v2369_v55, %v850_v57  ;;  %v854_v7 = vadd.f32 %v853_v33, %v2445_v50  ;;  %1404 = vmatprep.mubr.bf16.mxu1 %v1041_v45 }
 0x182   :  { %v942_v40 = vadd.f32 %v2366_v54, %v852_v5  ;;  %1405 = vmatmul.mubr.bf16.gmra.mrb[76].mxu1 %v1040_v0  ;;  %v1004_v35 = vmax.f32 %v940_v6, 0.0 }
 0x183   :  { %v943_v20 = vadd.f32 %v2369_v55, %v854_v7  ;;  %v1005_v25 = vmax.f32 %v941_v60, 0.0 }
 0x184   :  { %v1006_v56 = vmax.f32 %v942_v40, 0.0 }
 0x185   :  { %v1007_v10 = vmax.f32 %v943_v20, 0.0  ;;  %v857_v63 = vpop.f32.mrb[56].mxu0 }
 0x186   :  { %v858_v14 = vadd.f32 %v857_v63, %v2451_v8  ;;  %v859_v61 = vpop.f32.mrb[57].mxu0  ;;  %v1042_v28 = vpack.c.bf16 %v1006_v56, %v1004_v35 }
 0x187   :  { %v860_v47 = vadd.f32 %v859_v61, %v2454_v11  ;;  %v861_v16 = vpop.f32.mrb[58].mxu0  ;;  %v1043_v3 = vpack.c.bf16 %v1007_v10, %v1005_v25 }
 0x188   :  { %v944_v50 = vadd.f32 %v2366_v54, %v858_v14  ;;  %v862_v49 = vadd.f32 %v861_v16, %v2457_v19  ;;  %v863_v36 = vpop.f32.mrb[59].mxu0 }
 0x189   :  { %v945_v9 = vadd.f32 %v2369_v55, %v860_v47  ;;  %v864_v23 = vadd.f32 %v863_v36, %v2461_v26  ;;  %1414 = vmatprep.mubr.bf16.mxu1 %v1043_v3 }
 0x18a   :  { %v946_v24 = vadd.f32 %v2366_v54, %v862_v49  ;;  %1415 = vmatmul.mubr.bf16.gmra.mrb[80].mxu1 %v1042_v28  ;;  %v1008_v13 = vmax.f32 %v944_v50, 0.0 }
 0x18b   :  { %v947_v8 = vadd.f32 %v2369_v55, %v864_v23  ;;  %v1009_v11 = vmax.f32 %v945_v9, 0.0 }
 0x18c   :  { %v1010_v37 = vmax.f32 %v946_v24, 0.0 }
 0x18d   :  { %v1011_v12 = vmax.f32 %v947_v8, 0.0  ;;  %v867_v41 = vpop.f32.mrb[60].mxu0 }
 0x18e   :  { %v868_v52 = vadd.f32 %v867_v41, %v2467_v62  ;;  %v869_v17 = vpop.f32.mrb[61].mxu0  ;;  %v1044_v19 = vpack.c.bf16 %v1010_v37, %v1008_v13 }
 0x18f   :  { %v870_v15 = vadd.f32 %v869_v17, %v2470_v4  ;;  %v871_v27 = vpop.f32.mrb[62].mxu0  ;;  %v1045_v43 = vpack.c.bf16 %v1011_v12, %v1009_v11 }
 0x190   :  { %v948_v26 = vadd.f32 %v2366_v54, %v868_v52  ;;  %v872_v22 = vadd.f32 %v871_v27, %v2473_v34  ;;  %v873_v29 = vpop.f32.mrb[63].mxu0  ;;  %v1080_v34 = vld [vmem:[%s2682_s7] sm:$0x3] }
 0x191   :  { %v949_v31 = vadd.f32 %v2369_v55, %v870_v15  ;;  %v874_v18 = vadd.f32 %v873_v29, %v2477_v1  ;;  %1424 = vmatprep.mubr.bf16.mxu1 %v1045_v43  ;;  %v2551_v1 = vrot.slane %v1080_v34, %v2351_v48 }
 0x192   :  { %v950_v42 = vadd.f32 %v2366_v54, %v872_v22  ;;  %1425 = vmatmul.mubr.bf16.gmra.mrb[84].mxu1 %v1044_v19  ;;  %v1012_v53 = vmax.f32 %v948_v26, 0.0  ;;  %v2554_v54 = vrot.slane %v1080_v34, %v2359_v51 }
 0x193   :  { %v951_v62 = vadd.f32 %v2369_v55, %v874_v18  ;;  %v1013_v4 = vmax.f32 %v949_v31, 0.0  ;;  %v1450_v55 = vld [vmem:[%s2683_s0] sm:$0x3] }
 0x194   :  { %v1014_v32 = vmax.f32 %v950_v42, 0.0  ;;  %v2561_v2 = vrot.slane %v1450_v55, %v2359_v51  ;;  %v2565_v30 = vrot.slane %v1450_v55, %v2351_v48  ;;  %v1956_v51 = vmov 1.0|1.0  }
 0x195   :  { %v1015_v59 = vmax.f32 %v951_v62, 0.0 }
 0x196   :  { %v1046_v21 = vpack.c.bf16 %v1014_v32, %v1012_v53  ;;  %vm1460_vm0 = vcmp.eq.s32.totalorder %v2346_v46, %v2561_v2  ;;  %vm1462_vm1 = vcmp.eq.s32.totalorder %v1447_v39, %v2561_v2  ;;  %vm1461_vm2 = vcmp.eq.s32.totalorder %v1447_v39, %v2565_v30 }
 0x197   :  { %v1047_v58 = vpack.c.bf16 %v1015_v59, %v1013_v4  ;;  %vm1704_vm3 = vmpackc.low %vm1462_vm1, %vm1460_vm0  ;;  %vm1459_vm4 = vcmp.eq.s32.totalorder %v2346_v46, %v2565_v30 }
 0x198   :  { %vm2577_vm5 = vmpackc.low %vm1461_vm2, %vm1459_vm4 }
 0x199   :  { %1434 = vmatprep.mubr.bf16.mxu1 %v1047_v58 }
 0x19a   :  { %1435 = vmatmul.mubr.bf16.gmra.mrb[88].mxu1 %v1046_v21 }
 0x19b   :  { %1705 = vmatprep.mubr.msk.bf16.mxu1 %vm1704_vm3, %v1956_v51 }
 0x1f3   :  { %v1286_v38 = vpop.f32.mrb[64].mxu0 }
 0x1f4   :  { %v1288_v44 = vpop.f32.mrb[65].mxu0  ;;  %v1287_v0 = vadd.f32 %v1286_v38, %v2551_v1 }
 0x1f5   :  { %v1290_v57 = vpop.f32.mrb[66].mxu0  ;;  %v1289_v5 = vadd.f32 %v1288_v44, %v2554_v54 }
 0x1f6   :  { %v1291_v45 = vadd.f32 %v1290_v57, %v2551_v1  ;;  %v1292_v6 = vpop.f32.mrb[67].mxu0 }
 0x1f7   :  { %v1293_v33 = vadd.f32 %v1292_v6, %v2554_v54 }
 0x1f8   :  { %v1495_v48 = vpack.c.bf16 %v1291_v45, %v1287_v0 }
 0x1f9   :  { %v1496_v7 = vpack.c.bf16 %v1293_v33, %v1289_v5 }
 0x1fb   :  { %v1296_v40 = vpop.f32.mrb[68].mxu0  ;;  %1527 = vmatprep.subr.bf16.mxu1 %v1496_v7 }
 0x1fc   :  { %v1298_v20 = vpop.f32.mrb[69].mxu0  ;;  %1528 = vmatpush1.bf16.msra.mxu1 %v1495_v48  ;;  %v1297_v56 = vadd.f32 %v1296_v40, %v2551_v1 }
 0x1fd   :  { %v1300_v35 = vpop.f32.mrb[70].mxu0  ;;  %v1299_v63 = vadd.f32 %v1298_v20, %v2554_v54 }
 0x1fe   :  { %v1301_v25 = vadd.f32 %v1300_v35, %v2551_v1  ;;  %v1302_v10 = vpop.f32.mrb[71].mxu0 }
 0x1ff   :  { %v1303_v14 = vadd.f32 %v1302_v10, %v2554_v54 }
 0x200   :  { %v1497_v61 = vpack.c.bf16 %v1301_v25, %v1297_v56 }
 0x201   :  { %v1498_v28 = vpack.c.bf16 %v1303_v14, %v1299_v63 }
 0x203   :  { %v1306_v47 = vpop.f32.mrb[72].mxu0  ;;  %1529 = vmatprep.subr.bf16.mxu1 %v1498_v28 }
 0x204   :  { %v1308_v16 = vpop.f32.mrb[73].mxu0  ;;  %1530 = vmatpush1.bf16.msra.mxu1 %v1497_v61  ;;  %v1307_v50 = vadd.f32 %v1306_v47, %v2551_v1 }
 0x205   :  { %v1310_v3 = vpop.f32.mrb[74].mxu0  ;;  %v1309_v9 = vadd.f32 %v1308_v16, %v2554_v54 }
 0x206   :  { %v1311_v49 = vadd.f32 %v1310_v3, %v2551_v1  ;;  %v1312_v36 = vpop.f32.mrb[75].mxu0 }
 0x207   :  { %v1313_v23 = vadd.f32 %v1312_v36, %v2554_v54 }
 0x208   :  { %v1499_v24 = vpack.c.bf16 %v1311_v49, %v1307_v50 }
 0x209   :  { %v1500_v8 = vpack.c.bf16 %v1313_v23, %v1309_v9 }
 0x20b   :  { %v1316_v13 = vpop.f32.mrb[76].mxu0  ;;  %1531 = vmatprep.subr.bf16.mxu1 %v1500_v8 }
 0x20c   :  { %v1318_v37 = vpop.f32.mrb[77].mxu0  ;;  %1532 = vmatpush1.bf16.msra.mxu1 %v1499_v24  ;;  %v1317_v12 = vadd.f32 %v1316_v13, %v2551_v1 }
 0x20d   :  { %v1320_v11 = vpop.f32.mrb[78].mxu0  ;;  %v1319_v17 = vadd.f32 %v1318_v37, %v2554_v54 }
 0x20e   :  { %v1321_v41 = vadd.f32 %v1320_v11, %v2551_v1  ;;  %v1322_v52 = vpop.f32.mrb[79].mxu0 }
 0x20f   :  { %v1323_v19 = vadd.f32 %v1322_v52, %v2554_v54 }
 0x210   :  { %v1501_v15 = vpack.c.bf16 %v1321_v41, %v1317_v12 }
 0x211   :  { %v1502_v27 = vpack.c.bf16 %v1323_v19, %v1319_v17 }
 0x213   :  { %1533 = vmatprep.subr.bf16.mxu1 %v1502_v27 }
 0x214   :  { %1534 = vmatpush1.bf16.msra.mxu1 %v1501_v15 }
 0x215   :  { %v1326_v43 = vpop.f32.mrb[80].mxu0 }
 0x216   :  { %v1328_v26 = vpop.f32.mrb[81].mxu0  ;;  %v1327_v29 = vadd.f32 %v1326_v43, %v2551_v1 }
 0x217   :  { %v1330_v22 = vpop.f32.mrb[82].mxu0  ;;  %v1329_v42 = vadd.f32 %v1328_v26, %v2554_v54 }
 0x218   :  { %v1331_v31 = vadd.f32 %v1330_v22, %v2551_v1  ;;  %v1332_v18 = vpop.f32.mrb[83].mxu0 }
 0x219   :  { %v1333_v62 = vadd.f32 %v1332_v18, %v2554_v54 }
 0x21a   :  { %v1503_v53 = vpack.c.bf16 %v1331_v31, %v1327_v29 }
 0x21b   :  { %v1504_v32 = vpack.c.bf16 %v1333_v62, %v1329_v42 }
 0x21d   :  { %v1336_v4 = vpop.f32.mrb[48].mxu1  ;;  %1535 = vmatprep.subr.bf16.mxu1 %v1504_v32 }
 0x21e   :  { %v1338_v59 = vpop.f32.mrb[49].mxu1  ;;  %1536 = vmatpush1.bf16.msra.mxu1 %v1503_v53  ;;  %v1337_v58 = vadd.f32 %v1336_v4, %v2551_v1 }
 0x21f   :  { %v1340_v21 = vpop.f32.mrb[50].mxu1  ;;  %v1339_v55 = vadd.f32 %v1338_v59, %v2554_v54 }
 0x220   :  { %v1341_v34 = vadd.f32 %v1340_v21, %v2551_v1  ;;  %v1342_v38 = vpop.f32.mrb[51].mxu1 }
 0x221   :  { %v1343_v44 = vadd.f32 %v1342_v38, %v2554_v54 }
 0x222   :  { %v1505_v39 = vpack.c.bf16 %v1341_v34, %v1337_v58 }
 0x223   :  { %v1506_v0 = vpack.c.bf16 %v1343_v44, %v1339_v55 }
 0x225   :  { %v1346_v57 = vpop.f32.mrb[52].mxu1  ;;  %1537 = vmatprep.subr.bf16.mxu1 %v1506_v0 }
 0x226   :  { %v1348_v45 = vpop.f32.mrb[53].mxu1  ;;  %1538 = vmatpush1.bf16.msra.mxu1 %v1505_v39  ;;  %v1347_v5 = vadd.f32 %v1346_v57, %v2551_v1 }
 0x227   :  { %v1350_v6 = vpop.f32.mrb[54].mxu1  ;;  %v1349_v7 = vadd.f32 %v1348_v45, %v2554_v54 }
 0x228   :  { %v1351_v33 = vadd.f32 %v1350_v6, %v2551_v1  ;;  %v1352_v48 = vpop.f32.mrb[55].mxu1 }
 0x229   :  { %v1353_v40 = vadd.f32 %v1352_v48, %v2554_v54 }
 0x22a   :  { %v1507_v20 = vpack.c.bf16 %v1351_v33, %v1347_v5 }
 0x22b   :  { %v1508_v35 = vpack.c.bf16 %v1353_v40, %v1349_v7 }
 0x22d   :  { %v1356_v56 = vpop.f32.mrb[56].mxu1  ;;  %1539 = vmatprep.subr.bf16.mxu1 %v1508_v35 }
 0x22e   :  { %v1358_v25 = vpop.f32.mrb[57].mxu1  ;;  %1540 = vmatpush1.bf16.msra.mxu1 %v1507_v20  ;;  %v1357_v63 = vadd.f32 %v1356_v56, %v2551_v1 }
 0x22f   :  { %v1360_v10 = vpop.f32.mrb[58].mxu1  ;;  %v1359_v28 = vadd.f32 %v1358_v25, %v2554_v54 }
 0x230   :  { %v1361_v14 = vadd.f32 %v1360_v10, %v2551_v1  ;;  %v1362_v61 = vpop.f32.mrb[59].mxu1 }
 0x231   :  { %v1363_v47 = vadd.f32 %v1362_v61, %v2554_v54 }
 0x232   :  { %v1509_v16 = vpack.c.bf16 %v1361_v14, %v1357_v63 }
 0x233   :  { %v1510_v3 = vpack.c.bf16 %v1363_v47, %v1359_v28 }
 0x235   :  { %v1366_v50 = vpop.f32.mrb[60].mxu1  ;;  %1541 = vmatprep.subr.bf16.mxu1 %v1510_v3 }
 0x236   :  { %v1368_v49 = vpop.f32.mrb[61].mxu1  ;;  %1542 = vmatpush1.bf16.msra.mxu1 %v1509_v16  ;;  %v1367_v9 = vadd.f32 %v1366_v50, %v2551_v1 }
 0x237   :  { %v1370_v36 = vpop.f32.mrb[62].mxu1  ;;  %v1369_v8 = vadd.f32 %v1368_v49, %v2554_v54 }
 0x238   :  { %v1371_v23 = vadd.f32 %v1370_v36, %v2551_v1  ;;  %v1372_v24 = vpop.f32.mrb[63].mxu1 }
 0x239   :  { %v1373_v13 = vadd.f32 %v1372_v24, %v2554_v54 }
 0x23a   :  { %v1511_v37 = vpack.c.bf16 %v1371_v23, %v1367_v9 }
 0x23b   :  { %v1512_v11 = vpack.c.bf16 %v1373_v13, %v1369_v8 }
 0x23d   :  { %v1376_v12 = vpop.f32.mrb[64].mxu1  ;;  %1543 = vmatprep.subr.bf16.mxu1 %v1512_v11 }
 0x23e   :  { %v1378_v41 = vpop.f32.mrb[65].mxu1  ;;  %1544 = vmatpush1.bf16.msra.mxu1 %v1511_v37  ;;  %v1377_v17 = vadd.f32 %v1376_v12, %v2551_v1 }
 0x23f   :  { %v1380_v52 = vpop.f32.mrb[66].mxu1  ;;  %v1379_v27 = vadd.f32 %v1378_v41, %v2554_v54 }
 0x240   :  { %v1381_v19 = vadd.f32 %v1380_v52, %v2551_v1  ;;  %v1382_v15 = vpop.f32.mrb[67].mxu1 }
 0x241   :  { %v1383_v43 = vadd.f32 %v1382_v15, %v2554_v54 }
 0x242   :  { %v1513_v26 = vpack.c.bf16 %v1381_v19, %v1377_v17 }
 0x243   :  { %v1514_v22 = vpack.c.bf16 %v1383_v43, %v1379_v27 }
 0x245   :  { %v1386_v29 = vpop.f32.mrb[68].mxu1  ;;  %1545 = vmatprep.subr.bf16.mxu1 %v1514_v22  ;;  %v1448_v22 = vadd.s32 16, %v2346_v46 }
 0x246   :  { %v1388_v31 = vpop.f32.mrb[69].mxu1  ;;  %1546 = vmatpush1.bf16.msra.mxu1 %v1513_v26  ;;  %v1387_v42 = vadd.f32 %v1386_v29, %v2551_v1  ;;  %v1449_v29 = vadd.s32 24, %v2346_v46 }
 0x247   :  { %v1390_v18 = vpop.f32.mrb[70].mxu1  ;;  %v1389_v32 = vadd.f32 %v1388_v31, %v2554_v54  ;;  %vm1464_vm6 = vcmp.eq.s32.totalorder %v1448_v22, %v2561_v2  ;;  %vm1463_vm9 = vcmp.eq.s32.totalorder %v1448_v22, %v2565_v30 }
 0x248   :  { %v1391_v62 = vadd.f32 %v1390_v18, %v2551_v1  ;;  %v1392_v53 = vpop.f32.mrb[71].mxu1  ;;  %vm1466_vm7 = vcmp.eq.s32.totalorder %v1449_v29, %v2561_v2  ;;  %vm1465_vm10 = vcmp.eq.s32.totalorder %v1449_v29, %v2565_v30 }
 0x249   :  { %v1393_v4 = vadd.f32 %v1392_v53, %v2554_v54  ;;  %vm1708_vm8 = vmpackc.low %vm1466_vm7, %vm1464_vm6 }
 0x24a   :  { %v1515_v59 = vpack.c.bf16 %v1391_v62, %v1387_v42  ;;  %vm1710_vm11 = vmpackc.low %vm1465_vm10, %vm1463_vm9 }
 0x24b   :  { %v1516_v21 = vpack.c.bf16 %v1393_v4, %v1389_v32 }
 0x24d   :  { %v1396_v58 = vpop.f32.mrb[72].mxu1  ;;  %1547 = vmatprep.subr.bf16.mxu1 %v1516_v21 }
 0x24e   :  { %v1398_v34 = vpop.f32.mrb[73].mxu1  ;;  %1548 = vmatpush1.bf16.msra.mxu1 %v1515_v59  ;;  %v1397_v55 = vadd.f32 %v1396_v58, %v2551_v1 }
 0x24f   :  { %v1400_v38 = vpop.f32.mrb[74].mxu1  ;;  %v1399_v0 = vadd.f32 %v1398_v34, %v2554_v54 }
 0x250   :  { %v1401_v44 = vadd.f32 %v1400_v38, %v2551_v1  ;;  %v1402_v39 = vpop.f32.mrb[75].mxu1 }
 0x251   :  { %v1403_v57 = vadd.f32 %v1402_v39, %v2554_v54 }
 0x252   :  { %v1517_v45 = vpack.c.bf16 %v1401_v44, %v1397_v55 }
 0x253   :  { %v1518_v6 = vpack.c.bf16 %v1403_v57, %v1399_v0 }
 0x255   :  { %v1406_v5 = vpop.f32.mrb[76].mxu1  ;;  %1549 = vmatprep.subr.bf16.mxu1 %v1518_v6 }
 0x256   :  { %v1408_v33 = vpop.f32.mrb[77].mxu1  ;;  %1550 = vmatpush1.bf16.msra.mxu1 %v1517_v45  ;;  %v1407_v7 = vadd.f32 %v1406_v5, %v2551_v1 }
 0x257   :  { %v1410_v48 = vpop.f32.mrb[78].mxu1  ;;  %v1409_v35 = vadd.f32 %v1408_v33, %v2554_v54 }
 0x258   :  { %v1411_v40 = vadd.f32 %v1410_v48, %v2551_v1  ;;  %v1412_v20 = vpop.f32.mrb[79].mxu1 }
 0x259   :  { %v1413_v56 = vadd.f32 %v1412_v20, %v2554_v54 }
 0x25a   :  { %v1519_v25 = vpack.c.bf16 %v1411_v40, %v1407_v7 }
 0x25b   :  { %v1520_v10 = vpack.c.bf16 %v1413_v56, %v1409_v35 }
 0x25d   :  { %v1416_v63 = vpop.f32.mrb[80].mxu1  ;;  %1551 = vmatprep.subr.bf16.mxu1 %v1520_v10 }
 0x25e   :  { %v1418_v14 = vpop.f32.mrb[81].mxu1  ;;  %1552 = vmatpush1.bf16.msra.mxu1 %v1519_v25  ;;  %v1417_v28 = vadd.f32 %v1416_v63, %v2551_v1 }
 0x25f   :  { %v1420_v61 = vpop.f32.mrb[82].mxu1  ;;  %v1419_v3 = vadd.f32 %v1418_v14, %v2554_v54 }
 0x260   :  { %v1421_v47 = vadd.f32 %v1420_v61, %v2551_v1  ;;  %v1422_v16 = vpop.f32.mrb[83].mxu1 }
 0x261   :  { %v1423_v50 = vadd.f32 %v1422_v16, %v2554_v54 }
 0x262   :  { %v1521_v49 = vpack.c.bf16 %v1421_v47, %v1417_v28 }
 0x263   :  { %v1522_v36 = vpack.c.bf16 %v1423_v50, %v1419_v3 }
 0x265   :  { %v1426_v9 = vpop.f32.mrb[84].mxu1  ;;  %1553 = vmatprep.subr.bf16.mxu1 %v1522_v36 }
 0x266   :  { %v1428_v23 = vpop.f32.mrb[85].mxu1  ;;  %1554 = vmatpush1.bf16.msra.mxu1 %v1521_v49  ;;  %v1427_v8 = vadd.f32 %v1426_v9, %v2551_v1 }
 0x267   :  { %v1430_v24 = vpop.f32.mrb[86].mxu1  ;;  %v1429_v11 = vadd.f32 %v1428_v23, %v2554_v54 }
 0x268   :  { %v1431_v13 = vadd.f32 %v1430_v24, %v2551_v1  ;;  %v1432_v37 = vpop.f32.mrb[87].mxu1 }
 0x269   :  { %v1433_v12 = vadd.f32 %v1432_v37, %v2554_v54 }
 0x26a   :  { %v1523_v41 = vpack.c.bf16 %v1431_v13, %v1427_v8 }
 0x26b   :  { %v1524_v52 = vpack.c.bf16 %v1433_v12, %v1429_v11 }
 0x26d   :  { %v1436_v17 = vpop.f32.mrb[88].mxu1  ;;  %1555 = vmatprep.subr.bf16.mxu1 %v1524_v52 }
 0x26e   :  { %v1438_v19 = vpop.f32.mrb[89].mxu1  ;;  %1556 = vmatpush1.bf16.msra.mxu1 %v1523_v41  ;;  %v1437_v27 = vadd.f32 %v1436_v17, %v2551_v1 }
 0x26f   :  { %v1440_v15 = vpop.f32.mrb[90].mxu1  ;;  %v1439_v31 = vadd.f32 %v1438_v19, %v2554_v54 }
 0x270   :  { %v1441_v43 = vadd.f32 %v1440_v15, %v2551_v1  ;;  %v1442_v26 = vpop.f32.mrb[91].mxu1 }
 0x271   :  { %v1443_v18 = vadd.f32 %v1442_v26, %v2554_v54 }
 0x272   :  { %v1525_v42 = vpack.c.bf16 %v1441_v43, %v1437_v27 }
 0x273   :  { %v1526_v62 = vpack.c.bf16 %v1443_v18, %v1439_v31 }
 0x275   :  { %1557 = vmatprep.subr.bf16.mxu1 %v1526_v62 }
 0x276   :  { %1558 = vmatpush1.bf16.msra.mxu1 %v1525_v42 }
 0x279   :  { %1707 = vmatmul.mubr.msk.bf16.vlgmr.msra.gmra.mrb[92].mxu1 %vm2577_vm5, %v1956_v51 }
 0x27a   :  { %1709 = vmatprep.mubr.msk.bf16.mxu1 %vm1708_vm8, %v1956_v51 }
 0x281   :  { %1711 = vmatmul.mubr.msk.bf16.gmra.mrb[96].mxu1 %vm1710_vm11, %v1956_v51 }
 0x34c   :  { %v1561_v46 = vpop.f32.mrb[92].mxu1 }
 0x34d   :  { %v1563_v1 = vpop.f32.mrb[93].mxu1  ;;  %1588 = vst [vmem:[%s2684_s8] sm:$0xff] %v1561_v46 }
 0x34e   :  { %v1565_v54 = vpop.f32.mrb[94].mxu1  ;;  %1589 = vst [vmem:[%s2684_s8 + $0x8] sm:$0xff] %v1563_v1 }
 0x34f   :  { %v1567_v2 = vpop.f32.mrb[95].mxu1  ;;  %1590 = vst [vmem:[%s2684_s8 + $0x10] sm:$0xff] %v1565_v54 }
 0x350   :  { %1591 = vst [vmem:[%s2684_s8 + $0x18] sm:$0xff] %v1567_v2 }
 0x354   :  { %v1571_v30 = vpop.f32.mrb[96].mxu1 }
 0x355   :  { %v1573_v51 = vpop.f32.mrb[97].mxu1  ;;  %1592 = vst [vmem:[%s2684_s8 + $0x20] sm:$0xff] %v1571_v30 }
 0x356   :  { %v1575_v60 = vpop.f32.mrb[98].mxu1  ;;  %1593 = vst [vmem:[%s2684_s8 + $0x28] sm:$0xff] %v1573_v51 }
 0x357   :  { %v1577_v53 = vpop.f32.mrb[99].mxu1  ;;  %1594 = vst [vmem:[%s2684_s8 + $0x30] sm:$0xff] %v1575_v60 }
 0x358   :  { %1595 = vst [vmem:[%s2684_s8 + $0x38] sm:$0xff] %v1577_v53 }

// kernel: gmn_propagator_forward.5
= control target key start
LH: loop header
LB: loop body
LE: loop exit
PB: predicated region body
PF: predicated region fallthrough
CT: control target
= control target key end

     0   :  { %16 = vsyncpa [#allocation6], 0  ;;  %s2950_s17 = smov 0   ;;  %s2952_s18 = smov 0   ;;  %s3535_s0 = inlined_call_operand.vmem [shape: bf16[32,128], index: 0, kind: input, shape index: {}]   ;;  %s3536_s1 = inlined_call_operand.vmem [shape: bf16[32,256], index: 1, kind: input, shape index: {}]   ;;  %s3537_s2 = inlined_call_operand.vmem [shape: bf16[32,128], index: 2, kind: input, shape index: {}]   ;;  %s3538_s3 = inlined_call_operand.vmem [shape: bf16[128,512], index: 3, kind: input, shape index: {}]   ;;  %s3539_s4 = inlined_call_operand.vmem [shape: bf16[256,512], index: 4, kind: input, shape index: {}]   ;;  %s3540_s5 = inlined_call_operand.vmem [shape: bf16[128,512], index: 5, kind: input, shape index: {}]   ;;  %s3541_s6 = inlined_call_operand.vmem [shape: f32[1,512], index: 6, kind: input, shape index: {}]   ;;  %s3542_s7 = inlined_call_operand.vmem [shape: bf16[512,128], index: 7, kind: input, shape index: {}]   ;;  %s3543_s8 = inlined_call_operand.vmem [shape: f32[1,128], index: 8, kind: input, shape index: {}]   ;;  %s3544_s9 = inlined_call_operand.vmem [shape: f32[1,128], index: 9, kind: input, shape index: {}]   ;;  %s3545_s10 = inlined_call_operand.vmem [shape: f32[1,128], index: 10, kind: input, shape index: {}]   ;;  %s3546_s11 = inlined_call_operand.hbm [shape: f32[32,128], index: 11, kind: output, shape index: {}]  }
   0x1   :  { %s2954_s19 = smov 0  }
   0x2 LB: > { %s2286_s20 = sadd.s32 4294967295, %s2883_s19   ;;  %s34_s21 = sadd.s32 1, %s2879_s18  ;;  %s2883_s19 = sphi %s2954_s19, %s22_s19   ;;  %s2879_s18 = sphi %s2952_s18, %s3549_s18   ;;  %s2875_s17 = sphi %s2950_s17, %s3548_s17  }
   0x3   : > { %p36_p0 = scmp.ge.s32.totalorder %s34_s21, 2  ;;  %p2292_p1 = scmp.ge.s32.totalorder %s2883_s19, 1 }
   0x4   : > { %p398_p2 = scmp.lt.s32.totalorder %s2883_s19, 3 }
   0x5   : > { %s3551_s21 = smov (%p36_p0, %s34_s21), 0 }
   0x6   : > { %p399_p3 = pnand %p2292_p1, %p398_p2 }
   0x7   : > { %p483_p4 = scmp.eq.s32.totalorder (!%p399_p3), %s2875_s17, 0 }
   0x8   : > { %402 = sbr.rel (%p399_p3) target bundleno = 684 (0x2ac), region = 64 }
   0xf   : > { %488 = sbr.rel (!%p483_p4) target bundleno = 22 (0x16), region = 68  ;;  %v2885_v0 = vmov (%p483_p4), 0.0  }
  0x10   : > { %489 = vst [vmem:[#allocation3] sm:$0x1] (%p483_p4), %v2885_v0  ;;  %490 = vst [vmem:[#allocation4] sm:$0x1] (%p483_p4), %v2885_v0 }
  0x16 PF: > { %p2294_p5 = scmp.ne.s32.totalorder %s2875_s17, 0 }
  0x17   : > { %v2595_v1 = vld [vmem:[%s3539_s4 + $0x4] ss:$16 sps:$4 sm:$0xff] (!%p2294_p5)   ;;  %v2597_v2 = vld [vmem:[%s3539_s4 + $0xc] ss:$16 sps:$4 sm:$0xff] (!%p2294_p5)   ;;  %v2599_v3 = vld [vmem:[%s3539_s4] ss:$16 sps:$4 sm:$0xff] (!%p2294_p5)  }
  0x18   : > { %493 = sbr.rel (%p2294_p5) target bundleno = 622 (0x26e), region = 72  ;;  %938 = vmatprep.subr.bf16.mxu0 (!%p2294_p5), %v2595_v1  ;;  %v2600_v4 = vld [vmem:[%s3539_s4 + $0x8] ss:$16 sps:$4 sm:$0xff] (!%p2294_p5)   ;;  %991 = vmatprep.subr.bf16.mxu1 (!%p2294_p5), %v2597_v2  ;;  %v2601_v5 = vld [vmem:[%s3539_s4 + $0x24] ss:$16 sps:$4 sm:$0xff] (!%p2294_p5)  }
  0x19   : > { %939 = vmatpush1.bf16.msra.mxu0 (!%p2294_p5), %v2599_v3  ;;  %992 = vmatpush1.bf16.msra.mxu1 (!%p2294_p5), %v2600_v4  ;;  %v2603_v6 = vld [vmem:[%s3539_s4 + $0x2c] ss:$16 sps:$4 sm:$0xff] (!%p2294_p5)   ;;  %v2605_v7 = vld [vmem:[%s3539_s4 + $0x20] ss:$16 sps:$4 sm:$0xff] (!%p2294_p5)   ;;  %v2606_v8 = vld [vmem:[%s3539_s4 + $0x28] ss:$16 sps:$4 sm:$0xff] (!%p2294_p5)  }
  0x1a   : > { %940 = vmatprep.subr.bf16.mxu0 (!%p2294_p5), %v2601_v5  ;;  %993 = vmatprep.subr.bf16.mxu1 (!%p2294_p5), %v2603_v6  ;;  %v2607_v9 = vld [vmem:[%s3539_s4 + $0x44] ss:$16 sps:$4 sm:$0xff] (!%p2294_p5)   ;;  %v2609_v10 = vld [vmem:[%s3539_s4 + $0x4c] ss:$16 sps:$4 sm:$0xff] (!%p2294_p5)   ;;  %v2611_v11 = vld [vmem:[%s3539_s4 + $0x40] ss:$16 sps:$4 sm:$0xff] (!%p2294_p5)  }
  0x1b   : > { %v2612_v12 = vld [vmem:[%s3539_s4 + $0x48] ss:$16 sps:$4 sm:$0xff] (!%p2294_p5)   ;;  %v2613_v13 = vld [vmem:[%s3539_s4 + $0x64] ss:$16 sps:$4 sm:$0xff] (!%p2294_p5)   ;;  %v2615_v14 = vld [vmem:[%s3539_s4 + $0x6c] ss:$16 sps:$4 sm:$0xff] (!%p2294_p5)  }
  0x1c   : > { %v2617_v15 = vld [vmem:[%s3539_s4 + $0x60] ss:$16 sps:$4 sm:$0xff] (!%p2294_p5)   ;;  %v2618_v16 = vld [vmem:[%s3539_s4 + $0x68] ss:$16 sps:$4 sm:$0xff] (!%p2294_p5)   ;;  %v2619_v17 = vld [vmem:[%s3539_s4 + $0x84] ss:$16 sps:$4 sm:$0xff] (!%p2294_p5)  }
  0x1d   : > { %941 = vmatpush1.bf16.msra.mxu0 (!%p2294_p5), %v2605_v7  ;;  %994 = vmatpush1.bf16.msra.mxu1 (!%p2294_p5), %v2606_v8  ;;  %v2621_v18 = vld [vmem:[%s3539_s4 + $0x8c] ss:$16 sps:$4 sm:$0xff] (!%p2294_p5)   ;;  %v2623_v19 = vld [vmem:[%s3539_s4 + $0x80] ss:$16 sps:$4 sm:$0xff] (!%p2294_p5)   ;;  %v2624_v20 = vld [vmem:[%s3539_s4 + $0x88] ss:$16 sps:$4 sm:$0xff] (!%p2294_p5)  }
  0x1e   : > { %942 = vmatprep.subr.bf16.mxu0 (!%p2294_p5), %v2607_v9  ;;  %995 = vmatprep.subr.bf16.mxu1 (!%p2294_p5), %v2609_v10  ;;  %v2625_v21 = vld [vmem:[%s3539_s4 + $0xa4] ss:$16 sps:$4 sm:$0xff] (!%p2294_p5)   ;;  %v2627_v22 = vld [vmem:[%s3539_s4 + $0xac] ss:$16 sps:$4 sm:$0xff] (!%p2294_p5)   ;;  %v2629_v23 = vld [vmem:[%s3539_s4 + $0xa0] ss:$16 sps:$4 sm:$0xff] (!%p2294_p5)  }
  0x1f   : > { %v2630_v24 = vld [vmem:[%s3539_s4 + $0xa8] ss:$16 sps:$4 sm:$0xff]   ;;  %v2631_v25 = vld [vmem:[%s3539_s4 + $0xc4] ss:$16 sps:$4 sm:$0xff]   ;;  %v2633_v26 = vld [vmem:[%s3539_s4 + $0xcc] ss:$16 sps:$4 sm:$0xff]  }
  0x20   : > { %v2635_v27 = vld [vmem:[%s3539_s4 + $0xc0] ss:$16 sps:$4 sm:$0xff]   ;;  %v2636_v28 = vld [vmem:[%s3539_s4 + $0xc8] ss:$16 sps:$4 sm:$0xff]   ;;  %v2637_v29 = vld [vmem:[%s3539_s4 + $0xe4] ss:$16 sps:$4 sm:$0xff]  }
  0x21   : > { %943 = vmatpush1.bf16.msra.mxu0 %v2611_v11  ;;  %996 = vmatpush1.bf16.msra.mxu1 %v2612_v12  ;;  %v2639_v30 = vld [vmem:[%s3539_s4 + $0xec] ss:$16 sps:$4 sm:$0xff]   ;;  %v2641_v31 = vld [vmem:[%s3539_s4 + $0xe0] ss:$16 sps:$4 sm:$0xff]   ;;  %v2642_v32 = vld [vmem:[%s3539_s4 + $0xe8] ss:$16 sps:$4 sm:$0xff]  }
  0x22   : > { %944 = vmatprep.subr.bf16.mxu0 %v2613_v13  ;;  %997 = vmatprep.subr.bf16.mxu1 %v2615_v14  ;;  %v2643_v33 = vld [vmem:[%s3539_s4 + $0x104] ss:$16 sps:$4 sm:$0xff]   ;;  %v2645_v34 = vld [vmem:[%s3539_s4 + $0x10c] ss:$16 sps:$4 sm:$0xff]   ;;  %v2647_v35 = vld [vmem:[%s3539_s4 + $0x100] ss:$16 sps:$4 sm:$0xff]  }
  0x23   : > { %v2648_v36 = vld [vmem:[%s3539_s4 + $0x108] ss:$16 sps:$4 sm:$0xff]   ;;  %v2649_v37 = vld [vmem:[%s3539_s4 + $0x124] ss:$16 sps:$4 sm:$0xff]   ;;  %v2651_v38 = vld [vmem:[%s3539_s4 + $0x12c] ss:$16 sps:$4 sm:$0xff]  }
  0x24   : > { %v2653_v39 = vld [vmem:[%s3539_s4 + $0x120] ss:$16 sps:$4 sm:$0xff]   ;;  %v2654_v40 = vld [vmem:[%s3539_s4 + $0x128] ss:$16 sps:$4 sm:$0xff]   ;;  %v2655_v41 = vld [vmem:[%s3539_s4 + $0x144] ss:$16 sps:$4 sm:$0xff]  }
  0x25   : > { %945 = vmatpush1.bf16.msra.mxu0 %v2617_v15  ;;  %998 = vmatpush1.bf16.msra.mxu1 %v2618_v16  ;;  %v2657_v42 = vld [vmem:[%s3539_s4 + $0x14c] ss:$16 sps:$4 sm:$0xff]   ;;  %v2659_v43 = vld [vmem:[%s3539_s4 + $0x140] ss:$16 sps:$4 sm:$0xff]   ;;  %v2660_v44 = vld [vmem:[%s3539_s4 + $0x148] ss:$16 sps:$4 sm:$0xff]  }
  0x26   : > { %946 = vmatprep.subr.bf16.mxu0 %v2619_v17  ;;  %999 = vmatprep.subr.bf16.mxu1 %v2621_v18  ;;  %v2661_v45 = vld [vmem:[%s3539_s4 + $0x164] ss:$16 sps:$4 sm:$0xff]   ;;  %v2663_v46 = vld [vmem:[%s3539_s4 + $0x16c] ss:$16 sps:$4 sm:$0xff]   ;;  %v2665_v47 = vld [vmem:[%s3539_s4 + $0x160] ss:$16 sps:$4 sm:$0xff]  }
  0x27   : > { %v2666_v48 = vld [vmem:[%s3539_s4 + $0x168] ss:$16 sps:$4 sm:$0xff]   ;;  %v2693_v49 = vld [vmem:[%s3536_s1 + $0x4] ss:$8 sps:$4 sm:$0xff]   ;;  %v2671_v52 = vld [vmem:[%s3539_s4 + $0x180] ss:$16 sps:$4 sm:$0xff]  }
  0x28   : > { %v2667_v50 = vld [vmem:[%s3539_s4 + $0x184] ss:$16 sps:$4 sm:$0xff]   ;;  %v2669_v51 = vld [vmem:[%s3539_s4 + $0x18c] ss:$16 sps:$4 sm:$0xff]   ;;  %970 = vmatprep.mubr.bf16.mxu0 %v2693_v49  ;;  %1023 = vmatprep.mubr.bf16.mxu1 %v2693_v49  ;;  %v2672_v53 = vld [vmem:[%s3539_s4 + $0x188] ss:$16 sps:$4 sm:$0xff]  }
  0x29   : > { %947 = vmatpush1.bf16.msra.mxu0 %v2623_v19  ;;  %1000 = vmatpush1.bf16.msra.mxu1 %v2624_v20  ;;  %v2673_v54 = vld [vmem:[%s3539_s4 + $0x1a4] ss:$16 sps:$4 sm:$0xff]   ;;  %v2675_v55 = vld [vmem:[%s3539_s4 + $0x1ac] ss:$16 sps:$4 sm:$0xff]   ;;  %v2677_v56 = vld [vmem:[%s3539_s4 + $0x1a0] ss:$16 sps:$4 sm:$0xff]  }
  0x2a   : > { %948 = vmatprep.subr.bf16.mxu0 %v2625_v21  ;;  %1001 = vmatprep.subr.bf16.mxu1 %v2627_v22  ;;  %v2678_v57 = vld [vmem:[%s3539_s4 + $0x1a8] ss:$16 sps:$4 sm:$0xff]   ;;  %v2679_v58 = vld [vmem:[%s3539_s4 + $0x1c4] ss:$16 sps:$4 sm:$0xff]   ;;  %v2681_v59 = vld [vmem:[%s3539_s4 + $0x1cc] ss:$16 sps:$4 sm:$0xff]  }
  0x2b   : > { %v2683_v60 = vld [vmem:[%s3539_s4 + $0x1c0] ss:$16 sps:$4 sm:$0xff]   ;;  %v2684_v61 = vld [vmem:[%s3539_s4 + $0x1c8] ss:$16 sps:$4 sm:$0xff]   ;;  %v2685_v62 = vld [vmem:[%s3539_s4 + $0x1e4] ss:$16 sps:$4 sm:$0xff]  }
  0x2c   : > { %v2687_v63 = vld [vmem:[%s3539_s4 + $0x1ec] ss:$16 sps:$4 sm:$0xff]   ;;  %v2689_v0 = vld [vmem:[%s3539_s4 + $0x1e0] ss:$16 sps:$4 sm:$0xff]   ;;  %v2690_v1 = vld [vmem:[%s3539_s4 + $0x1e8] ss:$16 sps:$4 sm:$0xff]  }
  0x2d   : > { %949 = vmatpush1.bf16.msra.mxu0 %v2629_v23  ;;  %1002 = vmatpush1.bf16.msra.mxu1 %v2630_v24  ;;  %v2696_v2 = vld [vmem:[%s3538_s3 + $0x4] ss:$16 sps:$4 sm:$0xff]   ;;  %v2699_v3 = vld [vmem:[%s3538_s3 + $0xc] ss:$16 sps:$4 sm:$0xff]   ;;  %v2691_v4 = vld [vmem:[%s3536_s1] ss:$8 sps:$4 sm:$0xff]  }
  0x2e   : > { %950 = vmatprep.subr.bf16.mxu0 %v2631_v25  ;;  %1003 = vmatprep.subr.bf16.mxu1 %v2633_v26  ;;  %v2694_v5 = vld [vmem:[%s3538_s3] ss:$16 sps:$4 sm:$0xff]   ;;  %v2697_v6 = vld [vmem:[%s3538_s3 + $0x8] ss:$16 sps:$4 sm:$0xff]   ;;  %v2702_v7 = vld [vmem:[%s3538_s3 + $0x24] ss:$16 sps:$4 sm:$0xff]  }
  0x2f   : > { %v2705_v8 = vld [vmem:[%s3538_s3 + $0x2c] ss:$16 sps:$4 sm:$0xff]   ;;  %v2700_v10 = vld [vmem:[%s3538_s3 + $0x20] ss:$16 sps:$4 sm:$0xff]   ;;  %v2703_v11 = vld [vmem:[%s3538_s3 + $0x28] ss:$16 sps:$4 sm:$0xff]  }
  0x30   : > { %v2730_v9 = vld [vmem:[%s3536_s1 + $0x14] ss:$8 sps:$4 sm:$0xff]   ;;  %v2706_v14 = vld [vmem:[%s3538_s3 + $0x40] ss:$16 sps:$4 sm:$0xff]   ;;  %v2709_v16 = vld [vmem:[%s3538_s3 + $0x48] ss:$16 sps:$4 sm:$0xff]  }
  0x31   : > { %951 = vmatpush1.bf16.msra.mxu0 %v2635_v27  ;;  %1004 = vmatpush1.bf16.msra.mxu1 %v2636_v28  ;;  %v2708_v12 = vld [vmem:[%s3538_s3 + $0x44] ss:$16 sps:$4 sm:$0xff]   ;;  %v2711_v13 = vld [vmem:[%s3538_s3 + $0x4c] ss:$16 sps:$4 sm:$0xff]   ;;  %v2738_v15 = vld [vmem:[%s3536_s1 + $0x10] ss:$8 sps:$4 sm:$0xff]  }
  0x32   : > { %952 = vmatprep.subr.bf16.mxu0 %v2637_v29  ;;  %1005 = vmatprep.subr.bf16.mxu1 %v2639_v30  ;;  %v2714_v17 = vld [vmem:[%s3538_s3 + $0x64] ss:$16 sps:$4 sm:$0xff]   ;;  %v2717_v18 = vld [vmem:[%s3538_s3 + $0x6c] ss:$16 sps:$4 sm:$0xff]   ;;  %v2712_v19 = vld [vmem:[%s3538_s3 + $0x60] ss:$16 sps:$4 sm:$0xff]  }
  0x33   : > { %v2715_v20 = vld [vmem:[%s3538_s3 + $0x68] ss:$16 sps:$4 sm:$0xff]   ;;  %v2720_v21 = vld [vmem:[%s3538_s3 + $0x84] ss:$16 sps:$4 sm:$0xff]   ;;  %v2723_v22 = vld [vmem:[%s3538_s3 + $0x8c] ss:$16 sps:$4 sm:$0xff]  }
  0x34   : > { %v2886_v23 = vmov 0   ;;  %v2718_v24 = vld [vmem:[%s3538_s3 + $0x80] ss:$16 sps:$4 sm:$0xff]   ;;  %v2721_v25 = vld [vmem:[%s3538_s3 + $0x88] ss:$16 sps:$4 sm:$0xff]  }
  0x35   : > { %953 = vmatpush1.bf16.msra.mxu0 %v2641_v31  ;;  %1006 = vmatpush1.bf16.msra.mxu1 %v2642_v32  ;;  %v2726_v26 = vld [vmem:[%s3538_s3 + $0xa4] ss:$16 sps:$4 sm:$0xff]   ;;  %v2729_v27 = vld [vmem:[%s3538_s3 + $0xac] ss:$16 sps:$4 sm:$0xff]   ;;  %v2724_v28 = vld [vmem:[%s3538_s3 + $0xa0] ss:$16 sps:$4 sm:$0xff]  }
  0x36   : > { %954 = vmatprep.subr.bf16.mxu0 %v2643_v33  ;;  %1007 = vmatprep.subr.bf16.mxu1 %v2645_v34  ;;  %v2727_v29 = vld [vmem:[%s3538_s3 + $0xa8] ss:$16 sps:$4 sm:$0xff]   ;;  %v2734_v30 = vld [vmem:[%s3538_s3 + $0xc4] ss:$16 sps:$4 sm:$0xff]   ;;  %v2737_v31 = vld [vmem:[%s3538_s3 + $0xcc] ss:$16 sps:$4 sm:$0xff]  }
  0x37   : > { %v2732_v32 = vld [vmem:[%s3538_s3 + $0xc0] ss:$16 sps:$4 sm:$0xff]   ;;  %v2735_v33 = vld [vmem:[%s3538_s3 + $0xc8] ss:$16 sps:$4 sm:$0xff]   ;;  %v2741_v34 = vld [vmem:[%s3538_s3 + $0xe4] ss:$16 sps:$4 sm:$0xff]  }
  0x38   : > { %v2758_v49 = vld [vmem:[%s3540_s5 + $0x40] ss:$16 sps:$4 sm:$0xff]  }
  0x39   : > { %955 = vmatpush1.bf16.msra.mxu0 %v2647_v35  ;;  %1008 = vmatpush1.bf16.msra.mxu1 %v2648_v36  ;;  %v2744_v35 = vld [vmem:[%s3538_s3 + $0xec] ss:$16 sps:$4 sm:$0xff]   ;;  %v2739_v36 = vld [vmem:[%s3538_s3 + $0xe0] ss:$16 sps:$4 sm:$0xff]  }
  0x3a   : > { %956 = vmatprep.subr.bf16.mxu0 %v2649_v37  ;;  %1009 = vmatprep.subr.bf16.mxu1 %v2651_v38  ;;  %v2742_v37 = vld [vmem:[%s3538_s3 + $0xe8] ss:$16 sps:$4 sm:$0xff]   ;;  %v2747_v38 = vld [vmem:[%s3540_s5 + $0x4] ss:$16 sps:$4 sm:$0xff]  }
  0x3d   : > { %957 = vmatpush1.bf16.msra.mxu0 %v2653_v39  ;;  %1010 = vmatpush1.bf16.msra.mxu1 %v2654_v40  ;;  %v2750_v39 = vld [vmem:[%s3540_s5 + $0xc] ss:$16 sps:$4 sm:$0xff]   ;;  %v2745_v40 = vld [vmem:[%s3540_s5] ss:$16 sps:$4 sm:$0xff]  }
  0x3e   : > { %958 = vmatprep.subr.bf16.mxu0 %v2655_v41  ;;  %1011 = vmatprep.subr.bf16.mxu1 %v2657_v42  ;;  %v2748_v41 = vld [vmem:[%s3540_s5 + $0x8] ss:$16 sps:$4 sm:$0xff]   ;;  %v2751_v42 = vld [vmem:[%s3535_s0] sm:$0xff]  }
  0x41   : > { %959 = vmatpush1.bf16.msra.mxu0 %v2659_v43  ;;  %1012 = vmatpush1.bf16.msra.mxu1 %v2660_v44  ;;  %v2754_v43 = vld [vmem:[%s3540_s5 + $0x24] ss:$16 sps:$4 sm:$0xff]   ;;  %v2757_v44 = vld [vmem:[%s3540_s5 + $0x2c] ss:$16 sps:$4 sm:$0xff]  }
  0x42   : > { %960 = vmatprep.subr.bf16.mxu0 %v2661_v45  ;;  %1013 = vmatprep.subr.bf16.mxu1 %v2663_v46  ;;  %v2752_v45 = vld [vmem:[%s3540_s5 + $0x20] ss:$16 sps:$4 sm:$0xff]   ;;  %v2755_v46 = vld [vmem:[%s3540_s5 + $0x28] ss:$16 sps:$4 sm:$0xff]  }
  0x45   : > { %961 = vmatpush1.bf16.msra.mxu0 %v2665_v47  ;;  %1014 = vmatpush1.bf16.msra.mxu1 %v2666_v48  ;;  %v2760_v47 = vld [vmem:[%s3540_s5 + $0x44] ss:$16 sps:$4 sm:$0xff]   ;;  %v2763_v48 = vld [vmem:[%s3540_s5 + $0x4c] ss:$16 sps:$4 sm:$0xff]  }
  0x46   : > { %962 = vmatprep.subr.bf16.mxu0 %v2667_v50  ;;  %1015 = vmatprep.subr.bf16.mxu1 %v2669_v51  ;;  %v2761_v50 = vld [vmem:[%s3540_s5 + $0x48] ss:$16 sps:$4 sm:$0xff]  }
  0x47   : > { %v2782_v51 = vld [vmem:[%s3535_s0 + $0x8] sm:$0xff]  }
  0x49   : > { %963 = vmatpush1.bf16.msra.mxu0 %v2671_v52  ;;  %1016 = vmatpush1.bf16.msra.mxu1 %v2672_v53  ;;  %v2766_v52 = vld [vmem:[%s3540_s5 + $0x64] ss:$16 sps:$4 sm:$0xff]   ;;  %v2769_v53 = vld [vmem:[%s3540_s5 + $0x6c] ss:$16 sps:$4 sm:$0xff]  }
  0x4a   : > { %964 = vmatprep.subr.bf16.mxu0 %v2673_v54  ;;  %1017 = vmatprep.subr.bf16.mxu1 %v2675_v55  ;;  %v2764_v54 = vld [vmem:[%s3540_s5 + $0x60] ss:$16 sps:$4 sm:$0xff]   ;;  %v2767_v55 = vld [vmem:[%s3540_s5 + $0x68] ss:$16 sps:$4 sm:$0xff]  }
  0x4d   : > { %965 = vmatpush1.bf16.msra.mxu0 %v2677_v56  ;;  %1018 = vmatpush1.bf16.msra.mxu1 %v2678_v57  ;;  %v2772_v56 = vld [vmem:[%s3540_s5 + $0x84] ss:$16 sps:$4 sm:$0xff]   ;;  %v2775_v57 = vld [vmem:[%s3540_s5 + $0x8c] ss:$16 sps:$4 sm:$0xff]  }
  0x4e   : > { %966 = vmatprep.subr.bf16.mxu0 %v2679_v58  ;;  %1019 = vmatprep.subr.bf16.mxu1 %v2681_v59  ;;  %v2770_v58 = vld [vmem:[%s3540_s5 + $0x80] ss:$16 sps:$4 sm:$0xff]   ;;  %v2773_v59 = vld [vmem:[%s3540_s5 + $0x88] ss:$16 sps:$4 sm:$0xff]  }
  0x51   : > { %967 = vmatpush1.bf16.msra.mxu0 %v2683_v60  ;;  %1020 = vmatpush1.bf16.msra.mxu1 %v2684_v61  ;;  %v2778_v60 = vld [vmem:[%s3540_s5 + $0xa4] ss:$16 sps:$4 sm:$0xff]   ;;  %v2781_v61 = vld [vmem:[%s3540_s5 + $0xac] ss:$16 sps:$4 sm:$0xff]  }
  0x52   : > { %968 = vmatprep.subr.bf16.mxu0 %v2685_v62  ;;  %1021 = vmatprep.subr.bf16.mxu1 %v2687_v63  ;;  %v2776_v62 = vld [vmem:[%s3540_s5 + $0xa0] ss:$16 sps:$4 sm:$0xff]   ;;  %v2779_v63 = vld [vmem:[%s3540_s5 + $0xa8] ss:$16 sps:$4 sm:$0xff]  }
  0x55   : > { %969 = vmatpush1.bf16.msra.mxu0 %v2689_v0  ;;  %1022 = vmatpush1.bf16.msra.mxu1 %v2690_v1  ;;  %v2785_v0 = vld [vmem:[%s3540_s5 + $0xc4] ss:$16 sps:$4 sm:$0xff]   ;;  %v2788_v1 = vld [vmem:[%s3540_s5 + $0xcc] ss:$16 sps:$4 sm:$0xff]  }
  0x56   : > { %1216 = vmatprep.subr.bf16.mxu0 %v2696_v2  ;;  %1269 = vmatprep.subr.bf16.mxu1 %v2699_v3  ;;  %v2783_v2 = vld [vmem:[%s3540_s5 + $0xc0] ss:$16 sps:$4 sm:$0xff]   ;;  %v2786_v3 = vld [vmem:[%s3540_s5 + $0xc8] ss:$16 sps:$4 sm:$0xff]  }
  0x58   : > { %971 = vmatmul.mubr.bf16.vlgmr.msra.gmra.mrb[0].mxu0 %v2691_v4  ;;  %1024 = vmatmul.mubr.bf16.vlgmr.msra.gmra.mrb[0].mxu1 %v2691_v4  ;;  %v2791_v4 = vld [vmem:[%s3540_s5 + $0xe4] ss:$16 sps:$4 sm:$0xff]  }
  0x59   : > { %1217 = vmatpush1.bf16.msra.mxu0 %v2694_v5  ;;  %1270 = vmatpush1.bf16.msra.mxu1 %v2697_v6  ;;  %v2794_v5 = vld [vmem:[%s3540_s5 + $0xec] ss:$16 sps:$4 sm:$0xff]   ;;  %v2789_v6 = vld [vmem:[%s3540_s5 + $0xe0] ss:$16 sps:$4 sm:$0xff]  }
  0x5a   : > { %1218 = vmatprep.subr.bf16.mxu0 %v2702_v7  ;;  %1271 = vmatprep.subr.bf16.mxu1 %v2705_v8  ;;  %v2792_v7 = vld [vmem:[%s3540_s5 + $0xe8] ss:$16 sps:$4 sm:$0xff]   ;;  %v2797_v8 = vld [vmem:[%s3542_s7 + $0x40] sm:$0xff]  }
  0x5b   : > { %980 = vmatprep.mubr.bf16.mxu0 %v2730_v9  ;;  %1033 = vmatprep.mubr.bf16.mxu1 %v2730_v9  ;;  %v2798_v9 = vld [vmem:[%s3542_s7 + $0xc0] sm:$0xff]  }
  0x5d   : > { %1219 = vmatpush1.bf16.msra.mxu0 %v2700_v10  ;;  %1272 = vmatpush1.bf16.msra.mxu1 %v2703_v11  ;;  %v2795_v10 = vld [vmem:[%s3537_s2] sm:$0xff]  }
  0x5e   : > { %1220 = vmatprep.subr.bf16.mxu0 %v2708_v12  ;;  %1273 = vmatprep.subr.bf16.mxu1 %v2711_v13  ;;  %v2799_v11 = vld [vmem:[%s3542_s7] sm:$0xff]   ;;  %v2801_v13 = vld [vmem:[%s3542_s7 + $0x48] sm:$0xff]  }
  0x5f   : > { %v2800_v12 = vld [vmem:[%s3542_s7 + $0x80] sm:$0xff]  }
  0x60   : > { %981 = vmatmul.mubr.bf16.gmra.mrb[4].mxu0 %v2738_v15  ;;  %1034 = vmatmul.mubr.bf16.gmra.mrb[4].mxu1 %v2738_v15  ;;  %v2803_v15 = vld [vmem:[%s3542_s7 + $0x8] sm:$0xff]  }
  0x61   : > { %1221 = vmatpush1.bf16.msra.mxu0 %v2706_v14  ;;  %1274 = vmatpush1.bf16.msra.mxu1 %v2709_v16  ;;  %v2802_v14 = vld [vmem:[%s3542_s7 + $0xc8] sm:$0xff]  }
  0x62   : > { %1222 = vmatprep.subr.bf16.mxu0 %v2714_v17  ;;  %1275 = vmatprep.subr.bf16.mxu1 %v2717_v18  ;;  %v2804_v16 = vld [vmem:[%s3542_s7 + $0x88] sm:$0xff]   ;;  %v2805_v17 = vld [vmem:[%s3542_s7 + $0x50] sm:$0xff]  }
  0x63   : > { %1248 = vmatprep.mubr.bf16.mxu0 %v2886_v23  ;;  %1301 = vmatprep.mubr.bf16.mxu1 %v2886_v23  ;;  %v2806_v18 = vld [vmem:[%s3542_s7 + $0xd0] sm:$0xff]  }
  0x65   : > { %1223 = vmatpush1.bf16.msra.mxu0 %v2712_v19  ;;  %1276 = vmatpush1.bf16.msra.mxu1 %v2715_v20  ;;  %v2796_v19 = vld [vmem:[%s3537_s2 + $0x8] sm:$0xff]   ;;  %v2807_v20 = vld [vmem:[%s3542_s7 + $0x10] sm:$0xff]  }
  0x66   : > { %1224 = vmatprep.subr.bf16.mxu0 %v2720_v21  ;;  %1277 = vmatprep.subr.bf16.mxu1 %v2723_v22  ;;  %v2808_v21 = vld [vmem:[%s3542_s7 + $0x90] sm:$0xff]   ;;  %v2809_v22 = vld [vmem:[%s3542_s7 + $0x58] sm:$0xff]  }
  0x69   : > { %1225 = vmatpush1.bf16.msra.mxu0 %v2718_v24  ;;  %1278 = vmatpush1.bf16.msra.mxu1 %v2721_v25  ;;  %v2811_v24 = vld [vmem:[%s3542_s7 + $0x18] sm:$0xff]  }
  0x6a   : > { %1226 = vmatprep.subr.bf16.mxu0 %v2726_v26  ;;  %1279 = vmatprep.subr.bf16.mxu1 %v2729_v27  ;;  %v2812_v25 = vld [vmem:[%s3542_s7 + $0x98] sm:$0xff]   ;;  %v2813_v26 = vld [vmem:[%s3542_s7 + $0x60] sm:$0xff]  }
  0x6b   : > { %v2814_v27 = vld [vmem:[%s3542_s7 + $0xe0] sm:$0xff]  }
  0x6d   : > { %1227 = vmatpush1.bf16.msra.mxu0 %v2724_v28  ;;  %1280 = vmatpush1.bf16.msra.mxu1 %v2727_v29  ;;  %v2815_v28 = vld [vmem:[%s3542_s7 + $0x20] sm:$0xff]  }
  0x6e   : > { %1228 = vmatprep.subr.bf16.mxu0 %v2734_v30  ;;  %1281 = vmatprep.subr.bf16.mxu1 %v2737_v31  ;;  %v2816_v29 = vld [vmem:[%s3542_s7 + $0xa0] sm:$0xff]   ;;  %v2817_v30 = vld [vmem:[%s3542_s7 + $0x68] sm:$0xff]  }
  0x6f   : > { %v2818_v31 = vld [vmem:[%s3542_s7 + $0xe8] sm:$0xff]  }
  0x71   : > { %1229 = vmatpush1.bf16.msra.mxu0 %v2732_v32  ;;  %1282 = vmatpush1.bf16.msra.mxu1 %v2735_v33  ;;  %v2819_v32 = vld [vmem:[%s3542_s7 + $0x28] sm:$0xff]  }
  0x72   : > { %1230 = vmatprep.subr.bf16.mxu0 %v2741_v34  ;;  %1283 = vmatprep.subr.bf16.mxu1 %v2744_v35  ;;  %v2820_v33 = vld [vmem:[%s3542_s7 + $0xa8] sm:$0xff]   ;;  %v2821_v34 = vld [vmem:[%s3542_s7 + $0x70] sm:$0xff]  }
  0x73   : > { %v2822_v35 = vld [vmem:[%s3542_s7 + $0xf0] sm:$0xff]  }
  0x75   : > { %1231 = vmatpush1.bf16.msra.mxu0 %v2739_v36  ;;  %1284 = vmatpush1.bf16.msra.mxu1 %v2742_v37  ;;  %v2823_v36 = vld [vmem:[%s3542_s7 + $0x30] sm:$0xff]  }
  0x76   : > { %1530 = vmatprep.subr.bf16.mxu0 %v2747_v38  ;;  %1583 = vmatprep.subr.bf16.mxu1 %v2750_v39  ;;  %v2824_v37 = vld [vmem:[%s3542_s7 + $0xb0] sm:$0xff]   ;;  %v2825_v38 = vld [vmem:[%s3542_s7 + $0x78] sm:$0xff]  }
  0x77   : > { %v2826_v39 = vld [vmem:[%s3542_s7 + $0xf8] sm:$0xff]  }
  0x78   : > { %1249 = vmatmul.mubr.bf16.vlgmr.msra.gmra.mrb[0].mxu0 %v2751_v42  ;;  %1302 = vmatmul.mubr.bf16.vlgmr.msra.gmra.mrb[0].mxu1 %v2751_v42  ;;  %v1654_v42 = vlaneseq }
  0x79   : > { %1531 = vmatpush1.bf16.msra.mxu0 %v2745_v40  ;;  %1584 = vmatpush1.bf16.msra.mxu1 %v2748_v41  ;;  %v2827_v40 = vld [vmem:[%s3542_s7 + $0x38] sm:$0xff]  }
  0x7a   : > { %1532 = vmatprep.subr.bf16.mxu0 %v2754_v43  ;;  %1585 = vmatprep.subr.bf16.mxu1 %v2757_v44  ;;  %v2828_v41 = vld [vmem:[%s3542_s7 + $0xb8] sm:$0xff]   ;;  %v1655_v43 = vshrl.u32 %v1654_v42, 7 }
  0x7b   : > { %1258 = vmatprep.mubr.bf16.mxu0 %v2886_v23  ;;  %1311 = vmatprep.mubr.bf16.mxu1 %v2886_v23 }
  0x7c   : > { %v1656_v44 = vsub.s32 0, %v1655_v43 }
  0x7d   : > { %1533 = vmatpush1.bf16.msra.mxu0 %v2752_v45  ;;  %1586 = vmatpush1.bf16.msra.mxu1 %v2755_v46  ;;  %v1664_v45 = vsub.s32 2, %v1655_v43  ;;  %v1652_v46 = vld [vmem:[%s3541_s6] sm:$0xf] }
  0x7e   : > { %1534 = vmatprep.subr.bf16.mxu0 %v2760_v47  ;;  %1587 = vmatprep.subr.bf16.mxu1 %v2763_v48  ;;  %v1660_v47 = vsub.s32 1, %v1655_v43  ;;  %v1668_v48 = vsub.s32 3, %v1655_v43 }
  0x80   : > { %1259 = vmatmul.mubr.bf16.gmra.mrb[4].mxu0 %v2782_v51  ;;  %1312 = vmatmul.mubr.bf16.gmra.mrb[4].mxu1 %v2782_v51  ;;  %v1661_v51 = vrot.slane %v1652_v46, %v1660_v47  ;;  %v2431_v47 = vld [vmem:[%s3543_s8] ss:$0 sm:$0xff] }
  0x81   : > { %1535 = vmatpush1.bf16.msra.mxu0 %v2758_v49  ;;  %1588 = vmatpush1.bf16.msra.mxu1 %v2761_v50  ;;  %v1657_v49 = vrot.slane %v1652_v46, %v1656_v44  ;;  %v1665_v50 = vrot.slane %v1652_v46, %v1664_v45 }
  0x82   : > { %1536 = vmatprep.subr.bf16.mxu0 %v2766_v52  ;;  %1589 = vmatprep.subr.bf16.mxu1 %v2769_v53  ;;  %v1669_v52 = vrot.slane %v1652_v46, %v1668_v48 }
  0x83   : > { %1562 = vmatprep.mubr.bf16.mxu0 %v2886_v23  ;;  %1615 = vmatprep.mubr.bf16.mxu1 %v2886_v23 }
  0x85   : > { %1537 = vmatpush1.bf16.msra.mxu0 %v2764_v54  ;;  %1590 = vmatpush1.bf16.msra.mxu1 %v2767_v55 }
  0x86   : > { %1538 = vmatprep.subr.bf16.mxu0 %v2772_v56  ;;  %1591 = vmatprep.subr.bf16.mxu1 %v2775_v57 }
  0x89   : > { %1539 = vmatpush1.bf16.msra.mxu0 %v2770_v58  ;;  %1592 = vmatpush1.bf16.msra.mxu1 %v2773_v59 }
  0x8a   : > { %1540 = vmatprep.subr.bf16.mxu0 %v2778_v60  ;;  %1593 = vmatprep.subr.bf16.mxu1 %v2781_v61 }
  0x8d   : > { %1541 = vmatpush1.bf16.msra.mxu0 %v2776_v62  ;;  %1594 = vmatpush1.bf16.msra.mxu1 %v2779_v63 }
  0x8e   : > { %1542 = vmatprep.subr.bf16.mxu0 %v2785_v0  ;;  %1595 = vmatprep.subr.bf16.mxu1 %v2788_v1 }
  0x91   : > { %1543 = vmatpush1.bf16.msra.mxu0 %v2783_v2  ;;  %1596 = vmatpush1.bf16.msra.mxu1 %v2786_v3 }
  0x92   : > { %1544 = vmatprep.subr.bf16.mxu0 %v2791_v4  ;;  %1597 = vmatprep.subr.bf16.mxu1 %v2794_v5 }
  0x95   : > { %1545 = vmatpush1.bf16.msra.mxu0 %v2789_v6  ;;  %1598 = vmatpush1.bf16.msra.mxu1 %v2792_v7 }
  0x96   : > { %2472 = vmatprep.subr.bf16.mxu0 %v2797_v8  ;;  %2500 = vmatprep.subr.bf16.mxu1 %v2798_v9 }
  0x98   : > { %1563 = vmatmul.mubr.bf16.vlgmr.msra.gmra.mrb[0].mxu0 %v2795_v10  ;;  %1616 = vmatmul.mubr.bf16.vlgmr.msra.gmra.mrb[0].mxu1 %v2795_v10 }
  0x99   : > { %1572 = vmatprep.mubr.bf16.mxu0 %v2886_v23  ;;  %1625 = vmatprep.mubr.bf16.mxu1 %v2886_v23  ;;  %v2810_v23 = vld [vmem:[%s3542_s7 + $0xd8] sm:$0xff]  }
  0x9a   : > { %2473 = vmatpush3.bf16.msra.mxu0 %v2799_v11  ;;  %2501 = vmatpush3.bf16.msra.mxu1 %v2800_v12 }
  0x9b   : > { %2474 = vmatprep.subr.bf16.mxu0 %v2801_v13  ;;  %2502 = vmatprep.subr.bf16.mxu1 %v2802_v14 }
  0x9e   : > { %2475 = vmatpush3.bf16.msra.mxu0 %v2803_v15  ;;  %2503 = vmatpush3.bf16.msra.mxu1 %v2804_v16 }
  0x9f   : > { %2476 = vmatprep.subr.bf16.mxu0 %v2805_v17  ;;  %2504 = vmatprep.subr.bf16.mxu1 %v2806_v18 }
  0xa0   : > { %1573 = vmatmul.mubr.bf16.gmra.mrb[4].mxu0 %v2796_v19  ;;  %1626 = vmatmul.mubr.bf16.gmra.mrb[4].mxu1 %v2796_v19 }
  0xa2   : > { %2477 = vmatpush3.bf16.msra.mxu0 %v2807_v20  ;;  %2505 = vmatpush3.bf16.msra.mxu1 %v2808_v21 }
  0xa3   : > { %2478 = vmatprep.subr.bf16.mxu0 %v2809_v22  ;;  %2506 = vmatprep.subr.bf16.mxu1 %v2810_v23 }
  0xa6   : > { %2479 = vmatpush3.bf16.msra.mxu0 %v2811_v24  ;;  %2507 = vmatpush3.bf16.msra.mxu1 %v2812_v25 }
  0xa7   : > { %2480 = vmatprep.subr.bf16.mxu0 %v2813_v26  ;;  %2508 = vmatprep.subr.bf16.mxu1 %v2814_v27 }
  0xaa   : > { %2481 = vmatpush3.bf16.msra.mxu0 %v2815_v28  ;;  %2509 = vmatpush3.bf16.msra.mxu1 %v2816_v29 }
  0xab   : > { %2482 = vmatprep.subr.bf16.mxu0 %v2817_v30  ;;  %2510 = vmatprep.subr.bf16.mxu1 %v2818_v31 }
  0xae   : > { %2483 = vmatpush3.bf16.msra.mxu0 %v2819_v32  ;;  %2511 = vmatpush3.bf16.msra.mxu1 %v2820_v33 }
  0xaf   : > { %2484 = vmatprep.subr.bf16.mxu0 %v2821_v34  ;;  %2512 = vmatprep.subr.bf16.mxu1 %v2822_v35 }
  0xb2   : > { %2485 = vmatpush3.bf16.msra.mxu0 %v2823_v36  ;;  %2513 = vmatpush3.bf16.msra.mxu1 %v2824_v37 }
  0xb3   : > { %2486 = vmatprep.subr.bf16.mxu0 %v2825_v38  ;;  %2514 = vmatprep.subr.bf16.mxu1 %v2826_v39 }
  0xb6   : > { %2487 = vmatpush3.bf16.msra.mxu0 %v2827_v40  ;;  %2515 = vmatpush3.bf16.msra.mxu1 %v2828_v41 }
 0x16b   : > { %v1564_v53 = vpop.f32.mrb[0].mxu0  ;;  %v1617_v54 = vpop.f32.mrb[0].mxu1 }
 0x16c   : > { %v1674_v55 = vadd.f32 %v1657_v49, %v1564_v53  ;;  %v1676_v56 = vadd.f32 %v1665_v50, %v1617_v54  ;;  %v1566_v57 = vpop.f32.mrb[1].mxu0  ;;  %v1619_v58 = vpop.f32.mrb[1].mxu1 }
 0x16d   : > { %v1675_v59 = vadd.f32 %v1661_v51, %v1566_v57  ;;  %v1677_v60 = vadd.f32 %v1669_v52, %v1619_v58  ;;  %v1568_v61 = vpop.f32.mrb[2].mxu0  ;;  %v1621_v62 = vpop.f32.mrb[2].mxu1 }
 0x16e   : > { %v1678_v63 = vadd.f32 %v1657_v49, %v1568_v61  ;;  %v1680_v0 = vadd.f32 %v1665_v50, %v1621_v62  ;;  %v1570_v1 = vpop.f32.mrb[3].mxu0  ;;  %v1623_v2 = vpop.f32.mrb[3].mxu1  ;;  %v1690_v5 = vmax.f32 %v1674_v55, 0.0  ;;  %v1692_v6 = vmax.f32 %v1676_v56, 0.0 }
 0x16f   : > { %v1679_v3 = vadd.f32 %v1661_v51, %v1570_v1  ;;  %v1681_v4 = vadd.f32 %v1669_v52, %v1623_v2  ;;  %v1691_v9 = vmax.f32 %v1675_v59, 0.0  ;;  %v1693_v10 = vmax.f32 %v1677_v60, 0.0 }
 0x170   : > { %v1694_v7 = vmax.f32 %v1678_v63, 0.0  ;;  %v1696_v8 = vmax.f32 %v1680_v0, 0.0 }
 0x171   : > { %v1695_v11 = vmax.f32 %v1679_v3, 0.0  ;;  %v1697_v12 = vmax.f32 %v1681_v4, 0.0 }
 0x172   : > { %v1706_v13 = vpack.c.bf16 %v1694_v7, %v1690_v5  ;;  %v1708_v14 = vpack.c.bf16 %v1696_v8, %v1692_v6 }
 0x173   : > { %v1707_v15 = vpack.c.bf16 %v1695_v11, %v1691_v9  ;;  %v1709_v16 = vpack.c.bf16 %v1697_v12, %v1693_v10  ;;  %v1574_v17 = vpop.f32.mrb[4].mxu0  ;;  %v1627_v18 = vpop.f32.mrb[4].mxu1 }
 0x174   : > { %v1682_v19 = vadd.f32 %v1657_v49, %v1574_v17  ;;  %v1684_v20 = vadd.f32 %v1665_v50, %v1627_v18  ;;  %v1576_v21 = vpop.f32.mrb[5].mxu0  ;;  %v1629_v22 = vpop.f32.mrb[5].mxu1 }
 0x175   : > { %v1683_v23 = vadd.f32 %v1661_v51, %v1576_v21  ;;  %v1685_v24 = vadd.f32 %v1669_v52, %v1629_v22  ;;  %v1578_v25 = vpop.f32.mrb[6].mxu0  ;;  %v1631_v26 = vpop.f32.mrb[6].mxu1  ;;  %2009 = vmatprep.mubr.bf16.mxu0 %v1707_v15  ;;  %2058 = vmatprep.mubr.bf16.mxu1 %v1709_v16 }
 0x176   : > { %v1686_v27 = vadd.f32 %v1657_v49, %v1578_v25  ;;  %v1688_v28 = vadd.f32 %v1665_v50, %v1631_v26  ;;  %v1580_v29 = vpop.f32.mrb[7].mxu0  ;;  %v1633_v30 = vpop.f32.mrb[7].mxu1  ;;  %2010 = vmatmul.mubr.bf16.vlgmr.msra.gmra.mrb[8].mxu0 %v1706_v13  ;;  %2059 = vmatmul.mubr.bf16.vlgmr.msra.gmra.mrb[8].mxu1 %v1708_v14  ;;  %v1698_v33 = vmax.f32 %v1682_v19, 0.0  ;;  %v1700_v34 = vmax.f32 %v1684_v20, 0.0 }
 0x177   : > { %v1687_v31 = vadd.f32 %v1661_v51, %v1580_v29  ;;  %v1689_v32 = vadd.f32 %v1669_v52, %v1633_v30  ;;  %v1699_v37 = vmax.f32 %v1683_v23, 0.0  ;;  %v1701_v38 = vmax.f32 %v1685_v24, 0.0 }
 0x178   : > { %v1702_v35 = vmax.f32 %v1686_v27, 0.0  ;;  %v1704_v36 = vmax.f32 %v1688_v28, 0.0 }
 0x179   : > { %v1703_v39 = vmax.f32 %v1687_v31, 0.0  ;;  %v1705_v40 = vmax.f32 %v1689_v32, 0.0 }
 0x17a   : > { %v1710_v41 = vpack.c.bf16 %v1702_v35, %v1698_v33  ;;  %v1712_v42 = vpack.c.bf16 %v1704_v36, %v1700_v34  ;;  %v2103_v33 = vld [vmem:[#allocation3] sm:$0x1]  ;;  %v2115_v36 = vld [vmem:[#allocation4] sm:$0x1] }
 0x17b   : > { %v1711_v43 = vpack.c.bf16 %v1703_v39, %v1699_v37  ;;  %v1713_v44 = vpack.c.bf16 %v1705_v40, %v1701_v38 }
 0x17d   : > { %2017 = vmatprep.mubr.bf16.mxu0 %v1711_v43  ;;  %2066 = vmatprep.mubr.bf16.mxu1 %v1713_v44 }
 0x17e   : > { %2018 = vmatmul.mubr.bf16.gmra.mrb[12].mxu0 %v1710_v41  ;;  %2067 = vmatmul.mubr.bf16.gmra.mrb[12].mxu1 %v1712_v42 }
 0x249   : > { %v2488_v45 = vpop.f32.mrb[8].mxu0  ;;  %v2516_v46 = vpop.f32.mrb[8].mxu1 }
 0x24a   : > { %v2489_v48 = vpop.f32.mrb[9].mxu0  ;;  %v2517_v49 = vpop.f32.mrb[9].mxu1 }
 0x24b   : > { %v2490_v50 = vadd.f32 %v2489_v48, %v2488_v45  ;;  %v2518_v51 = vadd.f32 %v2517_v49, %v2516_v46  ;;  %v2491_v52 = vpop.f32.mrb[10].mxu0  ;;  %v2519_v53 = vpop.f32.mrb[10].mxu1 }
 0x24c   : > { %v2492_v54 = vpop.f32.mrb[11].mxu0  ;;  %v2520_v55 = vpop.f32.mrb[11].mxu1 }
 0x24d   : > { %v2012_v56 = vadd.f32 %v2490_v50, %v2431_v47  ;;  %v2493_v57 = vadd.f32 %v2492_v54, %v2491_v52  ;;  %v2521_v58 = vadd.f32 %v2520_v55, %v2519_v53 }
 0x24f   : > { %v2061_v59 = vadd.f32 %v2518_v51, %v2012_v56  ;;  %v2015_v60 = vadd.f32 %v2493_v57, %v2431_v47 }
 0x251   : > { %2077 = vst [vmem:[#allocation2] sm:$0xff] %v2061_v59  ;;  %2081 = vst [vmem:[#allocation5] sm:$0xff] %v2061_v59  ;;  %v2064_v61 = vadd.f32 %v2521_v58, %v2015_v60  ;;  %v2494_v62 = vpop.f32.mrb[12].mxu0  ;;  %v2522_v63 = vpop.f32.mrb[12].mxu1  ;;  %v2116_v0 = vmul.f32 %v2061_v59, %v2061_v59 }
 0x252   : > { %v2495_v1 = vpop.f32.mrb[13].mxu0  ;;  %v2523_v2 = vpop.f32.mrb[13].mxu1 }
 0x253   : > { %2078 = vst [vmem:[#allocation2 + $0x8] sm:$0xff] %v2064_v61  ;;  %2082 = vst [vmem:[#allocation5 + $0x8] sm:$0xff] %v2064_v61  ;;  %v2104_v3 = vadd.f32 %v2064_v61, %v2061_v59  ;;  %v2117_v4 = vmul.f32 %v2064_v61, %v2064_v61  ;;  %v2496_v5 = vadd.f32 %v2495_v1, %v2494_v62  ;;  %v2497_v7 = vpop.f32.mrb[14].mxu0  ;;  %v2525_v8 = vpop.f32.mrb[14].mxu1 }
 0x254   : > { %v2524_v6 = vadd.f32 %v2523_v2, %v2522_v63  ;;  %v2498_v9 = vpop.f32.mrb[15].mxu0  ;;  %v2526_v10 = vpop.f32.mrb[15].mxu1 }
 0x255   : > { %v2120_v11 = vadd.f32 %v2117_v4, %v2116_v0  ;;  %v2020_v12 = vadd.f32 %v2496_v5, %v2431_v47  ;;  %v2499_v13 = vadd.f32 %v2498_v9, %v2497_v7  ;;  %v2527_v14 = vadd.f32 %v2526_v10, %v2525_v8 }
 0x257   : > { %v2069_v15 = vadd.f32 %v2524_v6, %v2020_v12  ;;  %v2023_v16 = vadd.f32 %v2499_v13, %v2431_v47 }
 0x259   : > { %2079 = vst [vmem:[#allocation2 + $0x10] sm:$0xff] %v2069_v15  ;;  %2083 = vst [vmem:[#allocation5 + $0x10] sm:$0xff] %v2069_v15  ;;  %v2105_v17 = vadd.f32 %v2104_v3, %v2069_v15  ;;  %v2118_v18 = vmul.f32 %v2069_v15, %v2069_v15  ;;  %v2072_v19 = vadd.f32 %v2527_v14, %v2023_v16 }
 0x25b   : > { %v2121_v20 = vadd.f32 %v2120_v11, %v2118_v18  ;;  %2080 = vst [vmem:[#allocation2 + $0x18] sm:$0xff] %v2072_v19  ;;  %2084 = vst [vmem:[#allocation5 + $0x18] sm:$0xff] %v2072_v19  ;;  %v2106_v21 = vadd.f32 %v2105_v17, %v2072_v19  ;;  %v2119_v22 = vmul.f32 %v2072_v19, %v2072_v19 }
 0x25d   : > { %v2107_v23 = vrot.slane %v2106_v21, 4  ;;  %v2122_v24 = vadd.f32 %v2121_v20, %v2119_v22 }
 0x25f   : > { %v2108_v25 = vadd.f32 %v2107_v23, %v2106_v21  ;;  %v2123_v26 = vrot.slane %v2122_v24, 4 }
 0x261   : > { %v2109_v27 = vrot.slane %v2108_v25, 2  ;;  %v2124_v28 = vadd.f32 %v2123_v26, %v2122_v24 }
 0x263   : > { %v2110_v29 = vadd.f32 %v2109_v27, %v2108_v25  ;;  %v2125_v30 = vrot.slane %v2124_v28, 2 }
 0x265   : > { %v2111_v31 = vrot.slane %v2110_v29, 1  ;;  %v2126_v32 = vadd.f32 %v2125_v30, %v2124_v28 }
 0x267   : > { %v2112_v34 = vadd.f32 %v2111_v31, %v2110_v29  ;;  %v2127_v35 = vrot.slane %v2126_v32, 1 }
 0x269   : > { %v2113_v37 = vadd.f32 %v2112_v34, %v2103_v33  ;;  %v2128_v38 = vadd.f32 %v2127_v35, %v2126_v32 }
 0x26b   : > { %2114 = vst [vmem:[#allocation3] sm:$0x1] %v2113_v37  ;;  %v2129_v39 = vadd.f32 %v2128_v38, %v2115_v36 }
 0x26d   : > { %2130 = vst [vmem:[#allocation4] sm:$0x1] %v2129_v39 }
 0x26e PF: > { %p2464_p6 = scmp.ne.s32.totalorder %s2875_s17, 1 }
 0x26f   : > { %v2151_v45 = vlaneseq (!%p2464_p6)  ;;  %v2146_v51 = vld [vmem:[#allocation2] sm:$0xff] (!%p2464_p6)  ;;  %v2147_v53 = vld [vmem:[#allocation2 + $0x8] sm:$0xff] (!%p2464_p6)  ;;  %v2148_v54 = vld [vmem:[#allocation2 + $0x10] sm:$0xff] (!%p2464_p6) }
 0x270   : > { %2134 = sbr.rel (%p2464_p6) target bundleno = 658 (0x292), region = 76  ;;  %v2149_v55 = vld [vmem:[#allocation2 + $0x18] sm:$0xff] (!%p2464_p6)  ;;  %v2465_v62 = vld [vmem:[%s3544_s9] ss:$0 sm:$0xff] (!%p2464_p6) }
 0x271   : > { %v2152_v48 = vshrl.u32 (!%p2464_p6), %v2151_v45, 7  ;;  %v2466_v3 = vld [vmem:[%s3545_s10] ss:$0 sm:$0xff] (!%p2464_p6) }
 0x272   : > { %v2135_v40 = vld [vmem:[#allocation3] sm:$0x1] (!%p2464_p6) }
 0x273   : > { %v2136_v42 = vmul.f32 (!%p2464_p6), 0.03125, %v2135_v40  ;;  %v2153_v50 = vsub.s32 (!%p2464_p6), 0, %v2152_v48 }
 0x274   : > { %v2137_v41 = vld [vmem:[#allocation4] sm:$0x1] (!%p2464_p6) }
 0x275   : > { %v2138_v43 = vmul.f32 (!%p2464_p6), 0.03125, %v2137_v41  ;;  %v2139_v44 = vmul.f32 (!%p2464_p6), %v2136_v42, %v2136_v42  ;;  %v2154_v52 = vrot.slane (!%p2464_p6), %v2136_v42, %v2153_v50 }
 0x277   : > { %v2140_v46 = vsub.f32 %v2138_v43, %v2139_v44  ;;  %v2156_v56 = vsub.f32 %v2146_v51, %v2154_v52  ;;  %v2157_v57 = vsub.f32 %v2147_v53, %v2154_v52  ;;  %v2158_v58 = vsub.f32 %v2148_v54, %v2154_v52 }
 0x278   : > { %v2159_v59 = vsub.f32 %v2149_v55, %v2154_v52 }
 0x279   : > { %v2141_v47 = vmax.f32 %v2140_v46, 0.0 }
 0x27b   : > { %v2142_v49 = vadd.f32 1e-05, %v2141_v47 }
 0x27d   : > { %2829 = vrsqrt.f32 %v2142_v49 }
 0x287   : > { %v2830_v60 = vpop.eup %2829 }
 0x288   : > { %v2164_v61 = vrot.slane %v2830_v60, %v2153_v50 }
 0x28a   : > { %v2166_v63 = vmul.f32 %v2164_v61, %v2156_v56  ;;  %v2167_v0 = vmul.f32 %v2164_v61, %v2157_v57  ;;  %v2168_v1 = vmul.f32 %v2164_v61, %v2158_v58  ;;  %v2169_v2 = vmul.f32 %v2164_v61, %v2159_v59 }
 0x28c   : > { %v2177_v4 = vmul.f32 %v2465_v62, %v2166_v63  ;;  %v2178_v5 = vmul.f32 %v2465_v62, %v2167_v0  ;;  %v2179_v6 = vmul.f32 %v2465_v62, %v2168_v1  ;;  %v2180_v7 = vmul.f32 %v2465_v62, %v2169_v2 }
 0x28e   : > { %v2188_v8 = vadd.f32 %v2466_v3, %v2177_v4  ;;  %v2189_v9 = vadd.f32 %v2466_v3, %v2178_v5  ;;  %v2190_v10 = vadd.f32 %v2466_v3, %v2179_v6  ;;  %v2191_v11 = vadd.f32 %v2466_v3, %v2180_v7 }
 0x290   : > { %2192 = vst [vmem:[#allocation5] sm:$0xff] %v2188_v8  ;;  %2193 = vst [vmem:[#allocation5 + $0x8] sm:$0xff] %v2189_v9 }
 0x291   : > { %2194 = vst [vmem:[#allocation5 + $0x10] sm:$0xff] %v2190_v10  ;;  %2195 = vst [vmem:[#allocation5 + $0x18] sm:$0xff] %v2191_v11 }
 0x292 PF: > { %p3500_p7 = scmp.eq.s32.totalorder %s2286_s20, 1  ;;  %s2887_s30 = smov [#allocation5]  }
 0x293   : > { %s2205_s12 = sshll.u32 %s2887_s30, 4  ;;  %s2206_s12 = int_to_ptr.vmem [resolvable:$true] %s2205_s12 }
 0x294   : > { %s2831_s13 = scalar_lea.vmem %s2206_s12, 512  ;;  %p2838_p11 = scmp.lt.s32.totalorder %s2206_s12, %s2206_s12 }
 0x295   : > { %p2832_p8 = scmp.ne.s32.totalorder %s2206_s12, %s2831_s13  ;;  %p2839_p12 = scmp.lt.s32.totalorder %s2831_s13, %s2831_s13 }
 0x297   : > { %p2833_p9 = pnand %p2832_p8, %p3500_p7  ;;  %p2840_p13 = por %p2839_p12, %p2838_p11 }
 0x299   : > { %p2834_p10 = pneg %p2833_p9 }
 0x29b   : > { %p2841_p0 = pnand %p2840_p13, %p2834_p10 }
 0x29d   : > { %2844 = shalt.err (!%p2841_p0)
}
 0x29e   : > { %s2845_s20 = scalar_lea.hbm %s3546_s11, 512 }
 0x29f   : > { %p2846_p1 = scmp.ne.s32.totalorder %s3546_s11, %s2845_s20  ;;  %p2851_p4 = scmp.lt.u32.totalorder %s2845_s20, %s3546_s11 }
 0x2a1   : > { %p2847_p2 = pnand %p2846_p1, %p3500_p7 }
 0x2a3   : > { %p2848_p3 = pneg %p2847_p2 }
 0x2a5   : > { %p2853_p5 = pnand %p2851_p4, %p2848_p3 }
 0x2a7   : > { %2856 = shalt.err (!%p2853_p5)
}
 0x2a8   : > { %s2888_s25 = smov 128   ;;  %s2889_s17 = smov 8  }
 0x2a9   : > { %2561 = dma.vmem_to_hbm [thread:$0]  (%p3500_p7), %s2206_s12, 512, %s3546_s11, [#allocation6], %s2888_s25, %s2888_s25, %s2889_s17  }
 0x2aa   : > { %2870 = dma.done.wait (%p3500_p7), [#allocation6], 512  }
 0x2ab   : > { %2872 = vsyncadd (%p3500_p7), [#allocation6], 4294966784 }
 0x2ac PF: > { %s22_s19 = sadd.s32 1, %s2883_s19   ;;  %s3548_s17 = smov %s2879_s18 }
 0x2ad   : > { %p19_p6 = scmp.ge.s32.totalorder %s22_s19, 4   ;;  %s3549_s18 = smov %s3551_s21 }
 0x2af   :  { %21 = sbr.rel (!%p19_p6) target bundleno = 2 (0x2), region = 112 }
 0x2b6   :  { %2221 = vsyncpa [#allocation6], 1 }
 0x2b7   :  { %2223 = vsyncpa [#allocation6 + $0x1], 1 }

</bundles_post_ra>
